<compile_context>
chip_gen: v5e
topology: v5e:2x2
jax: 0.10.0
libtpu: 0.0.40
codegen_flags: <defaults>
</compile_context>

<pallas_src>
import functools

import jax
import jax.numpy as jnp
from jax.experimental import pallas as pl
from jax.experimental.pallas import tpu as pltpu

K_IN = 356    # conditioning feature size fixed by the module
K_PAD = 384   # padded to the next multiple of 128 (lane aligned)


# ----------------------------------------------------------------------------
# Kernel: fused two-head MLP for Bt batch elements + broadcasted affine apply
# ----------------------------------------------------------------------------
def _affine_kernel(y_ref, w1_ref, b1_ref, w2_ref, b2_ref, x_ref, o_ref, *, cp, bt):
    # y_ref : (K_PAD, bt)        bf16   conditioning columns for this batch block
    # w1_ref: (2*K_PAD, K_PAD)   bf16   [w1_gamma ; w1_beta] stacked
    # b1_ref: (2*K_PAD, 1)       f32
    # w2_ref: (2*cp, 2*K_PAD)    bf16   block-diag([w2_gamma, w2_beta])
    # b2_ref: (2*cp, 1)          f32
    # x_ref : (bt, cp, HWp)      f32
    f32 = jnp.float32

    # Layer 1 (both heads in one MXU pass) + ReLU.
    h = jnp.dot(w1_ref[...], y_ref[...], preferred_element_type=f32) + b1_ref[...]
    h = jnp.maximum(h, 0.0).astype(jnp.bfloat16)                  # (2*K_PAD, bt)

    # Layer 2 (block-diagonal => gamma rows on top, beta rows below).
    gb = jnp.dot(w2_ref[...], h, preferred_element_type=f32) + b2_ref[...]  # (2*cp, bt)
    gamma = gb[:cp, :]                                            # (cp, bt)
    beta = gb[cp:, :]                                             # (cp, bt)

    # Apply per batch element of the block: (cp,1) columns broadcast over the
    # lane-dense (cp, HWp) activation tile.  bt is small -> static unroll.
    for j in range(bt):
        o_ref[j] = (gamma[:, j:j + 1] * x_ref[j] + beta[:, j:j + 1]).astype(o_ref.dtype)


# ----------------------------------------------------------------------------
# One-time parameter preparation (fuse heads, pad, cast to bf16).
# Call this OUTSIDE the per-step jitted path.
# ----------------------------------------------------------------------------
def prepare_params(params):
    C = params["g_w2"].shape[0]
    cp = -(-C // 8) * 8                       # channels padded to sublane multiple
    f32 = jnp.float32

    # Layer 1: stack [gamma-head ; beta-head] -> (2*K_PAD, K_PAD)
    w1 = jnp.zeros((2 * K_PAD, K_PAD), f32)
    w1 = w1.at[:K_IN, :K_IN].set(params["g_w1"])
    w1 = w1.at[K_PAD:K_PAD + K_IN, :K_IN].set(params["b_w1"])
    b1 = jnp.zeros((2 * K_PAD, 1), f32)
    b1 = b1.at[:K_IN, 0].set(params["g_b1"])
    b1 = b1.at[K_PAD:K_PAD + K_IN, 0].set(params["b_b1"])

    # Layer 2: block-diagonal [[w2_gamma, 0], [0, w2_beta]] -> (2*cp, 2*K_PAD)
    w2 = jnp.zeros((2 * cp, 2 * K_PAD), f32)
    w2 = w2.at[:C, :K_IN].set(params["g_w2"])
    w2 = w2.at[cp:cp + C, K_PAD:K_PAD + K_IN].set(params["b_w2"])
    b2 = jnp.zeros((2 * cp, 1), f32)
    b2 = b2.at[:C, 0].set(params["g_b2"])
    b2 = b2.at[cp:cp + C, 0].set(params["b_b2"])

    return {"w1": w1.astype(jnp.bfloat16), "b1": b1,
            "w2": w2.astype(jnp.bfloat16), "b2": b2}


# ----------------------------------------------------------------------------
# Forward wrapper
# ----------------------------------------------------------------------------
@jax.jit
def affine_forward(prepared, x, y):
    """x: (B, C, H, W) float32; y: (B, 356) or (356,) float32."""
    B, C, H, W = x.shape
    HW = H * W
    cp = prepared["w2"].shape[0] // 2         # padded channel count (static)
    hwp = -(-HW // 128) * 128                 # lane-dense last dim

    if y.ndim == 1:                           # PyTorch's weight.dim()==1 path
        y = jnp.broadcast_to(y[None, :], (B, K_IN))

    # Batch elements per grid step: aim for ~1 MiB of activation per step
    # (escapes the ~0.35 us/step overhead regime), capped for unroll size.
    per_elem = cp * hwp * 4
    bt = int(max(1, min(B, max(1, (1 << 20) // per_elem), 16)))
    nb = -(-B // bt)
    bp = nb * bt

    # Activations: (Bp, Cp, HWp); pad only if needed (no-op at aligned shapes).
    x3 = x.reshape(B, C, HW)
    if (bp, cp, hwp) != (B, C, HW):
        x3 = jnp.pad(x3, ((0, bp - B), (0, cp - C), (0, hwp - HW)))

    # Conditioning columns per batch block: (NB, K_PAD, Bt), bf16.
    yp = jnp.pad(y.astype(jnp.float32), ((0, bp - B), (0, K_PAD - K_IN)))
    y_cols = yp.reshape(nb, bt, K_PAD).transpose(0, 2, 1).astype(jnp.bfloat16)

    kernel = functools.partial(_affine_kernel, cp=cp, bt=bt)
    const2d = lambda b: (0, 0)

    out = pl.pallas_call(
        kernel,
        out_shape=jax.ShapeDtypeStruct((bp, cp, hwp), x.dtype),
        grid=(nb,),
        in_specs=[
            pl.BlockSpec((pl.Squeezed(), K_PAD, bt), lambda b: (b, 0, 0)),  # y cols
            pl.BlockSpec((2 * K_PAD, K_PAD), const2d),   # fused layer-1 weight
            pl.BlockSpec((2 * K_PAD, 1), const2d),       # fused layer-1 bias
            pl.BlockSpec((2 * cp, 2 * K_PAD), const2d),  # block-diag layer-2 weight
            pl.BlockSpec((2 * cp, 1), const2d),          # fused layer-2 bias
            pl.BlockSpec((bt, cp, hwp), lambda b: (b, 0, 0)),               # x block
        ],
        out_specs=pl.BlockSpec((bt, cp, hwp), lambda b: (b, 0, 0)),
        compiler_params=pltpu.CompilerParams(
            dimension_semantics=("parallel",),           # batch blocks across TCs
            vmem_limit_bytes=32 * 1024 * 1024),          # ~2 MiB used; safe everywhere
    )(y_cols, prepared["w1"], prepared["b1"], prepared["w2"], prepared["b2"], x3)

    return out[:B, :C, :HW].reshape(B, C, H, W)


# ----------------------------------------------------------------------------
# Parameters (PyTorch layout: Linear weight is (out, in))
# ----------------------------------------------------------------------------
def init_params(key, num_features, randomize_linear2=False):
    k = jax.random.split(key, 8)

    def linear_default(kw, kb, fan_in, fan_out):
        # PyTorch nn.Linear default init: U(-1/sqrt(fan_in), 1/sqrt(fan_in))
        bound = 1.0 / (fan_in ** 0.5)
        w = jax.random.uniform(kw, (fan_out, fan_in), dtype=jnp.float32,
                               minval=-bound, maxval=bound)
        b = jax.random.uniform(kb, (fan_out,), dtype=jnp.float32,
                               minval=-bound, maxval=bound)
        return w, b

    p = {}
    p["g_w1"], p["g_b1"] = linear_default(k[0], k[1], K_IN, K_IN)
    p["b_w1"], p["b_b1"] = linear_default(k[2], k[3], K_IN, K_IN)
    if randomize_linear2:
        # Non-degenerate linear2 to exercise the full two-layer path in tests.
        p["g_w2"] = 0.02 * jax.random.normal(k[4], (num_features, K_IN), jnp.float32)
        p["g_b2"] = 1.0 + 0.02 * jax.random.normal(k[5], (num_features,), jnp.float32)
        p["b_w2"] = 0.02 * jax.random.normal(k[6], (num_features, K_IN), jnp.float32)
        p["b_b2"] = 0.02 * jax.random.normal(k[7], (num_features,), jnp.float32)
    else:
        # affine._initialize(): linear2 weights zero, gamma bias ones, beta bias zeros.
        p["g_w2"] = jnp.zeros((num_features, K_IN), jnp.float32)
        p["g_b2"] = jnp.ones((num_features,), jnp.float32)
        p["b_w2"] = jnp.zeros((num_features, K_IN), jnp.float32)
        p["b_b2"] = jnp.zeros((num_features,), jnp.float32)
    return p


def affine_reference(params, x, y):
    """Pure-JAX reference of affine.forward (high-precision matmuls)."""
    B = x.shape[0]
    if y.ndim == 1:
        y = jnp.broadcast_to(y[None, :], (B, K_IN))
    hp = jax.lax.Precision.HIGHEST
    hg = jnp.maximum(jnp.dot(y, params["g_w1"].T, precision=hp) + params["g_b1"], 0.0)
    gamma = jnp.dot(hg, params["g_w2"].T, precision=hp) + params["g_b2"]
    hb = jnp.maximum(jnp.dot(y, params["b_w1"].T, precision=hp) + params["b_b1"], 0.0)
    beta = jnp.dot(hb, params["b_w2"].T, precision=hp) + params["b_b2"]
    return gamma[:, :, None, None] * x + beta[:, :, None, None]


# ----------------------------------------------------------------------------
if __name__ == "__main__":
    key = jax.random.PRNGKey(0)
    k_p, k_p2, k_x, k_y = jax.random.split(key, 4)

    B, C, H, W = 2, 64, 16, 16            # num_features = 64
    x = jax.random.normal(k_x, (B, C, H, W), jnp.float32)
    y = jax.random.normal(k_y, (B, K_IN), jnp.float32)

    # 1) Spec-faithful _initialize(): gamma == 1, beta == 0  =>  out == x exactly.
    params = init_params(k_p, num_features=C)
    prepared = prepare_params(params)                 # hoisted, once per model
    out = jax.block_until_ready(affine_forward(prepared, x, y))
    assert out.shape == (B, C, H, W), out.shape
    assert bool(jnp.allclose(out, x, atol=1e-5)), "spec-init affine must be identity"
    assert bool(jnp.allclose(out, affine_reference(params, x, y),
                             atol=1e-4, rtol=1e-4))

    # 2) Randomized linear2 weights to exercise the full fused two-layer path
    #    (bf16 operands, f32 accumulation).
    params2 = init_params(k_p2, num_features=C, randomize_linear2=True)
    prepared2 = prepare_params(params2)
    out2 = jax.block_until_ready(affine_forward(prepared2, x, y))
    ref2 = affine_reference(params2, x, y)
    assert bool(jnp.allclose(out2, ref2, atol=5e-2, rtol=5e-2)), \
        float(jnp.max(jnp.abs(out2 - ref2)))

    print("KERNEL_OK")
</pallas_src>

<mosaic_0001>
module attributes {stable_mosaic.version = 11 : i64} {
  func.func @_affine_kernel(%arg0: i32, %arg1: memref<1x384x2xbf16, #tpu.memory_space<vmem>>, %arg2: memref<768x384xbf16, #tpu.memory_space<vmem>>, %arg3: memref<768x1xf32, #tpu.memory_space<vmem>>, %arg4: memref<128x768xbf16, #tpu.memory_space<vmem>>, %arg5: memref<128x1xf32, #tpu.memory_space<vmem>>, %arg6: memref<2x64x256xf32, #tpu.memory_space<vmem>>, %arg7: memref<2x64x256xf32, #tpu.memory_space<vmem>>) attributes {dimension_semantics = [#tpu.dimension_semantics<parallel>], iteration_bounds = array<i64: 1>, scalar_prefetch = 0 : i64, scratch_operands = 0 : i64, tpu.core_type = #tpu.core_type<tc>, window_params = [{transform_indices = @transform_0, window_bounds = array<i64: 1, 384, 2>}, {pipeline_mode = #tpu.pipeline_mode<synchronous>, transform_indices = @transform_1, window_bounds = array<i64: 768, 384>}, {pipeline_mode = #tpu.pipeline_mode<synchronous>, transform_indices = @transform_2, window_bounds = array<i64: 768, 1>}, {pipeline_mode = #tpu.pipeline_mode<synchronous>, transform_indices = @transform_3, window_bounds = array<i64: 128, 768>}, {pipeline_mode = #tpu.pipeline_mode<synchronous>, transform_indices = @transform_4, window_bounds = array<i64: 128, 1>}, {transform_indices = @transform_5, window_bounds = array<i64: 2, 64, 256>}, {transform_indices = @transform_6, window_bounds = array<i64: 2, 64, 256>}]} {
    %c0 = arith.constant 0 : index
    %c0_0 = arith.constant 0 : index
    %0 = vector.load %arg2[%c0, %c0_0] : memref<768x384xbf16, #tpu.memory_space<vmem>>, vector<768x384xbf16>
    %c0_1 = arith.constant 0 : index
    %c0_2 = arith.constant 0 : index
    %c0_3 = arith.constant 0 : index
    %1 = vector.load %arg1[%c0_1, %c0_2, %c0_3] : memref<1x384x2xbf16, #tpu.memory_space<vmem>>, vector<1x384x2xbf16>
    %2 = vector.shape_cast %1 : vector<1x384x2xbf16> to vector<384x2xbf16>
    %cst = arith.constant dense<0.000000e+00> : vector<768x2xf32>
    %3 = tpu.matmul %0, %2, %cst {dimension_numbers = #tpu.dot_dimension_numbers<[1], [0], [0], [1], [0, 0, 1, 1], [], []>} : vector<768x384xbf16>, vector<384x2xbf16>, vector<768x2xf32> -> vector<768x2xf32>
    %c0_4 = arith.constant 0 : index
    %c0_5 = arith.constant 0 : index
    %4 = vector.load %arg3[%c0_4, %c0_5] : memref<768x1xf32, #tpu.memory_space<vmem>>, vector<768x1xf32>
    %5 = vector.broadcast %4 : vector<768x1xf32> to vector<768x2xf32>
    %6 = arith.addf %3, %5 : vector<768x2xf32>
    %cst_6 = arith.constant 0.000000e+00 : f32
    %7 = vector.broadcast %cst_6 : f32 to vector<768x2xf32>
    %8 = arith.maximumf %6, %7 : vector<768x2xf32>
    %9 = arith.truncf %8 : vector<768x2xf32> to vector<768x2xbf16>
    %c0_7 = arith.constant 0 : index
    %c0_8 = arith.constant 0 : index
    %10 = vector.load %arg4[%c0_7, %c0_8] : memref<128x768xbf16, #tpu.memory_space<vmem>>, vector<128x768xbf16>
    %cst_9 = arith.constant dense<0.000000e+00> : vector<128x2xf32>
    %11 = tpu.matmul %10, %9, %cst_9 {dimension_numbers = #tpu.dot_dimension_numbers<[1], [0], [0], [1], [0, 0, 1, 1], [], []>} : vector<128x768xbf16>, vector<768x2xbf16>, vector<128x2xf32> -> vector<128x2xf32>
    %c0_10 = arith.constant 0 : index
    %c0_11 = arith.constant 0 : index
    %12 = vector.load %arg5[%c0_10, %c0_11] : memref<128x1xf32, #tpu.memory_space<vmem>>, vector<128x1xf32>
    %13 = vector.broadcast %12 : vector<128x1xf32> to vector<128x2xf32>
    %14 = arith.addf %11, %13 : vector<128x2xf32>
    %15 = vector.extract_strided_slice %14 {offsets = [0, 0], sizes = [64, 2], strides = [1, 1]} : vector<128x2xf32> to vector<64x2xf32>
    %16 = vector.extract_strided_slice %14 {offsets = [64, 0], sizes = [64, 2], strides = [1, 1]} : vector<128x2xf32> to vector<64x2xf32>
    %17 = vector.extract_strided_slice %15 {offsets = [0, 0], sizes = [64, 1], strides = [1, 1]} : vector<64x2xf32> to vector<64x1xf32>
    %c0_12 = arith.constant 0 : index
    %c0_13 = arith.constant 0 : index
    %c0_14 = arith.constant 0 : index
    %18 = vector.load %arg6[%c0_12, %c0_13, %c0_14] : memref<2x64x256xf32, #tpu.memory_space<vmem>>, vector<1x64x256xf32>
    %19 = vector.shape_cast %18 : vector<1x64x256xf32> to vector<64x256xf32>
    %20 = vector.broadcast %17 : vector<64x1xf32> to vector<64x256xf32>
    %21 = arith.mulf %20, %19 : vector<64x256xf32>
    %22 = vector.extract_strided_slice %16 {offsets = [0, 0], sizes = [64, 1], strides = [1, 1]} : vector<64x2xf32> to vector<64x1xf32>
    %23 = vector.broadcast %22 : vector<64x1xf32> to vector<64x256xf32>
    %24 = arith.addf %21, %23 : vector<64x256xf32>
    %c0_15 = arith.constant 0 : index
    %c0_16 = arith.constant 0 : index
    %c0_17 = arith.constant 0 : index
    %25 = vector.load %arg7[%c0_15, %c0_16, %c0_17] : memref<2x64x256xf32, #tpu.memory_space<vmem>>, vector<1x64x256xf32>
    %26 = vector.shape_cast %25 : vector<1x64x256xf32> to vector<64x256xf32>
    %27 = vector.shape_cast %24 : vector<64x256xf32> to vector<1x64x256xf32>
    tpu.vector_store %arg7[%c0_15, %c0_16, %c0_17], %27 {strides = array<i32>} : memref<2x64x256xf32, #tpu.memory_space<vmem>>, vector<1x64x256xf32>,
    %28 = vector.extract_strided_slice %15 {offsets = [0, 1], sizes = [64, 1], strides = [1, 1]} : vector<64x2xf32> to vector<64x1xf32>
    %c1 = arith.constant 1 : index
    %c0_18 = arith.constant 0 : index
    %c0_19 = arith.constant 0 : index
    %29 = vector.load %arg6[%c1, %c0_18, %c0_19] : memref<2x64x256xf32, #tpu.memory_space<vmem>>, vector<1x64x256xf32>
    %30 = vector.shape_cast %29 : vector<1x64x256xf32> to vector<64x256xf32>
    %31 = vector.broadcast %28 : vector<64x1xf32> to vector<64x256xf32>
    %32 = arith.mulf %31, %30 : vector<64x256xf32>
    %33 = vector.extract_strided_slice %16 {offsets = [0, 1], sizes = [64, 1], strides = [1, 1]} : vector<64x2xf32> to vector<64x1xf32>
    %34 = vector.broadcast %33 : vector<64x1xf32> to vector<64x256xf32>
    %35 = arith.addf %32, %34 : vector<64x256xf32>
    %c1_20 = arith.constant 1 : index
    %c0_21 = arith.constant 0 : index
    %c0_22 = arith.constant 0 : index
    %36 = vector.load %arg7[%c1_20, %c0_21, %c0_22] : memref<2x64x256xf32, #tpu.memory_space<vmem>>, vector<1x64x256xf32>
    %37 = vector.shape_cast %36 : vector<1x64x256xf32> to vector<64x256xf32>
    %38 = vector.shape_cast %35 : vector<64x256xf32> to vector<1x64x256xf32>
    tpu.vector_store %arg7[%c1_20, %c0_21, %c0_22], %38 {strides = array<i32>} : memref<2x64x256xf32, #tpu.memory_space<vmem>>, vector<1x64x256xf32>,
    return
  }
  func.func @transform_0(%arg0: i32) -> (i32, i32, i32) {
    %c0_i32 = arith.constant 0 : i32
    %c0_i32_0 = arith.constant 0 : i32
    %c0_i32_1 = arith.constant 0 : i32
    return %arg0, %c0_i32, %c0_i32_0 : i32, i32, i32
  }
  func.func @transform_1(%arg0: i32) -> (i32, i32) {
    %c0_i32 = arith.constant 0 : i32
    %c0_i32_0 = arith.constant 0 : i32
    %c0_i32_1 = arith.constant 0 : i32
    return %c0_i32, %c0_i32_0 : i32, i32
  }
  func.func @transform_2(%arg0: i32) -> (i32, i32) {
    %c0_i32 = arith.constant 0 : i32
    %c0_i32_0 = arith.constant 0 : i32
    %c0_i32_1 = arith.constant 0 : i32
    return %c0_i32, %c0_i32_0 : i32, i32
  }
  func.func @transform_3(%arg0: i32) -> (i32, i32) {
    %c0_i32 = arith.constant 0 : i32
    %c0_i32_0 = arith.constant 0 : i32
    %c0_i32_1 = arith.constant 0 : i32
    return %c0_i32, %c0_i32_0 : i32, i32
  }
  func.func @transform_4(%arg0: i32) -> (i32, i32) {
    %c0_i32 = arith.constant 0 : i32
    %c0_i32_0 = arith.constant 0 : i32
    %c0_i32_1 = arith.constant 0 : i32
    return %c0_i32, %c0_i32_0 : i32, i32
  }
  func.func @transform_5(%arg0: i32) -> (i32, i32, i32) {
    %c0_i32 = arith.constant 0 : i32
    %c0_i32_0 = arith.constant 0 : i32
    %c0_i32_1 = arith.constant 0 : i32
    return %arg0, %c0_i32, %c0_i32_0 : i32, i32, i32
  }
  func.func @transform_6(%arg0: i32) -> (i32, i32, i32) {
    %c0_i32 = arith.constant 0 : i32
    %c0_i32_0 = arith.constant 0 : i32
    %c0_i32_1 = arith.constant 0 : i32
    return %arg0, %c0_i32, %c0_i32_0 : i32, i32, i32
  }
}

</mosaic_0001>

<bundles_post_ra>
// kernel: affine_forward.1
= control target key start
LH: loop header
LB: loop body
LE: loop exit
PB: predicated region body
PF: predicated region fallthrough
CT: control target
= control target key end

     0   :  { %v7362_v0 = vmov 0   ;;  %s7355_s2 = inlined_call_operand.vmem [shape: f32[768,1], index: 2, kind: input, shape index: {}]   ;;  %s7356_s0 = inlined_call_operand.vmem [shape: bf16[1,384,2], index: 0, kind: input, shape index: {}]   ;;  %s7357_s1 = inlined_call_operand.vmem [shape: bf16[768,384], index: 1, kind: input, shape index: {}]   ;;  %s7358_s4 = inlined_call_operand.vmem [shape: f32[128,1], index: 4, kind: input, shape index: {}]   ;;  %s7359_s3 = inlined_call_operand.vmem [shape: bf16[128,768], index: 3, kind: input, shape index: {}]   ;;  %s7360_s5 = inlined_call_operand.vmem [shape: f32[2,64,256], index: 5, kind: input, shape index: {}]   ;;  %s7361_s6 = inlined_call_operand.vmem [shape: f32[2,64,256], index: 6, kind: output, shape index: {}]  }
   0x1   :  { %4714 = vset.pattern.permute.xlu2 %v7362_v0  ;;  %4713 = vset.pattern.permute.xlu1 %v7362_v0  ;;  %v277_v1 = vld [vmem:[%s7355_s2 + $0x70] sm:$0xff]  ;;  %v275_v2 = vld [vmem:[%s7355_s2 + $0x60] sm:$0xff]  ;;  %v4645_v4 = vld [vmem:[%s7356_s0 + $0x38] sm:$0xff] }
   0x2   :  { %v273_v3 = vld [vmem:[%s7355_s2 + $0x50] sm:$0xff]  ;;  %4712 = vset.pattern.permute.xlu0 %v7362_v0  ;;  %421 = vperm.xlu1 %4713, %v275_v2   ;;  %v4653_v5 = vld [vmem:[%s7356_s0 + $0x78] sm:$0xff]  ;;  %v276_v11 = vld [vmem:[%s7355_s2 + $0x68] sm:$0xff] }
   0x3   :  { %v4661_v6 = vld [vmem:[%s7356_s0 + $0xb8] sm:$0xff]  ;;  %431 = vperm.xlu0 %4712, %v277_v1   ;;  %411 = vperm.xlu2 %4714, %v273_v3   ;;  %v4644_v7 = vld [vmem:[%s7356_s0 + $0x30] sm:$0xff]  ;;  %v4643_v13 = vld [vmem:[%s7356_s0 + $0x28] sm:$0xff] }
   0x4   :  { %1751 = vmatpush.bf16.msra.mxu0 %v4645_v4  ;;  %2000 = vmatpush.bf16.msra.mxu1 %v4653_v5  ;;  %v4652_v8 = vld [vmem:[%s7356_s0 + $0x70] sm:$0xff]  ;;  %v278_v10 = vld [vmem:[%s7355_s2 + $0x78] sm:$0xff]  ;;  %v4651_v14 = vld [vmem:[%s7356_s0 + $0x68] sm:$0xff] }
   0x5   :  { %2249 = vmatpush.bf16.msra.mxu2 %v4661_v6  ;;  %v4660_v9 = vld [vmem:[%s7356_s0 + $0xb0] sm:$0xff]  ;;  %v274_v12 = vld [vmem:[%s7355_s2 + $0x58] sm:$0xff]  ;;  %v4659_v15 = vld [vmem:[%s7356_s0 + $0xa8] sm:$0xff] }
   0x6   :  { %v4642_v16 = vld [vmem:[%s7356_s0 + $0x20] sm:$0xff]  ;;  %v272_v19 = vld [vmem:[%s7355_s2 + $0x48] sm:$0xff]  ;;  %v269_v21 = vld [vmem:[%s7355_s2 + $0x30] sm:$0xff] }
   0x7   :  { %v4650_v17 = vld [vmem:[%s7356_s0 + $0x60] sm:$0xff]  ;;  %v4641_v22 = vld [vmem:[%s7356_s0 + $0x18] sm:$0xff]  ;;  %v4640_v25 = vld [vmem:[%s7356_s0 + $0x10] sm:$0xff] }
   0x8   :  { %1752 = vmatpush.bf16.msra.mxu0 %v4644_v7  ;;  %2001 = vmatpush.bf16.msra.mxu1 %v4652_v8  ;;  %v4658_v18 = vld [vmem:[%s7356_s0 + $0xa0] sm:$0xff]  ;;  %v4649_v23 = vld [vmem:[%s7356_s0 + $0x58] sm:$0xff]  ;;  %v4648_v26 = vld [vmem:[%s7356_s0 + $0x50] sm:$0xff] }
   0x9   :  { %2250 = vmatpush.bf16.msra.mxu2 %v4660_v9  ;;  %v271_v20 = vld [vmem:[%s7355_s2 + $0x40] sm:$0xff]  ;;  %v4657_v24 = vld [vmem:[%s7356_s0 + $0x98] sm:$0xff]  ;;  %v4656_v27 = vld [vmem:[%s7356_s0 + $0x90] sm:$0xff] }
   0xa   :  { %426 = vperm.xlu1 %4713, %v276_v11   ;;  %v270_v28 = vld [vmem:[%s7355_s2 + $0x38] sm:$0xff]  ;;  %v267_v29 = vld [vmem:[%s7355_s2 + $0x20] sm:$0xff]  ;;  %v268_v30 = vld [vmem:[%s7355_s2 + $0x28] sm:$0xff] }
   0xb   :  { %436 = vperm.xlu0 %4712, %v278_v10   ;;  %416 = vperm.xlu2 %4714, %v274_v12   ;;  %v4639_v31 = vld [vmem:[%s7356_s0 + $0x8] sm:$0xff]  ;;  %v4638_v34 = vld [vmem:[%s7356_s0] sm:$0xff]  ;;  %v3602_v40 = vld [vmem:[%s7357_s1 + $0xc] sm:$0xf0] }
   0xc   :  { %1753 = vmatpush.bf16.msra.mxu0 %v4643_v13  ;;  %2002 = vmatpush.bf16.msra.mxu1 %v4651_v14  ;;  %v4647_v32 = vld [vmem:[%s7356_s0 + $0x48] sm:$0xff]  ;;  %v4646_v35 = vld [vmem:[%s7356_s0 + $0x40] sm:$0xff]  ;;  %v4496_v42 = vld [vmem:[%s7357_s1 + $0x10] sm:$0xf0] }
   0xd   :  { %2251 = vmatpush.bf16.msra.mxu2 %v4659_v15  ;;  %v4655_v33 = vld [vmem:[%s7356_s0 + $0x88] sm:$0xff]  ;;  %v4654_v36 = vld [vmem:[%s7356_s0 + $0x80] sm:$0xff]  ;;  %v266_v43 = vld [vmem:[%s7355_s2 + $0x18] sm:$0xff] }
   0xe   :  { %v3600_v37 = vld [vmem:[%s7357_s1] sm:$0xf]  ;;  %v4495_v38 = vld [vmem:[%s7357_s1 + $0x8] sm:$0xf0]  ;;  %v4494_v39 = vld [vmem:[%s7357_s1 + $0x4] sm:$0xf] }
   0xf   :  { %v3608_v41 = vld [vmem:[%s7357_s1 + $0x8] sm:$0xf]  ;;  %v265_v44 = vld [vmem:[%s7355_s2 + $0x10] sm:$0xff]  ;;  %v263_v45 = vld [vmem:[%s7355_s2] sm:$0xff]  ;;  %v3601_v46 = vor.u32 %v4495_v38, %v3600_v37  ;;  %v3605_v47 = vor.u32 %v4494_v39, %v3602_v40 }
  0x10   :  { %1754 = vmatpush.bf16.msra.mxu0 %v4642_v16  ;;  %2003 = vmatpush.bf16.msra.mxu1 %v4650_v17  ;;  %v3609_v48 = vor.u32 %v4496_v42, %v3608_v41  ;;  %v293_v49 = vld [vmem:[%s7355_s2 + $0xf0] sm:$0xff]  ;;  %v264_v50 = vld [vmem:[%s7355_s2 + $0x8] sm:$0xff]  ;;  %v294_v51 = vld [vmem:[%s7355_s2 + $0xf8] sm:$0xff] }
  0x11   :  { %2252 = vmatpush.bf16.msra.mxu2 %v4658_v18  ;;  %v3612_v52 = vld [vmem:[%s7357_s1 + $0x18] sm:$0xf]  ;;  %v4498_v53 = vld [vmem:[%s7357_s1 + $0x20] sm:$0xf0]  ;;  %v4497_v54 = vld [vmem:[%s7357_s1 + $0x1c] sm:$0xf] }
  0x12   :  { %406 = vperm.xlu1 %4713, %v272_v19   ;;  %v3614_v55 = vld [vmem:[%s7357_s1 + $0x24] sm:$0xf0]  ;;  %v3620_v56 = vld [vmem:[%s7357_s1 + $0x20] sm:$0xf]  ;;  %v4499_v57 = vld [vmem:[%s7357_s1 + $0x28] sm:$0xf0]  ;;  %v3613_v61 = vor.u32 %v4498_v53, %v3612_v52 }
  0x13   :  { %401 = vperm.xlu0 %4712, %v271_v20   ;;  %391 = vperm.xlu2 %4714, %v269_v21   ;;  %v292_v58 = vld [vmem:[%s7355_s2 + $0xe8] sm:$0xff]  ;;  %v291_v59 = vld [vmem:[%s7355_s2 + $0xe0] sm:$0xff]  ;;  %v289_v60 = vld [vmem:[%s7355_s2 + $0xd0] sm:$0xff]  ;;  %v3617_v62 = vor.u32 %v4497_v54, %v3614_v55  ;;  %v3621_v63 = vor.u32 %v4499_v57, %v3620_v56 }
  0x14   :  { %1755 = vmatpush.bf16.msra.mxu0 %v4641_v22  ;;  %2004 = vmatpush.bf16.msra.mxu1 %v4649_v23  ;;  %v287_v1 = vld [vmem:[%s7355_s2 + $0xc0] sm:$0xff]  ;;  %v290_v2 = vld [vmem:[%s7355_s2 + $0xd8] sm:$0xff]  ;;  %v288_v3 = vld [vmem:[%s7355_s2 + $0xc8] sm:$0xff] }
  0x15   :  { %2253 = vmatpush.bf16.msra.mxu2 %v4657_v24  ;;  %v3624_v4 = vld [vmem:[%s7357_s1 + $0x30] sm:$0xf]  ;;  %v4501_v5 = vld [vmem:[%s7357_s1 + $0x38] sm:$0xf0]  ;;  %v4500_v6 = vld [vmem:[%s7357_s1 + $0x34] sm:$0xf] }
  0x16   :  { %v3626_v7 = vld [vmem:[%s7357_s1 + $0x3c] sm:$0xf0]  ;;  %v3632_v8 = vld [vmem:[%s7357_s1 + $0x38] sm:$0xf]  ;;  %v4502_v9 = vld [vmem:[%s7357_s1 + $0x40] sm:$0xf0]  ;;  %v3625_v13 = vor.u32 %v4501_v5, %v3624_v4 }
  0x17   :  { %v286_v10 = vld [vmem:[%s7355_s2 + $0xb8] sm:$0xff]  ;;  %v285_v11 = vld [vmem:[%s7355_s2 + $0xb0] sm:$0xff]  ;;  %v283_v12 = vld [vmem:[%s7355_s2 + $0xa0] sm:$0xff]  ;;  %v3629_v14 = vor.u32 %v4500_v6, %v3626_v7  ;;  %v3633_v15 = vor.u32 %v4502_v9, %v3632_v8 }
  0x18   :  { %1756 = vmatpush.bf16.msra.mxu0 %v4640_v25  ;;  %2005 = vmatpush.bf16.msra.mxu1 %v4648_v26  ;;  %v281_v16 = vld [vmem:[%s7355_s2 + $0x90] sm:$0xff]  ;;  %v284_v17 = vld [vmem:[%s7355_s2 + $0xa8] sm:$0xff]  ;;  %v282_v18 = vld [vmem:[%s7355_s2 + $0x98] sm:$0xff] }
  0x19   :  { %2254 = vmatpush.bf16.msra.mxu2 %v4656_v27  ;;  %v3636_v19 = vld [vmem:[%s7357_s1 + $0x48] sm:$0xf]  ;;  %v4504_v20 = vld [vmem:[%s7357_s1 + $0x50] sm:$0xf0]  ;;  %v4503_v21 = vld [vmem:[%s7357_s1 + $0x4c] sm:$0xf] }
  0x1a   :  { %381 = vperm.xlu1 %4713, %v267_v29   ;;  %v3638_v22 = vld [vmem:[%s7357_s1 + $0x54] sm:$0xf0]  ;;  %v3644_v23 = vld [vmem:[%s7357_s1 + $0x50] sm:$0xf]  ;;  %v4505_v24 = vld [vmem:[%s7357_s1 + $0x58] sm:$0xf0] }
  0x1b   :  { %396 = vperm.xlu0 %4712, %v270_v28   ;;  %386 = vperm.xlu2 %4714, %v268_v30   ;;  %v280_v25 = vld [vmem:[%s7355_s2 + $0x88] sm:$0xff]  ;;  %v279_v26 = vld [vmem:[%s7355_s2 + $0x80] sm:$0xff]  ;;  %v309_v27 = vld [vmem:[%s7355_s2 + $0x170] sm:$0xff]  ;;  %v3637_v28 = vor.u32 %v4504_v20, %v3636_v19  ;;  %v3641_v29 = vor.u32 %v4503_v21, %v3638_v22  ;;  %v3645_v30 = vor.u32 %v4505_v24, %v3644_v23 }
  0x1c   :  { %1757 = vmatpush.bf16.msra.mxu0 %v4639_v31  ;;  %2006 = vmatpush.bf16.msra.mxu1 %v4647_v32  ;;  %v307_v31 = vld [vmem:[%s7355_s2 + $0x160] sm:$0xff]  ;;  %v310_v32 = vld [vmem:[%s7355_s2 + $0x178] sm:$0xff]  ;;  %v3650_v37 = vld [vmem:[%s7357_s1 + $0x6c] sm:$0xf0] }
  0x1d   :  { %2255 = vmatpush.bf16.msra.mxu2 %v4655_v33  ;;  %v308_v33 = vld [vmem:[%s7355_s2 + $0x168] sm:$0xff]  ;;  %v4508_v39 = vld [vmem:[%s7357_s1 + $0x70] sm:$0xf0]  ;;  %v306_v40 = vld [vmem:[%s7355_s2 + $0x158] sm:$0xff] }
  0x1e   :  { %v3656_v38 = vld [vmem:[%s7357_s1 + $0x68] sm:$0xf]  ;;  %v305_v41 = vld [vmem:[%s7355_s2 + $0x150] sm:$0xff]  ;;  %v303_v42 = vld [vmem:[%s7355_s2 + $0x140] sm:$0xff] }
  0x1f   :  { %v3662_v52 = vld [vmem:[%s7357_s1 + $0x84] sm:$0xf0]  ;;  %v3668_v53 = vld [vmem:[%s7357_s1 + $0x80] sm:$0xf]  ;;  %v4511_v54 = vld [vmem:[%s7357_s1 + $0x88] sm:$0xf0] }
  0x20   :  { %1758 = vmatpush.bf16.msra.mxu0 %v4638_v34  ;;  %2007 = vmatpush.bf16.msra.mxu1 %v4646_v35  ;;  %v3648_v34 = vld [vmem:[%s7357_s1 + $0x60] sm:$0xf]  ;;  %v4507_v35 = vld [vmem:[%s7357_s1 + $0x68] sm:$0xf0]  ;;  %v297_v57 = vld [vmem:[%s7355_s2 + $0x110] sm:$0xff] }
  0x21   :  { %2256 = vmatpush.bf16.msra.mxu2 %v4654_v36  ;;  %v4506_v36 = vld [vmem:[%s7357_s1 + $0x64] sm:$0xf]  ;;  %v300_v55 = vld [vmem:[%s7355_s2 + $0x128] sm:$0xff]  ;;  %v4513_v4 = vld [vmem:[%s7357_s1 + $0x98] sm:$0xf0] }
  0x22   :  { %376 = vperm.xlu1 %4713, %v266_v43   ;;  %v3649_v43 = vor.u32 %v4507_v35, %v3648_v34  ;;  %v299_v56 = vld [vmem:[%s7355_s2 + $0x120] sm:$0xff]  ;;  %v4512_v5 = vld [vmem:[%s7357_s1 + $0x94] sm:$0xf]  ;;  %v3680_v7 = vld [vmem:[%s7357_s1 + $0x98] sm:$0xf] }
  0x23   :  { %371 = vperm.xlu0 %4712, %v265_v44   ;;  %361 = vperm.xlu2 %4714, %v263_v45   ;;  %v3653_v44 = vor.u32 %v4506_v36, %v3650_v37  ;;  %v3657_v45 = vor.u32 %v4508_v39, %v3656_v38  ;;  %v3674_v6 = vld [vmem:[%s7357_s1 + $0x9c] sm:$0xf0]  ;;  %v4514_v8 = vld [vmem:[%s7357_s1 + $0xa0] sm:$0xf0]  ;;  %v326_v9 = vld [vmem:[%s7355_s2 + $0x1f8] sm:$0xff] }
  0x24   :  { %1759 = vmatmul.bf16.vlgmr.msra.gmra.mxu0 %v3601_v46  ;;  %2008 = vmatmul.bf16.vlgmr.msra.gmra.mxu1 %v3605_v47  ;;  %v301_v46 = vld [vmem:[%s7355_s2 + $0x130] sm:$0xff]  ;;  %v304_v47 = vld [vmem:[%s7355_s2 + $0x148] sm:$0xff]  ;;  %v322_v19 = vld [vmem:[%s7355_s2 + $0x1d8] sm:$0xff] }
  0x25   :  { %2257 = vmatmul.bf16.vlgmr.msra.gmra.mxu2 %v3609_v48  ;;  %v302_v48 = vld [vmem:[%s7355_s2 + $0x138] sm:$0xff]  ;;  %v3684_v22 = vld [vmem:[%s7357_s1 + $0xa8] sm:$0xf]  ;;  %v4516_v23 = vld [vmem:[%s7357_s1 + $0xb0] sm:$0xf0] }
  0x26   :  { %v4515_v24 = vld [vmem:[%s7357_s1 + $0xac] sm:$0xf]  ;;  %v315_v37 = vld [vmem:[%s7355_s2 + $0x1a0] sm:$0xff]  ;;  %v318_v38 = vld [vmem:[%s7355_s2 + $0x1b8] sm:$0xff] }
  0x27   :  { %v316_v39 = vld [vmem:[%s7355_s2 + $0x1a8] sm:$0xff] }
  0x2a   :  { %511 = vperm.xlu1 %4713, %v293_v49   ;;  %v3660_v49 = vld [vmem:[%s7357_s1 + $0x78] sm:$0xf] }
  0x2b   :  { %366 = vperm.xlu0 %4712, %v264_v50   ;;  %516 = vperm.xlu2 %4714, %v294_v51   ;;  %v4510_v50 = vld [vmem:[%s7357_s1 + $0x80] sm:$0xf0]  ;;  %v4509_v51 = vld [vmem:[%s7357_s1 + $0x7c] sm:$0xf] }
  0x32   :  { %506 = vperm.xlu1 %4713, %v292_v58   ;;  %v3661_v58 = vor.u32 %v4510_v50, %v3660_v49  ;;  %v313_v50 = vld [vmem:[%s7355_s2 + $0x190] sm:$0xff] }
  0x33   :  { %501 = vperm.xlu0 %4712, %v291_v59   ;;  %491 = vperm.xlu2 %4714, %v289_v60   ;;  %v3665_v59 = vor.u32 %v4509_v51, %v3662_v52  ;;  %v3669_v60 = vor.u32 %v4511_v54, %v3668_v53  ;;  %v311_v51 = vld [vmem:[%s7355_s2 + $0x180] sm:$0xff] }
  0x34   :  { %1764 = vmatmul.bf16.gmra.mxu0 %v3613_v61  ;;  %2013 = vmatmul.bf16.gmra.mxu1 %v3617_v62  ;;  %v295_v62 = vld [vmem:[%s7355_s2 + $0x100] sm:$0xff] }
  0x35   :  { %2262 = vmatmul.bf16.gmra.mxu2 %v3621_v63 }
  0x3a   :  { %481 = vperm.xlu1 %4713, %v287_v1   ;;  %v298_v1 = vld [vmem:[%s7355_s2 + $0x118] sm:$0xff] }
  0x3b   :  { %496 = vperm.xlu0 %4712, %v290_v2   ;;  %486 = vperm.xlu2 %4714, %v288_v3   ;;  %v296_v2 = vld [vmem:[%s7355_s2 + $0x108] sm:$0xff]  ;;  %v3672_v3 = vld [vmem:[%s7357_s1 + $0x90] sm:$0xf] }
  0x42   :  { %476 = vperm.xlu1 %4713, %v286_v10  }
  0x43   :  { %471 = vperm.xlu0 %4712, %v285_v11   ;;  %461 = vperm.xlu2 %4714, %v283_v12   ;;  %v325_v11 = vld [vmem:[%s7355_s2 + $0x1f0] sm:$0xff]  ;;  %v323_v12 = vld [vmem:[%s7355_s2 + $0x1e0] sm:$0xff] }
  0x44   :  { %1769 = vmatmul.bf16.gmra.mxu0 %v3625_v13  ;;  %2018 = vmatmul.bf16.gmra.mxu1 %v3629_v14  ;;  %v3673_v13 = vor.u32 %v4513_v4, %v3672_v3  ;;  %v3677_v14 = vor.u32 %v4512_v5, %v3674_v6  ;;  %v342_v3 = vld [vmem:[%s7355_s2 + $0x278] sm:$0xff] }
  0x45   :  { %2267 = vmatmul.bf16.gmra.mxu2 %v3633_v15  ;;  %v3681_v15 = vor.u32 %v4514_v8, %v3680_v7 }
  0x4a   :  { %451 = vperm.xlu1 %4713, %v281_v16  }
  0x4b   :  { %466 = vperm.xlu0 %4712, %v284_v17   ;;  %456 = vperm.xlu2 %4714, %v282_v18   ;;  %v321_v17 = vld [vmem:[%s7355_s2 + $0x1d0] sm:$0xff]  ;;  %v324_v18 = vld [vmem:[%s7355_s2 + $0x1e8] sm:$0xff] }
  0x52   :  { %446 = vperm.xlu1 %4713, %v280_v25   ;;  %v3686_v25 = vld [vmem:[%s7357_s1 + $0xb4] sm:$0xf0] }
  0x53   :  { %441 = vperm.xlu0 %4712, %v279_v26   ;;  %591 = vperm.xlu2 %4714, %v309_v27   ;;  %v3692_v26 = vld [vmem:[%s7357_s1 + $0xb0] sm:$0xf]  ;;  %v4517_v27 = vld [vmem:[%s7357_s1 + $0xb8] sm:$0xf0] }
  0x54   :  { %1774 = vmatmul.bf16.gmra.mxu0 %v3637_v28  ;;  %2023 = vmatmul.bf16.gmra.mxu1 %v3641_v29  ;;  %v320_v28 = vld [vmem:[%s7355_s2 + $0x1c8] sm:$0xff]  ;;  %v3693_v34 = vor.u32 %v4517_v27, %v3692_v26 }
  0x55   :  { %2272 = vmatmul.bf16.gmra.mxu2 %v3645_v30  ;;  %v319_v30 = vld [vmem:[%s7355_s2 + $0x1c0] sm:$0xff] }
  0x5a   :  { %581 = vperm.xlu1 %4713, %v307_v31   ;;  %v317_v31 = vld [vmem:[%s7355_s2 + $0x1b0] sm:$0xff] }
  0x5b   :  { %596 = vperm.xlu0 %4712, %v310_v32   ;;  %586 = vperm.xlu2 %4714, %v308_v33   ;;  %v3685_v32 = vor.u32 %v4516_v23, %v3684_v22  ;;  %v3689_v33 = vor.u32 %v4515_v24, %v3686_v25  ;;  %v339_v22 = vld [vmem:[%s7355_s2 + $0x260] sm:$0xff]  ;;  %v337_v23 = vld [vmem:[%s7355_s2 + $0x250] sm:$0xff] }
  0x5d   :  { %v5104_v63 = vpop.permute.xlu2 %411 }
  0x62   :  { %576 = vperm.xlu1 %4713, %v306_v40  }
  0x63   :  { %571 = vperm.xlu0 %4712, %v305_v41   ;;  %561 = vperm.xlu2 %4714, %v303_v42   ;;  %v3696_v41 = vld [vmem:[%s7357_s1 + $0xc0] sm:$0xf]  ;;  %v4519_v42 = vld [vmem:[%s7357_s1 + $0xc8] sm:$0xf0] }
  0x64   :  { %1779 = vmatmul.bf16.gmra.mxu0 %v3649_v43  ;;  %2028 = vmatmul.bf16.gmra.mxu1 %v3653_v44  ;;  %v4518_v43 = vld [vmem:[%s7357_s1 + $0xc4] sm:$0xf]  ;;  %v3698_v44 = vld [vmem:[%s7357_s1 + $0xcc] sm:$0xf0]  ;;  %v3697_v52 = vor.u32 %v4519_v42, %v3696_v41  ;;  %v338_v42 = vld [vmem:[%s7355_s2 + $0x258] sm:$0xff] }
  0x65   :  { %2277 = vmatmul.bf16.gmra.mxu2 %v3657_v45  ;;  %v5141_v16 = vpop.permute.xlu2 %416  ;;  %v3701_v53 = vor.u32 %v4518_v43, %v3698_v44  ;;  %v336_v43 = vld [vmem:[%s7355_s2 + $0x248] sm:$0xff] }
  0x6a   :  { %551 = vperm.xlu1 %4713, %v301_v46   ;;  %v3704_v46 = vld [vmem:[%s7357_s1 + $0xc8] sm:$0xf] }
  0x6b   :  { %566 = vperm.xlu0 %4712, %v304_v47   ;;  %556 = vperm.xlu2 %4714, %v302_v48   ;;  %v4520_v47 = vld [vmem:[%s7357_s1 + $0xd0] sm:$0xf0]  ;;  %v314_v48 = vld [vmem:[%s7355_s2 + $0x198] sm:$0xff] }
  0x6d   :  { %v5154_v21 = vpop.permute.xlu2 %391 }
  0x72   :  { %546 = vperm.xlu1 %4713, %v300_v55  }
  0x73   :  { %541 = vperm.xlu0 %4712, %v299_v56   ;;  %531 = vperm.xlu2 %4714, %v297_v57   ;;  %v3705_v56 = vor.u32 %v4520_v47, %v3704_v46 }
  0x74   :  { %1784 = vmatmul.bf16.gmra.mxu0 %v3661_v58  ;;  %2033 = vmatmul.bf16.gmra.mxu1 %v3665_v59  ;;  %v5177_v29 = vpop.permute.xlu1 %421 }
  0x75   :  { %2282 = vmatmul.bf16.gmra.mxu2 %v3669_v60  ;;  %v5099_v61 = vpop.permute.xlu0 %431  ;;  %v5187_v36 = vpop.permute.xlu2 %386  ;;  %v341_v60 = vld [vmem:[%s7355_s2 + $0x270] sm:$0xff] }
  0x7a   :  { %521 = vperm.xlu1 %4713, %v295_v62  }
  0x7b   :  { %536 = vperm.xlu0 %4712, %v298_v1   ;;  %526 = vperm.xlu2 %4714, %v296_v2   ;;  %v312_v2 = vld [vmem:[%s7355_s2 + $0x188] sm:$0xff] }
  0x7c   :  { %v5198_v40 = vpop.permute.xlu1 %426 }
  0x7d   :  { %v5133_v10 = vpop.permute.xlu0 %436  ;;  %v362_v49 = vpop.permute.xlu2 %361 }
  0x82   :  { %676 = vperm.xlu1 %4713, %v326_v9   ;;  %v3708_v9 = vld [vmem:[%s7357_s1 + $0xd8] sm:$0xf] }
  0x83   :  { %671 = vperm.xlu0 %4712, %v325_v11   ;;  %661 = vperm.xlu2 %4714, %v323_v12   ;;  %v4522_v11 = vld [vmem:[%s7357_s1 + $0xe0] sm:$0xf0]  ;;  %v4521_v12 = vld [vmem:[%s7357_s1 + $0xdc] sm:$0xf] }
  0x84   :  { %1789 = vmatmul.bf16.gmra.mxu0 %v3673_v13  ;;  %2038 = vmatmul.bf16.gmra.mxu1 %v3677_v14  ;;  %v5227_v58 = vpop.permute.xlu1 %406  ;;  %v3710_v13 = vld [vmem:[%s7357_s1 + $0xe4] sm:$0xf0]  ;;  %v3709_v24 = vor.u32 %v4522_v11, %v3708_v9  ;;  %v329_v11 = vld [vmem:[%s7355_s2 + $0x210] sm:$0xff] }
  0x85   :  { %2287 = vmatmul.bf16.gmra.mxu2 %v3681_v15  ;;  %v5152_v20 = vpop.permute.xlu0 %401  ;;  %v3716_v15 = vld [vmem:[%s7357_s1 + $0xe0] sm:$0xf]  ;;  %v3713_v25 = vor.u32 %v4521_v12, %v3710_v13  ;;  %v332_v13 = vld [vmem:[%s7355_s2 + $0x228] sm:$0xff] }
  0x8a   :  { %651 = vperm.xlu1 %4713, %v321_v17   ;;  %v4523_v17 = vld [vmem:[%s7357_s1 + $0xe8] sm:$0xf0] }
  0x8b   :  { %666 = vperm.xlu0 %4712, %v324_v18   ;;  %656 = vperm.xlu2 %4714, %v322_v19   ;;  %v340_v18 = vld [vmem:[%s7355_s2 + $0x268] sm:$0xff] }
  0x8c   :  { %v382_v14 = vpop.permute.xlu1 %381 }
  0x8d   :  { %v5185_v35 = vpop.permute.xlu0 %396 }
  0x92   :  { %646 = vperm.xlu1 %4713, %v320_v28  }
  0x93   :  { %641 = vperm.xlu0 %4712, %v319_v30   ;;  %631 = vperm.xlu2 %4714, %v317_v31   ;;  %v3717_v30 = vor.u32 %v4523_v17, %v3716_v15 }
  0x94   :  { %1794 = vmatmul.bf16.gmra.mxu0 %v3685_v32  ;;  %2043 = vmatmul.bf16.gmra.mxu1 %v3689_v33 }
  0x95   :  { %2292 = vmatmul.bf16.gmra.mxu2 %v3693_v34  ;;  %v372_v45 = vpop.permute.xlu0 %371 }
  0x9a   :  { %621 = vperm.xlu1 %4713, %v315_v37  }
  0x9b   :  { %636 = vperm.xlu0 %4712, %v318_v38   ;;  %626 = vperm.xlu2 %4714, %v316_v39   ;;  %v335_v38 = vld [vmem:[%s7355_s2 + $0x240] sm:$0xff]  ;;  %v377_v39 = vpop.permute.xlu1 %376 }
  0x9d   :  { %v367_v62 = vpop.permute.xlu0 %366 }
  0xa1   :  { %v1760_v54 = vpop.f32.mrf.mxu0  ;;  %v2009_v55 = vpop.f32.mrf.mxu1 }
  0xa2   :  { %v1761_v57 = vadd.f32 %v1760_v54, %v362_v49  ;;  %616 = vperm.xlu1 %4713, %v314_v48   ;;  %v3720_v49 = vld [vmem:[%s7357_s1 + $0xf0] sm:$0xf]  ;;  %v4526_v54 = vld [vmem:[%s7357_s1 + $0x100] sm:$0xf0] }
  0xa3   :  { %611 = vperm.xlu0 %4712, %v313_v50   ;;  %601 = vperm.xlu2 %4714, %v311_v51   ;;  %v4525_v50 = vld [vmem:[%s7357_s1 + $0xf8] sm:$0xf0]  ;;  %v4524_v51 = vld [vmem:[%s7357_s1 + $0xf4] sm:$0xf] }
  0xa4   :  { %v2010_v59 = vadd.f32 %v2009_v55, %v1761_v57  ;;  %1799 = vmatmul.bf16.gmra.mxu0 %v3697_v52  ;;  %2048 = vmatmul.bf16.gmra.mxu1 %v3701_v53  ;;  %v3722_v52 = vld [vmem:[%s7357_s1 + $0xfc] sm:$0xf0]  ;;  %v3728_v53 = vld [vmem:[%s7357_s1 + $0xf8] sm:$0xf]  ;;  %v333_v57 = vld [vmem:[%s7355_s2 + $0x230] sm:$0xff] }
  0xa5   :  { %2297 = vmatmul.bf16.gmra.mxu2 %v3705_v56  ;;  %v334_v55 = vld [vmem:[%s7355_s2 + $0x238] sm:$0xff] }
  0xa8   :  { %v2258_v1 = vpop.f32.mrf.mxu2 }
  0xa9   :  { %v2259_v4 = vadd.f32 %v2258_v1, %v2010_v59  ;;  %v1762_v5 = vpop.f32.mrf.mxu0  ;;  %v2011_v6 = vpop.f32.mrf.mxu1  ;;  %v331_v59 = vld [vmem:[%s7355_s2 + $0x220] sm:$0xff] }
  0xaa   :  { %v1763_v7 = vadd.f32 %v1762_v5, %v367_v62  ;;  %751 = vperm.xlu1 %4713, %v341_v60   ;;  %v3721_v60 = vor.u32 %v4525_v50, %v3720_v49  ;;  %v3725_v62 = vor.u32 %v4524_v51, %v3722_v52  ;;  %v358_v50 = vld [vmem:[%s7355_s2 + $0x2f8] sm:$0xff] }
  0xab   :  { %606 = vperm.xlu0 %4712, %v312_v2   ;;  %756 = vperm.xlu2 %4714, %v342_v3   ;;  %v2498_v32 = vmax.f32 %v2259_v4, 0.0  ;;  %v3729_v4 = vor.u32 %v4526_v54, %v3728_v53 }
  0xac   :  { %v2012_v8 = vadd.f32 %v2011_v6, %v1763_v7 }
  0xb0   :  { %v2260_v19 = vpop.f32.mrf.mxu2 }
  0xb1   :  { %v2261_v26 = vadd.f32 %v2260_v19, %v2012_v8  ;;  %v1765_v27 = vpop.f32.mrf.mxu0  ;;  %v2014_v28 = vpop.f32.mrf.mxu1 }
  0xb2   :  { %v1766_v31 = vadd.f32 %v1765_v27, %v372_v45  ;;  %746 = vperm.xlu1 %4713, %v340_v18   ;;  %v4529_v27 = vld [vmem:[%s7357_s1 + $0x118] sm:$0xf0] }
  0xb3   :  { %v2499_v33 = vmax.f32 %v2261_v26, 0.0  ;;  %741 = vperm.xlu0 %4712, %v339_v22   ;;  %731 = vperm.xlu2 %4714, %v337_v23   ;;  %v3732_v23 = vld [vmem:[%s7357_s1 + $0x108] sm:$0xf]  ;;  %v3740_v26 = vld [vmem:[%s7357_s1 + $0x110] sm:$0xf] }
  0xb4   :  { %v2015_v34 = vadd.f32 %v2014_v28, %v1766_v31  ;;  %1804 = vmatmul.bf16.gmra.mxu0 %v3709_v24  ;;  %2053 = vmatmul.bf16.gmra.mxu1 %v3713_v25  ;;  %v4528_v24 = vld [vmem:[%s7357_s1 + $0x110] sm:$0xf0]  ;;  %v4527_v25 = vld [vmem:[%s7357_s1 + $0x10c] sm:$0xf]  ;;  %v327_v31 = vld [vmem:[%s7355_s2 + $0x200] sm:$0xff] }
  0xb5   :  { %2302 = vmatmul.bf16.gmra.mxu2 %v3717_v30  ;;  %v5265_v37 = vpack.c.bf16 %v2499_v33, %v2498_v32  ;;  %v328_v28 = vld [vmem:[%s7355_s2 + $0x208] sm:$0xff]  ;;  %v343_v32 = vld [vmem:[%s7355_s2 + $0x280] sm:$0xff]  ;;  %v3733_v33 = vor.u32 %v4528_v24, %v3732_v23 }
  0xb6   :  { %v352_v23 = vld [vmem:[%s7355_s2 + $0x2c8] sm:$0xff] }
  0xb8   :  { %v2263_v41 = vpop.f32.mrf.mxu2 }
  0xb9   :  { %v2264_v44 = vadd.f32 %v2263_v41, %v2015_v34  ;;  %v1767_v45 = vpop.f32.mrf.mxu0  ;;  %v2016_v46 = vpop.f32.mrf.mxu1 }
  0xba   :  { %v1768_v47 = vadd.f32 %v1767_v45, %v377_v39  ;;  %721 = vperm.xlu1 %4713, %v335_v38  }
  0xbb   :  { %736 = vperm.xlu0 %4712, %v338_v42   ;;  %726 = vperm.xlu2 %4714, %v336_v43   ;;  %v2500_v6 = vmax.f32 %v2264_v44, 0.0  ;;  %v3741_v42 = vor.u32 %v4529_v27, %v3740_v26  ;;  %v3756_v26 = vld [vmem:[%s7357_s1 + $0x138] sm:$0xf]  ;;  %v4534_v27 = vld [vmem:[%s7357_s1 + $0x140] sm:$0xf0] }
  0xbc   :  { %v2017_v48 = vadd.f32 %v2016_v46, %v1768_v47 }
  0xc0   :  { %v2265_v56 = vpop.f32.mrf.mxu2 }
  0xc1   :  { %v2266_v1 = vadd.f32 %v2265_v56, %v2017_v48  ;;  %v1770_v2 = vpop.f32.mrf.mxu0  ;;  %v2019_v3 = vpop.f32.mrf.mxu1  ;;  %v357_v48 = vld [vmem:[%s7355_s2 + $0x2f0] sm:$0xff]  ;;  %v3744_v56 = vld [vmem:[%s7357_s1 + $0x120] sm:$0xf] }
  0xc2   :  { %v1771_v5 = vadd.f32 %v1770_v2, %v382_v14  ;;  %716 = vperm.xlu1 %4713, %v334_v55   ;;  %v330_v14 = vld [vmem:[%s7355_s2 + $0x218] sm:$0xff] }
  0xc3   :  { %v2501_v7 = vmax.f32 %v2266_v1, 0.0  ;;  %711 = vperm.xlu0 %4712, %v333_v57   ;;  %701 = vperm.xlu2 %4714, %v331_v59   ;;  %v4531_v57 = vld [vmem:[%s7357_s1 + $0x128] sm:$0xf0]  ;;  %v4530_v59 = vld [vmem:[%s7357_s1 + $0x124] sm:$0xf] }
  0xc4   :  { %v2020_v8 = vadd.f32 %v2019_v3, %v1771_v5  ;;  %1809 = vmatmul.bf16.gmra.mxu0 %v3721_v60  ;;  %2058 = vmatmul.bf16.gmra.mxu1 %v3725_v62  ;;  %v3752_v60 = vld [vmem:[%s7357_s1 + $0x128] sm:$0xf]  ;;  %v4532_v62 = vld [vmem:[%s7357_s1 + $0x130] sm:$0xf0]  ;;  %v355_v3 = vld [vmem:[%s7355_s2 + $0x2e0] sm:$0xff]  ;;  %v3745_v5 = vor.u32 %v4531_v57, %v3744_v56 }
  0xc5   :  { %2307 = vmatmul.bf16.gmra.mxu2 %v3729_v4  ;;  %v5303_v9 = vpack.c.bf16 %v2501_v7, %v2500_v6  ;;  %v356_v1 = vld [vmem:[%s7355_s2 + $0x2e8] sm:$0xff]  ;;  %v353_v4 = vld [vmem:[%s7355_s2 + $0x2d0] sm:$0xff]  ;;  %v3770_v57 = vld [vmem:[%s7357_s1 + $0x15c] sm:$0xf0] }
  0xc6   :  { %v4536_v56 = vld [vmem:[%s7357_s1 + $0x154] sm:$0xf] }
  0xc8   :  { %v2268_v12 = vpop.f32.mrf.mxu2 }
  0xc9   :  { %v2269_v15 = vadd.f32 %v2268_v12, %v2020_v8  ;;  %v1772_v17 = vpop.f32.mrf.mxu0  ;;  %v2021_v18 = vpop.f32.mrf.mxu1  ;;  %v3753_v12 = vor.u32 %v4532_v62, %v3752_v60  ;;  %v2691_v60 = vld [vmem:[%s7358_s4 + $0x8] sm:$0xff] }
  0xca   :  { %v1773_v19 = vadd.f32 %v1772_v17, %v5187_v36  ;;  %691 = vperm.xlu1 %4713, %v329_v11   ;;  %v3734_v36 = vld [vmem:[%s7357_s1 + $0x114] sm:$0xf0] }
  0xcb   :  { %706 = vperm.xlu0 %4712, %v332_v13   ;;  %696 = vperm.xlu2 %4714, %v330_v14   ;;  %v3737_v34 = vor.u32 %v4527_v25, %v3734_v36  ;;  %v2502_v44 = vmax.f32 %v2269_v15, 0.0 }
  0xcc   :  { %v2022_v22 = vadd.f32 %v2021_v18, %v1773_v19  ;;  %v351_v19 = vld [vmem:[%s7355_s2 + $0x2c0] sm:$0xff] }
  0xd0   :  { %v2270_v30 = vpop.f32.mrf.mxu2 }
  0xd1   :  { %v2271_v38 = vadd.f32 %v2270_v30, %v2022_v22  ;;  %v1775_v39 = vpop.f32.mrf.mxu0  ;;  %v2024_v41 = vpop.f32.mrf.mxu1  ;;  %v3758_v30 = vld [vmem:[%s7357_s1 + $0x144] sm:$0xf0] }
  0xd2   :  { %v1776_v43 = vadd.f32 %v1775_v39, %v5154_v21  ;;  %686 = vperm.xlu1 %4713, %v328_v28   ;;  %v344_v21 = vld [vmem:[%s7355_s2 + $0x288] sm:$0xff]  ;;  %v4533_v28 = vld [vmem:[%s7357_s1 + $0x13c] sm:$0xf]  ;;  %v347_v39 = vld [vmem:[%s7355_s2 + $0x2a0] sm:$0xff] }
  0xd3   :  { %v2503_v45 = vmax.f32 %v2271_v38, 0.0  ;;  %681 = vperm.xlu0 %4712, %v327_v31   ;;  %761 = vperm.xlu2 %4714, %v343_v32   ;;  %v3764_v31 = vld [vmem:[%s7357_s1 + $0x140] sm:$0xf]  ;;  %v4535_v32 = vld [vmem:[%s7357_s1 + $0x148] sm:$0xf0]  ;;  %v349_v38 = vld [vmem:[%s7355_s2 + $0x2b0] sm:$0xff] }
  0xd4   :  { %v2025_v46 = vadd.f32 %v2024_v41, %v1776_v43  ;;  %1814 = vmatmul.bf16.gmra.mxu0 %v3733_v33  ;;  %2063 = vmatmul.bf16.gmra.mxu1 %v3737_v34  ;;  %v350_v33 = vld [vmem:[%s7355_s2 + $0x2b8] sm:$0xff]  ;;  %v3757_v41 = vor.u32 %v4534_v27, %v3756_v26  ;;  %v4540_v26 = vld [vmem:[%s7357_s1 + $0x170] sm:$0xf0]  ;;  %v4539_v27 = vld [vmem:[%s7357_s1 + $0x16c] sm:$0xf] }
  0xd5   :  { %2312 = vmatmul.bf16.gmra.mxu2 %v3741_v42  ;;  %v5343_v47 = vpack.c.bf16 %v2503_v45, %v2502_v44  ;;  %v3761_v42 = vor.u32 %v4533_v28, %v3758_v30  ;;  %v3765_v45 = vor.u32 %v4535_v32, %v3764_v31  ;;  %v3782_v28 = vld [vmem:[%s7357_s1 + $0x174] sm:$0xf0]  ;;  %v3788_v30 = vld [vmem:[%s7357_s1 + $0x170] sm:$0xf]  ;;  %v4541_v31 = vld [vmem:[%s7357_s1 + $0x178] sm:$0xf0] }
  0xd6   :  { %v2697_v32 = vld [vmem:[%s7358_s4 + $0x38] sm:$0xff] }
  0xd8   :  { %v2273_v49 = vpop.f32.mrf.mxu2 }
  0xd9   :  { %v2274_v51 = vadd.f32 %v2273_v49, %v2025_v46  ;;  %v1777_v52 = vpop.f32.mrf.mxu0  ;;  %v2026_v53 = vpop.f32.mrf.mxu1 }
  0xda   :  { %v1778_v54 = vadd.f32 %v1777_v52, %v5185_v35  ;;  %831 = vperm.xlu1 %4713, %v357_v48   ;;  %v3746_v35 = vld [vmem:[%s7357_s1 + $0x12c] sm:$0xf0]  ;;  %v5433_v46 = vpop.permute.xlu1 %511  ;;  %v5438_v49 = vpop.permute.xlu0 %501 }
  0xdb   :  { %766 = vperm.xlu0 %4712, %v344_v21   ;;  %836 = vperm.xlu2 %4714, %v358_v50   ;;  %v3749_v6 = vor.u32 %v4530_v59, %v3746_v35  ;;  %v2504_v14 = vmax.f32 %v2274_v51, 0.0  ;;  %v345_v48 = vld [vmem:[%s7355_s2 + $0x290] sm:$0xff]  ;;  %v348_v50 = vld [vmem:[%s7355_s2 + $0x2a8] sm:$0xff]  ;;  %v346_v51 = vld [vmem:[%s7355_s2 + $0x298] sm:$0xff] }
  0xdc   :  { %v2027_v55 = vadd.f32 %v2026_v53, %v1778_v54  ;;  %v3768_v54 = vld [vmem:[%s7357_s1 + $0x150] sm:$0xf]  ;;  %v3776_v59 = vld [vmem:[%s7357_s1 + $0x158] sm:$0xf]  ;;  %v4538_v35 = vld [vmem:[%s7357_s1 + $0x160] sm:$0xf0] }
  0xe0   :  { %v2275_v2 = vpop.f32.mrf.mxu2 }
  0xe1   :  { %v2276_v7 = vadd.f32 %v2275_v2, %v2027_v55  ;;  %v1780_v8 = vpop.f32.mrf.mxu0  ;;  %v2029_v11 = vpop.f32.mrf.mxu1  ;;  %v4537_v55 = vld [vmem:[%s7357_s1 + $0x158] sm:$0xf0]  ;;  %v2690_v2 = vld [vmem:[%s7358_s4] sm:$0xff] }
  0xe2   :  { %v1781_v13 = vadd.f32 %v1780_v8, %v5152_v20  ;;  %826 = vperm.xlu1 %4713, %v356_v1   ;;  %v354_v20 = vld [vmem:[%s7355_s2 + $0x2d8] sm:$0xff]  ;;  %v5473_v62 = vpop.permute.xlu1 %506  ;;  %v3777_v8 = vor.u32 %v4538_v35, %v3776_v59  ;;  %v2699_v59 = vld [vmem:[%s7358_s4 + $0x48] sm:$0xff] }
  0xe3   :  { %v2505_v15 = vmax.f32 %v2276_v7, 0.0  ;;  %821 = vperm.xlu0 %4712, %v355_v3   ;;  %811 = vperm.xlu2 %4714, %v353_v4   ;;  %v2692_v3 = vld [vmem:[%s7358_s4 + $0x10] sm:$0xff]  ;;  %v3769_v4 = vor.u32 %v4537_v55, %v3768_v54  ;;  %v2701_v35 = vld [vmem:[%s7358_s4 + $0x58] sm:$0xff] }
  0xe4   :  { %v2030_v17 = vadd.f32 %v2029_v11, %v1781_v13  ;;  %1819 = vmatmul.bf16.gmra.mxu0 %v3745_v5  ;;  %2068 = vmatmul.bf16.gmra.mxu1 %v3749_v6  ;;  %v3773_v5 = vor.u32 %v4536_v56, %v3770_v57  ;;  %v5485_v11 = vpop.permute.xlu0 %496  ;;  %v2700_v56 = vld [vmem:[%s7358_s4 + $0x50] sm:$0xff] }
  0xe5   :  { %2317 = vmatmul.bf16.gmra.mxu2 %v3753_v12  ;;  %v5383_v18 = vpack.c.bf16 %v2505_v15, %v2504_v14  ;;  %v2694_v12 = vld [vmem:[%s7358_s4 + $0x20] sm:$0xff]  ;;  %v2693_v14 = vld [vmem:[%s7358_s4 + $0x18] sm:$0xff]  ;;  %v2695_v15 = vld [vmem:[%s7358_s4 + $0x28] sm:$0xff] }
  0xe8   :  { %v2278_v22 = vpop.f32.mrf.mxu2 }
  0xe9   :  { %v5394_v24 = vadd.f32 %v2278_v22, %v2030_v17  ;;  %v5396_v25 = vpop.f32.mrf.mxu0  ;;  %v5398_v36 = vpop.f32.mrf.mxu1 }
  0xea   :  { %801 = vperm.xlu1 %4713, %v351_v19   ;;  %v5498_v22 = vpop.permute.xlu1 %481 }
  0xeb   :  { %816 = vperm.xlu0 %4712, %v354_v20   ;;  %806 = vperm.xlu2 %4714, %v352_v23   ;;  %v3780_v23 = vld [vmem:[%s7357_s1 + $0x168] sm:$0xf] }
  0xec   :  { %v5500_v20 = vpop.permute.xlu0 %471 }
  0xf0   :  { %v5421_v34 = vpop.f32.mrf.mxu2 }
  0xf1   :  { %v5429_v43 = vpop.f32.mrf.mxu0  ;;  %v5431_v44 = vpop.f32.mrf.mxu1 }
  0xf2   :  { %796 = vperm.xlu1 %4713, %v350_v33   ;;  %v5523_v33 = vpop.permute.xlu2 %516  ;;  %v5531_v54 = vpop.permute.xlu1 %476 }
  0xf3   :  { %791 = vperm.xlu0 %4712, %v349_v38   ;;  %781 = vperm.xlu2 %4714, %v347_v39   ;;  %v2696_v39 = vld [vmem:[%s7358_s4 + $0x30] sm:$0xff] }
  0xf4   :  { %1824 = vmatmul.bf16.gmra.mxu0 %v3757_v41  ;;  %2073 = vmatmul.bf16.gmra.mxu1 %v3761_v42  ;;  %v2698_v41 = vld [vmem:[%s7358_s4 + $0x40] sm:$0xff]  ;;  %v3781_v42 = vor.u32 %v4540_v26, %v3780_v23  ;;  %v5533_v55 = vpop.permute.xlu0 %466  ;;  %v4544_v26 = vld [vmem:[%s7357_s1 + $0x190] sm:$0xf0] }
  0xf5   :  { %2322 = vmatmul.bf16.gmra.mxu2 %v3765_v45  ;;  %v3785_v45 = vor.u32 %v4539_v27, %v3782_v28  ;;  %v4542_v23 = vld [vmem:[%s7357_s1 + $0x184] sm:$0xf] }
  0xf8   :  { %v5440_v21 = vpop.f32.mrf.mxu2 }
  0xf9   :  { %v5448_v52 = vpop.f32.mrf.mxu0  ;;  %v5450_v53 = vpop.f32.mrf.mxu1 }
  0xfa   :  { %771 = vperm.xlu1 %4713, %v345_v48  }
  0xfb   :  { %786 = vperm.xlu0 %4712, %v348_v50   ;;  %776 = vperm.xlu2 %4714, %v346_v51   ;;  %v3789_v51 = vor.u32 %v4541_v31, %v3788_v30 }
 0x100   :  { %v5475_v1 = vpop.f32.mrf.mxu2 }
 0x101   :  { %v1790_v6 = vpop.f32.mrf.mxu0  ;;  %v5483_v7 = vpop.f32.mrf.mxu1 }
 0x102   :  { %2713 = vperm.xlu1 %4713, %v2691_v60  }
 0x103   :  { %2708 = vperm.xlu0 %4712, %v2690_v2   ;;  %2718 = vperm.xlu2 %4714, %v2692_v3  }
 0x104   :  { %1829 = vmatmul.bf16.gmra.mxu0 %v3769_v4  ;;  %2078 = vmatmul.bf16.gmra.mxu1 %v3773_v5  ;;  %v5545_v4 = vpop.permute.xlu2 %491  ;;  %v1791_v5 = vadd.f32 %v1790_v6, %v5177_v29  ;;  %v3794_v29 = vld [vmem:[%s7357_s1 + $0x18c] sm:$0xf0]  ;;  %v1788_v6 = vadd.f32 %v5448_v52, %v5141_v16  ;;  %v2702_v16 = vld [vmem:[%s7358_s4 + $0x60] sm:$0xff] }
 0x105   :  { %2327 = vmatmul.bf16.gmra.mxu2 %v3777_v8  ;;  %v2704_v52 = vld [vmem:[%s7358_s4 + $0x70] sm:$0xff] }
 0x106   :  { %v2040_v27 = vadd.f32 %v5483_v7, %v1791_v5 }
 0x108   :  { %v5490_v13 = vpop.f32.mrf.mxu2 }
 0x109   :  { %v1792_v17 = vpop.f32.mrf.mxu0  ;;  %v2041_v19 = vpop.f32.mrf.mxu1 }
 0x10a   :  { %2728 = vperm.xlu1 %4713, %v2694_v12   ;;  %v1793_v8 = vadd.f32 %v1792_v17, %v5198_v40  ;;  %v1786_v40 = vadd.f32 %v5429_v43, %v5104_v63  ;;  %v3800_v17 = vld [vmem:[%s7357_s1 + $0x188] sm:$0xf]  ;;  %v442_v43 = vpop.permute.xlu0 %441 }
 0x10b   :  { %2723 = vperm.xlu0 %4712, %v2693_v14   ;;  %2733 = vperm.xlu2 %4714, %v2695_v15   ;;  %v3792_v14 = vld [vmem:[%s7357_s1 + $0x180] sm:$0xf]  ;;  %v2703_v63 = vld [vmem:[%s7358_s4 + $0x68] sm:$0xff] }
 0x10c   :  { %v2042_v28 = vadd.f32 %v2041_v19, %v1793_v8 }
 0x110   :  { %v2290_v38 = vpop.f32.mrf.mxu2 }
 0x111   :  { %v1795_v48 = vpop.f32.mrf.mxu0  ;;  %v2044_v50 = vpop.f32.mrf.mxu1  ;;  %v2291_v7 = vadd.f32 %v2290_v38, %v2042_v28  ;;  %v3806_v28 = vld [vmem:[%s7357_s1 + $0x1a4] sm:$0xf0] }
 0x112   :  { %2743 = vperm.xlu1 %4713, %v2697_v32   ;;  %v1796_v60 = vadd.f32 %v1795_v48, %v5099_v61  ;;  %v4543_v61 = vld [vmem:[%s7357_s1 + $0x188] sm:$0xf0]  ;;  %v3801_v48 = vor.u32 %v4544_v26, %v3800_v17  ;;  %v5589_v38 = vpop.permute.xlu2 %486  ;;  %v4546_v26 = vld [vmem:[%s7357_s1 + $0x1a0] sm:$0xf0] }
 0x113   :  { %2738 = vperm.xlu0 %4712, %v2696_v39   ;;  %2748 = vperm.xlu2 %4714, %v2698_v41   ;;  %v3793_v39 = vor.u32 %v4543_v61, %v3792_v14  ;;  %v3797_v41 = vor.u32 %v4542_v23, %v3794_v29  ;;  %v2705_v14 = vld [vmem:[%s7358_s4 + $0x78] sm:$0xff] }
 0x114   :  { %1834 = vmatmul.bf16.gmra.mxu0 %v3781_v42  ;;  %2083 = vmatmul.bf16.gmra.mxu1 %v3785_v45  ;;  %v2045_v15 = vadd.f32 %v2044_v50, %v1796_v60  ;;  %v1783_v50 = vadd.f32 %v5396_v25, %v5227_v58  ;;  %v2511_v58 = vmax.f32 %v2291_v7, 0.0 }
 0x115   :  { %2332 = vmatmul.bf16.gmra.mxu2 %v3789_v51  ;;  %v2035_v51 = vadd.f32 %v5431_v44, %v1786_v40 }
 0x116   :  { %v2032_v44 = vadd.f32 %v5398_v36, %v1783_v50 }
 0x118   :  { %v2293_v57 = vpop.f32.mrf.mxu2  ;;  %v2281_v8 = vadd.f32 %v5421_v34, %v2032_v44  ;;  %v3804_v34 = vld [vmem:[%s7357_s1 + $0x198] sm:$0xf]  ;;  %v4550_v44 = vld [vmem:[%s7357_s1 + $0x1c0] sm:$0xf0] }
 0x119   :  { %v1797_v2 = vpop.f32.mrf.mxu0  ;;  %v2046_v3 = vpop.f32.mrf.mxu1  ;;  %v2294_v30 = vadd.f32 %v2293_v57, %v2045_v15  ;;  %v2037_v57 = vadd.f32 %v5450_v53, %v1788_v6  ;;  %v2284_v53 = vadd.f32 %v5440_v21, %v2035_v51 }
 0x11a   :  { %2758 = vperm.xlu1 %4713, %v2700_v56   ;;  %v1798_v12 = vadd.f32 %v1797_v2, %v5133_v10  ;;  %v5562_v10 = vpop.permute.xlu1 %451  ;;  %v2507_v36 = vmax.f32 %v2281_v8, 0.0 }
 0x11b   :  { %2753 = vperm.xlu0 %4712, %v2699_v59   ;;  %2763 = vperm.xlu2 %4714, %v2701_v35   ;;  %v2289_v59 = vadd.f32 %v5490_v13, %v2040_v27  ;;  %v2512_v35 = vmax.f32 %v2294_v30, 0.0  ;;  %v2508_v6 = vmax.f32 %v2284_v53, 0.0  ;;  %v4545_v27 = vld [vmem:[%s7357_s1 + $0x19c] sm:$0xf]  ;;  %v462_v30 = vpop.permute.xlu2 %461  ;;  %v4272_v53 = vld [vmem:[%s7359_s3] sm:$0xf] }
 0x11c   :  { %v2047_v31 = vadd.f32 %v2046_v3, %v1798_v12  ;;  %v2286_v3 = vadd.f32 %v5475_v1, %v2037_v57 }
 0x11d   :  { %v2510_v5 = vmax.f32 %v2289_v59, 0.0 }
 0x11e   :  { %v2509_v15 = vmax.f32 %v2286_v3, 0.0  ;;  %v3816_v3 = vld [vmem:[%s7357_s1 + $0x1b0] sm:$0xf] }
 0x11f   :  { %v2600_v29 = vpack.c.bf16 %v2511_v58, %v2510_v5  ;;  %v4549_v58 = vld [vmem:[%s7357_s1 + $0x1b8] sm:$0xf0]  ;;  %v4665_v5 = vld [vmem:[%s7359_s3 + $0x14] sm:$0xf0] }
 0x120   :  { %v2295_v32 = vpop.f32.mrf.mxu2  ;;  %v2599_v17 = vpack.c.bf16 %v2509_v15, %v2508_v6  ;;  %v3817_v8 = vor.u32 %v4549_v58, %v3816_v3 }
 0x121   :  { %v2296_v19 = vadd.f32 %v2295_v32, %v2047_v31  ;;  %v1800_v42 = vpop.f32.mrf.mxu0  ;;  %v2049_v45 = vpop.f32.mrf.mxu1  ;;  %v3812_v31 = vld [vmem:[%s7357_s1 + $0x1a0] sm:$0xf] }
 0x122   :  { %v1801_v56 = vadd.f32 %v1800_v42, %v442_v43  ;;  %2773 = vperm.xlu1 %4713, %v2703_v63   ;;  %v447_v13 = vpop.permute.xlu1 %446  ;;  %v4547_v63 = vld [vmem:[%s7357_s1 + $0x1a8] sm:$0xf0]  ;;  %v2506_v43 = vmax.f32 %v5394_v24, 0.0 }
 0x123   :  { %2768 = vperm.xlu0 %4712, %v2702_v16   ;;  %2778 = vperm.xlu2 %4714, %v2704_v52   ;;  %v2513_v60 = vmax.f32 %v2296_v19, 0.0  ;;  %v3805_v16 = vor.u32 %v4546_v26, %v3804_v34  ;;  %v3809_v52 = vor.u32 %v4545_v27, %v3806_v28  ;;  %v3813_v42 = vor.u32 %v4547_v63, %v3812_v31  ;;  %v457_v24 = vpop.permute.xlu2 %456  ;;  %v4551_v31 = vld [vmem:[%s7357_s1 + $0x1cc] sm:$0xf]  ;;  %v3830_v63 = vld [vmem:[%s7357_s1 + $0x1d4] sm:$0xf0] }
 0x124   :  { %v2050_v2 = vadd.f32 %v2049_v45, %v1801_v56  ;;  %1839 = vmatmul.bf16.gmra.mxu0 %v3793_v39  ;;  %2088 = vmatmul.bf16.gmra.mxu1 %v3797_v41  ;;  %v2598_v19 = vpack.c.bf16 %v2507_v36, %v2506_v43  ;;  %v4553_v43 = vld [vmem:[%s7357_s1 + $0x1d8] sm:$0xf0] }
 0x125   :  { %2337 = vmatmul.bf16.gmra.mxu2 %v3801_v48  ;;  %v2601_v25 = vpack.c.bf16 %v2513_v60, %v2512_v35 }
 0x127   :  { %3026 = vmatpush.bf16.msra.mxu3 %v2601_v25  ;;  %v3818_v25 = vld [vmem:[%s7357_s1 + $0x1bc] sm:$0xf0] }
 0x128   :  { %v2298_v12 = vpop.f32.mrf.mxu2 }
 0x129   :  { %v2299_v61 = vadd.f32 %v2298_v12, %v2050_v2  ;;  %v1802_v1 = vpop.f32.mrf.mxu0  ;;  %v2051_v23 = vpop.f32.mrf.mxu1 }
 0x12a   :  { %v1803_v40 = vadd.f32 %v1802_v1, %v447_v13 }
 0x12b   :  { %3027 = vmatpush.bf16.msra.mxu3 %v2600_v29  ;;  %2783 = vperm.xlu0 %4712, %v2705_v14   ;;  %v2514_v48 = vmax.f32 %v2299_v61, 0.0  ;;  %v4273_v29 = vor.u32 %v4665_v5, %v4272_v53  ;;  %v4320_v53 = vld [vmem:[%s7359_s3 + $0x60] sm:$0xf]  ;;  %v4677_v5 = vld [vmem:[%s7359_s3 + $0x74] sm:$0xf0] }
 0x12c   :  { %v2052_v21 = vadd.f32 %v2051_v23, %v1803_v40 }
 0x12f   :  { %3028 = vmatpush.bf16.msra.mxu3 %v2599_v17 }
 0x130   :  { %v2300_v32 = vpop.f32.mrf.mxu2 }
 0x131   :  { %v2301_v39 = vadd.f32 %v2300_v32, %v2052_v21  ;;  %v1805_v41 = vpop.f32.mrf.mxu0  ;;  %v2054_v7 = vpop.f32.mrf.mxu1  ;;  %v4296_v32 = vld [vmem:[%s7359_s3 + $0x30] sm:$0xf] }
 0x132   :  { %v1806_v45 = vadd.f32 %v1805_v41, %v5562_v10  ;;  %v3833_v41 = vor.u32 %v4551_v31, %v3830_v63  ;;  %v3860_v31 = vld [vmem:[%s7357_s1 + $0x200] sm:$0xf]  ;;  %v4559_v63 = vld [vmem:[%s7357_s1 + $0x208] sm:$0xf0] }
 0x133   :  { %v2515_v50 = vmax.f32 %v2301_v39, 0.0  ;;  %3029 = vmatpush.bf16.msra.mxu3 %v2598_v19 }
 0x134   :  { %v2055_v51 = vadd.f32 %v2054_v7, %v1806_v45  ;;  %1844 = vmatmul.bf16.gmra.mxu0 %v3805_v16  ;;  %2093 = vmatmul.bf16.gmra.mxu1 %v3809_v52  ;;  %v4671_v16 = vld [vmem:[%s7359_s3 + $0x44] sm:$0xf0] }
 0x135   :  { %2342 = vmatmul.bf16.gmra.mxu2 %v3813_v42  ;;  %v5618_v56 = vpack.c.bf16 %v2515_v50, %v2514_v48  ;;  %v4297_v50 = vor.u32 %v4671_v16, %v4296_v32 }
 0x137   :  { %3030 = vmatpush.bf16.msra.mxu3 %v5383_v18  ;;  %v4548_v18 = vld [vmem:[%s7357_s1 + $0x1b4] sm:$0xf] }
 0x138   :  { %v2303_v57 = vpop.f32.mrf.mxu2  ;;  %v3821_v12 = vor.u32 %v4548_v18, %v3818_v25  ;;  %v4555_v18 = vld [vmem:[%s7357_s1 + $0x1e8] sm:$0xf0]  ;;  %v4554_v25 = vld [vmem:[%s7357_s1 + $0x1e4] sm:$0xf] }
 0x139   :  { %v2304_v59 = vadd.f32 %v2303_v57, %v2055_v51  ;;  %v1807_v35 = vpop.f32.mrf.mxu0  ;;  %v2056_v60 = vpop.f32.mrf.mxu1 }
 0x13a   :  { %v1808_v2 = vadd.f32 %v1807_v35, %v457_v24 }
 0x13b   :  { %3031 = vmatpush.bf16.msra.mxu3 %v5343_v47  ;;  %v3824_v47 = vld [vmem:[%s7357_s1 + $0x1b8] sm:$0xf]  ;;  %v2516_v40 = vmax.f32 %v2304_v59, 0.0 }
 0x13c   :  { %v2057_v10 = vadd.f32 %v2056_v60, %v1808_v2  ;;  %v3825_v1 = vor.u32 %v4550_v44, %v3824_v47  ;;  %v3842_v47 = vld [vmem:[%s7357_s1 + $0x1ec] sm:$0xf0]  ;;  %v4556_v44 = vld [vmem:[%s7357_s1 + $0x1f0] sm:$0xf0] }
 0x13f   :  { %3032 = vmatpush.bf16.msra.mxu3 %v5303_v9 }
 0x140   :  { %v2305_v13 = vpop.f32.mrf.mxu2 }
 0x141   :  { %v2306_v14 = vadd.f32 %v2305_v13, %v2057_v10  ;;  %v1810_v15 = vpop.f32.mrf.mxu0  ;;  %v2059_v61 = vpop.f32.mrf.mxu1 }
 0x142   :  { %v1811_v23 = vadd.f32 %v1810_v15, %v462_v30  ;;  %v3828_v30 = vld [vmem:[%s7357_s1 + $0x1c8] sm:$0xf] }
 0x143   :  { %v2517_v6 = vmax.f32 %v2306_v14, 0.0  ;;  %3033 = vmatpush.bf16.msra.mxu3 %v5265_v37  ;;  %v4552_v37 = vld [vmem:[%s7357_s1 + $0x1d0] sm:$0xf0] }
 0x144   :  { %v2060_v9 = vadd.f32 %v2059_v61, %v1811_v23  ;;  %1849 = vmatmul.bf16.gmra.mxu0 %v3817_v8  ;;  %2098 = vmatmul.bf16.gmra.mxu1 %v3821_v12  ;;  %v3829_v39 = vor.u32 %v4552_v37, %v3828_v30  ;;  %v3845_v12 = vor.u32 %v4554_v25, %v3842_v47  ;;  %v4557_v30 = vld [vmem:[%s7357_s1 + $0x1fc] sm:$0xf]  ;;  %v3854_v37 = vld [vmem:[%s7357_s1 + $0x204] sm:$0xf0] }
 0x145   :  { %2347 = vmatmul.bf16.gmra.mxu2 %v3825_v1  ;;  %v5648_v36 = vpack.c.bf16 %v2517_v6, %v2516_v40 }
 0x146   :  { %3034 = vmatmul.bf16.vlgmr.msra.gmra.mxu3 %v4273_v29  ;;  %v4321_v29 = vor.u32 %v4677_v5, %v4320_v53 }
 0x148   :  { %v2308_v21 = vpop.f32.mrf.mxu2 }
 0x149   :  { %v2309_v34 = vadd.f32 %v2308_v21, %v2060_v9  ;;  %v1812_v17 = vpop.f32.mrf.mxu0  ;;  %v2061_v26 = vpop.f32.mrf.mxu1 }
 0x14a   :  { %v1813_v27 = vadd.f32 %v1812_v17, %v5533_v55  ;;  %v3836_v55 = vld [vmem:[%s7357_s1 + $0x1d0] sm:$0xf] }
 0x14b   :  { %v3837_v45 = vor.u32 %v4553_v43, %v3836_v55  ;;  %v2518_v51 = vmax.f32 %v2309_v34, 0.0  ;;  %v4344_v55 = vld [vmem:[%s7359_s3 + $0x90] sm:$0xf]  ;;  %v4683_v43 = vld [vmem:[%s7359_s3 + $0xa4] sm:$0xf0] }
 0x14c   :  { %v2062_v28 = vadd.f32 %v2061_v26, %v1813_v27 }
 0x150   :  { %v2310_v52 = vpop.f32.mrf.mxu2 }
 0x151   :  { %v2311_v7 = vadd.f32 %v2310_v52, %v2062_v28  ;;  %v1815_v19 = vpop.f32.mrf.mxu0  ;;  %v2064_v42 = vpop.f32.mrf.mxu1  ;;  %v4558_v28 = vld [vmem:[%s7357_s1 + $0x200] sm:$0xf0]  ;;  %v3857_v52 = vor.u32 %v4557_v30, %v3854_v37  ;;  %v4392_v30 = vld [vmem:[%s7359_s3 + $0xf0] sm:$0xf]  ;;  %v4695_v37 = vld [vmem:[%s7359_s3 + $0x104] sm:$0xf0] }
 0x152   :  { %v1816_v48 = vadd.f32 %v1815_v19, %v5500_v20  ;;  %v3840_v20 = vld [vmem:[%s7357_s1 + $0x1e0] sm:$0xf]  ;;  %v4345_v19 = vor.u32 %v4683_v43, %v4344_v55 }
 0x153   :  { %v2519_v24 = vmax.f32 %v2311_v7, 0.0  ;;  %v3841_v8 = vor.u32 %v4555_v18, %v3840_v20  ;;  %v3861_v7 = vor.u32 %v4559_v63, %v3860_v31  ;;  %v4368_v20 = vld [vmem:[%s7359_s3 + $0xc0] sm:$0xf]  ;;  %v4689_v18 = vld [vmem:[%s7359_s3 + $0xd4] sm:$0xf0] }
 0x154   :  { %v2065_v57 = vadd.f32 %v2064_v42, %v1816_v48  ;;  %1854 = vmatmul.bf16.gmra.mxu0 %v3829_v39  ;;  %2103 = vmatmul.bf16.gmra.mxu1 %v3833_v41  ;;  %v5742_v42 = vpop.permute.xlu0 %596  ;;  %v5746_v48 = vpop.permute.xlu1 %581 }
 0x155   :  { %2352 = vmatmul.bf16.gmra.mxu2 %v3837_v45  ;;  %v5676_v59 = vpack.c.bf16 %v2519_v24, %v2518_v51  ;;  %v5744_v45 = vpop.permute.xlu2 %591 }
 0x156   :  { %3039 = vmatmul.bf16.gmra.mxu3 %v4297_v50 }
 0x158   :  { %v2313_v35 = vpop.f32.mrf.mxu2 }
 0x159   :  { %v2314_v60 = vadd.f32 %v2313_v35, %v2065_v57  ;;  %v1817_v2 = vpop.f32.mrf.mxu0  ;;  %v2066_v10 = vpop.f32.mrf.mxu1  ;;  %v3864_v57 = vld [vmem:[%s7357_s1 + $0x210] sm:$0xf]  ;;  %v4561_v35 = vld [vmem:[%s7357_s1 + $0x218] sm:$0xf0] }
 0x15a   :  { %v1818_v3 = vadd.f32 %v1817_v2, %v5531_v54  ;;  %v3848_v54 = vld [vmem:[%s7357_s1 + $0x1e8] sm:$0xf]  ;;  %v3866_v2 = vld [vmem:[%s7357_s1 + $0x21c] sm:$0xf0] }
 0x15b   :  { %v3849_v1 = vor.u32 %v4556_v44, %v3848_v54  ;;  %v2520_v40 = vmax.f32 %v2314_v60, 0.0  ;;  %v4560_v60 = vld [vmem:[%s7357_s1 + $0x214] sm:$0xf]  ;;  %v3865_v54 = vor.u32 %v4561_v35, %v3864_v57 }
 0x15c   :  { %v2067_v58 = vadd.f32 %v2066_v10, %v1818_v3  ;;  %v5766_v10 = vpop.permute.xlu0 %571  ;;  %v3872_v3 = vld [vmem:[%s7357_s1 + $0x218] sm:$0xf]  ;;  %v3869_v44 = vor.u32 %v4560_v60, %v3866_v2 }
 0x15d   :  { %v5780_v25 = vpop.permute.xlu2 %586 }
 0x160   :  { %v2315_v13 = vpop.f32.mrf.mxu2 }
 0x161   :  { %v2316_v14 = vadd.f32 %v2315_v13, %v2067_v58  ;;  %v1820_v15 = vpop.f32.mrf.mxu0  ;;  %v2069_v61 = vpop.f32.mrf.mxu1  ;;  %v4562_v58 = vld [vmem:[%s7357_s1 + $0x220] sm:$0xf0] }
 0x162   :  { %v1821_v23 = vadd.f32 %v1820_v15, %v5498_v22  ;;  %v3852_v22 = vld [vmem:[%s7357_s1 + $0x1f8] sm:$0xf]  ;;  %v3873_v13 = vor.u32 %v4562_v58, %v3872_v3 }
 0x163   :  { %v2521_v6 = vmax.f32 %v2316_v14, 0.0  ;;  %v3853_v16 = vor.u32 %v4558_v28, %v3852_v22  ;;  %v3884_v22 = vld [vmem:[%s7357_s1 + $0x230] sm:$0xf]  ;;  %v4565_v28 = vld [vmem:[%s7357_s1 + $0x238] sm:$0xf0] }
 0x164   :  { %v2070_v9 = vadd.f32 %v2069_v61, %v1821_v23  ;;  %1859 = vmatmul.bf16.gmra.mxu0 %v3841_v8  ;;  %2108 = vmatmul.bf16.gmra.mxu1 %v3845_v12  ;;  %v5786_v8 = vpop.permute.xlu1 %576  ;;  %v4369_v12 = vor.u32 %v4689_v18, %v4368_v20  ;;  %v5788_v14 = vpop.permute.xlu0 %566 }
 0x165   :  { %2357 = vmatmul.bf16.gmra.mxu2 %v3849_v1  ;;  %v5704_v21 = vpack.c.bf16 %v2521_v6, %v2520_v40  ;;  %v5792_v23 = vpop.permute.xlu2 %561  ;;  %v3876_v40 = vld [vmem:[%s7357_s1 + $0x228] sm:$0xf]  ;;  %v4564_v6 = vld [vmem:[%s7357_s1 + $0x230] sm:$0xf0] }
 0x166   :  { %3044 = vmatmul.bf16.gmra.mxu3 %v4321_v29  ;;  %v3877_v63 = vor.u32 %v4564_v6, %v3876_v40  ;;  %v4567_v40 = vld [vmem:[%s7357_s1 + $0x248] sm:$0xf0] }
 0x168   :  { %v2318_v34 = vpop.f32.mrf.mxu2 }
 0x169   :  { %v5706_v17 = vadd.f32 %v2318_v34, %v2070_v9  ;;  %v5708_v26 = vpop.f32.mrf.mxu0  ;;  %v5710_v27 = vpop.f32.mrf.mxu1  ;;  %v4563_v9 = vld [vmem:[%s7357_s1 + $0x22c] sm:$0xf]  ;;  %v3878_v34 = vld [vmem:[%s7357_s1 + $0x234] sm:$0xf0] }
 0x16a   :  { %v3881_v55 = vor.u32 %v4563_v9, %v3878_v34 }
 0x16c   :  { %v5794_v29 = vpop.permute.xlu1 %551 }
 0x16d   :  { %v5822_v57 = vpop.permute.xlu2 %556 }
 0x170   :  { %v5736_v32 = vpop.f32.mrf.mxu2 }
 0x171   :  { %v5738_v39 = vpop.f32.mrf.mxu0  ;;  %v5740_v41 = vpop.f32.mrf.mxu1 }
 0x174   :  { %1864 = vmatmul.bf16.gmra.mxu0 %v3853_v16  ;;  %2113 = vmatmul.bf16.gmra.mxu1 %v3857_v52  ;;  %v3885_v52 = vor.u32 %v4565_v28, %v3884_v22  ;;  %v5824_v35 = vpop.permute.xlu1 %546  ;;  %v4416_v22 = vld [vmem:[%s7359_s3 + $0x120] sm:$0xf]  ;;  %v4701_v28 = vld [vmem:[%s7359_s3 + $0x134] sm:$0xf0] }
 0x175   :  { %2362 = vmatmul.bf16.gmra.mxu2 %v3861_v7  ;;  %v5820_v7 = vpop.permute.xlu0 %541 }
 0x176   :  { %3049 = vmatmul.bf16.gmra.mxu3 %v4345_v19  ;;  %v4393_v19 = vor.u32 %v4695_v37, %v4392_v30  ;;  %v1826_v37 = vadd.f32 %v5738_v39, %v5545_v4 }
 0x178   :  { %v5748_v50 = vpop.f32.mrf.mxu2 }
 0x179   :  { %v5750_v51 = vpop.f32.mrf.mxu0  ;;  %v5752_v24 = vpop.f32.mrf.mxu1 }
 0x17c   :  { %v522_v30 = vpop.permute.xlu1 %521 }
 0x180   :  { %v5782_v47 = vpop.f32.mrf.mxu2 }
 0x181   :  { %v1830_v53 = vpop.f32.mrf.mxu0  ;;  %v5784_v5 = vpop.f32.mrf.mxu1 }
 0x184   :  { %1869 = vmatmul.bf16.gmra.mxu0 %v3865_v54  ;;  %2118 = vmatmul.bf16.gmra.mxu1 %v3869_v44  ;;  %v5829_v54 = vpop.permute.xlu0 %536  ;;  %v3888_v44 = vld [vmem:[%s7357_s1 + $0x240] sm:$0xf] }
 0x185   :  { %2367 = vmatmul.bf16.gmra.mxu2 %v3873_v13  ;;  %v1831_v13 = vadd.f32 %v1830_v53, %v5438_v49  ;;  %v4568_v49 = vld [vmem:[%s7357_s1 + $0x250] sm:$0xf0]  ;;  %v1828_v53 = vadd.f32 %v5750_v51, %v5485_v11 }
 0x186   :  { %3054 = vmatmul.bf16.gmra.mxu3 %v4369_v12 }
 0x187   :  { %v2080_v11 = vadd.f32 %v5784_v5, %v1831_v13  ;;  %v2075_v5 = vadd.f32 %v5740_v41, %v1826_v37  ;;  %v3908_v37 = vld [vmem:[%s7357_s1 + $0x260] sm:$0xf] }
 0x188   :  { %v5790_v15 = vpop.f32.mrf.mxu2 }
 0x189   :  { %v1832_v61 = vpop.f32.mrf.mxu0  ;;  %v2081_v1 = vpop.f32.mrf.mxu1 }
 0x18a   :  { %v1833_v20 = vadd.f32 %v1832_v61, %v5473_v62  ;;  %v3890_v62 = vld [vmem:[%s7357_s1 + $0x24c] sm:$0xf0]  ;;  %v3896_v61 = vld [vmem:[%s7357_s1 + $0x248] sm:$0xf] }
 0x18c   :  { %v2082_v6 = vadd.f32 %v2081_v1, %v1833_v20  ;;  %v2329_v20 = vadd.f32 %v5790_v15, %v2080_v11  ;;  %v4707_v11 = vld [vmem:[%s7359_s3 + $0x164] sm:$0xf0] }
 0x190   :  { %v2330_v31 = vpop.f32.mrf.mxu2 }
 0x191   :  { %v1835_v43 = vpop.f32.mrf.mxu0  ;;  %v2084_v16 = vpop.f32.mrf.mxu1  ;;  %v2331_v51 = vadd.f32 %v2330_v31, %v2082_v6 }
 0x192   :  { %v1836_v2 = vadd.f32 %v1835_v43, %v5433_v46  ;;  %v4566_v46 = vld [vmem:[%s7357_s1 + $0x244] sm:$0xf] }
 0x193   :  { %v3893_v43 = vor.u32 %v4566_v46, %v3890_v62 }
 0x194   :  { %1874 = vmatmul.bf16.gmra.mxu0 %v3877_v63  ;;  %2123 = vmatmul.bf16.gmra.mxu1 %v3881_v55  ;;  %v2085_v12 = vadd.f32 %v2084_v16, %v1836_v2  ;;  %v3889_v55 = vor.u32 %v4567_v40, %v3888_v44  ;;  %v2527_v44 = vmax.f32 %v2331_v51, 0.0 }
 0x195   :  { %2372 = vmatmul.bf16.gmra.mxu2 %v3885_v52 }
 0x196   :  { %3059 = vmatmul.bf16.gmra.mxu3 %v4393_v19  ;;  %v3897_v19 = vor.u32 %v4568_v49, %v3896_v61 }
 0x198   :  { %v2333_v60 = vpop.f32.mrf.mxu2 }
 0x199   :  { %v1837_v3 = vpop.f32.mrf.mxu0  ;;  %v2086_v58 = vpop.f32.mrf.mxu1  ;;  %v2334_v9 = vadd.f32 %v2333_v60, %v2085_v12  ;;  %v1823_v60 = vadd.f32 %v5708_v26, %v5589_v38  ;;  %v2324_v26 = vadd.f32 %v5748_v50, %v2075_v5 }
 0x19a   :  { %v1838_v18 = vadd.f32 %v1837_v3, %v5523_v33  ;;  %v5844_v33 = vpop.permute.xlu2 %531  ;;  %v4417_v3 = vor.u32 %v4701_v28, %v4416_v22  ;;  %v5869_v12 = vpop.permute.xlu0 %671  ;;  %v4569_v22 = vld [vmem:[%s7357_s1 + $0x25c] sm:$0xf]  ;;  %v3902_v28 = vld [vmem:[%s7357_s1 + $0x264] sm:$0xf0] }
 0x19b   :  { %v2528_v4 = vmax.f32 %v2334_v9, 0.0  ;;  %7364 = vst [vmem:[#allocation2_spill] sm:$0xff] %v5869_v12  ;;  %v2072_v38 = vadd.f32 %v5710_v27, %v1823_v60  ;;  %v2524_v6 = vmax.f32 %v2324_v26, 0.0  ;;  %v3900_v27 = vld [vmem:[%s7357_s1 + $0x258] sm:$0xf] }
 0x19c   :  { %v2087_v34 = vadd.f32 %v2086_v58, %v1838_v18  ;;  %v2077_v58 = vadd.f32 %v5752_v24, %v1828_v53  ;;  %v2526_v24 = vmax.f32 %v2329_v20, 0.0 }
 0x19d   :  { %v2321_v40 = vadd.f32 %v5736_v32, %v2072_v38  ;;  %v4570_v32 = vld [vmem:[%s7357_s1 + $0x260] sm:$0xf0] }
 0x19e   :  { %v2326_v31 = vadd.f32 %v5782_v47, %v2077_v58  ;;  %v2608_v49 = vpack.c.bf16 %v2527_v44, %v2526_v24 }
 0x19f   :  { %v2523_v9 = vmax.f32 %v2321_v40, 0.0 }
 0x1a0   :  { %v2335_v63 = vpop.f32.mrf.mxu2  ;;  %v2525_v62 = vmax.f32 %v2326_v31, 0.0 }
 0x1a1   :  { %v2336_v1 = vadd.f32 %v2335_v63, %v2087_v34  ;;  %v1840_v16 = vpop.f32.mrf.mxu0  ;;  %v2089_v52 = vpop.f32.mrf.mxu1  ;;  %v4571_v63 = vld [vmem:[%s7357_s1 + $0x268] sm:$0xf0] }
 0x1a2   :  { %v1841_v2 = vadd.f32 %v1840_v16, %v522_v30  ;;  %v527_v15 = vpop.permute.xlu2 %526  ;;  %v2607_v50 = vpack.c.bf16 %v2525_v62, %v2524_v6  ;;  %v5886_v30 = vpop.permute.xlu1 %676  ;;  %v3901_v16 = vor.u32 %v4570_v32, %v3900_v27  ;;  %v3909_v58 = vor.u32 %v4571_v63, %v3908_v37  ;;  %v4572_v62 = vld [vmem:[%s7357_s1 + $0x274] sm:$0xf] }
 0x1a3   :  { %v2529_v39 = vmax.f32 %v2336_v1, 0.0  ;;  %7365 = vst [vmem:[#allocation3_spill] sm:$0xff] %v5886_v30  ;;  %v5901_v51 = vpop.permute.xlu0 %666 }
 0x1a4   :  { %v2090_v18 = vadd.f32 %v2089_v52, %v1841_v2  ;;  %1879 = vmatmul.bf16.gmra.mxu0 %v3889_v55  ;;  %2128 = vmatmul.bf16.gmra.mxu1 %v3893_v43  ;;  %v2522_v55 = vmax.f32 %v5706_v17, 0.0  ;;  %v4440_v43 = vld [vmem:[%s7359_s3 + $0x150] sm:$0xf]  ;;  %7366 = vst [vmem:[#allocation4_spill] sm:$0xff] %v5901_v51  ;;  %v3905_v52 = vor.u32 %v4569_v22, %v3902_v28 }
 0x1a5   :  { %2377 = vmatmul.bf16.gmra.mxu2 %v3897_v19  ;;  %v2609_v13 = vpack.c.bf16 %v2529_v39, %v2528_v4  ;;  %v4441_v20 = vor.u32 %v4707_v11, %v4440_v43 }
 0x1a6   :  { %3064 = vmatmul.bf16.gmra.mxu3 %v4417_v3  ;;  %v2606_v3 = vpack.c.bf16 %v2523_v9, %v2522_v55 }
 0x1a7   :  { %3075 = vmatpush.bf16.msrb.mxu3 %v2609_v13 }
 0x1a8   :  { %v2338_v46 = vpop.f32.mrf.mxu2 }
 0x1a9   :  { %v2339_v41 = vadd.f32 %v2338_v46, %v2090_v18  ;;  %v1842_v61 = vpop.f32.mrf.mxu0  ;;  %v2091_v47 = vpop.f32.mrf.mxu1  ;;  %v3912_v46 = vld [vmem:[%s7357_s1 + $0x270] sm:$0xf] }
 0x1aa   :  { %v1843_v53 = vadd.f32 %v1842_v61, %v527_v15  ;;  %v5906_v31 = vpop.permute.xlu2 %661  ;;  %v5909_v44 = vpop.permute.xlu1 %651  ;;  %v4662_v61 = vld [vmem:[%s7359_s3 + $0x4] sm:$0xf] }
 0x1ab   :  { %3076 = vmatpush.bf16.msrb.mxu3 %v2608_v49  ;;  %v2530_v4 = vmax.f32 %v2339_v41, 0.0  ;;  %7367 = vst [vmem:[#allocation5_spill] sm:$0xff] %v5906_v31  ;;  %v5911_v24 = vpop.permute.xlu0 %641  ;;  %v3914_v41 = vld [vmem:[%s7357_s1 + $0x27c] sm:$0xf0] }
 0x1ac   :  { %v2092_v34 = vadd.f32 %v2091_v47, %v1843_v53  ;;  %7368 = vst [vmem:[#allocation6_spill] sm:$0xff] %v5909_v44  ;;  %v4274_v47 = vld [vmem:[%s7359_s3 + $0x18] sm:$0xf0]  ;;  %v3917_v9 = vor.u32 %v4572_v62, %v3914_v41 }
 0x1ad   :  { %v4277_v28 = vor.u32 %v4662_v61, %v4274_v47 }
 0x1af   :  { %3077 = vmatpush.bf16.msrb.mxu3 %v2607_v50 }
 0x1b0   :  { %v2340_v1 = vpop.f32.mrf.mxu2 }
 0x1b1   :  { %v2341_v19 = vadd.f32 %v2340_v1, %v2092_v34  ;;  %v1845_v60 = vpop.f32.mrf.mxu0  ;;  %v2094_v2 = vpop.f32.mrf.mxu1 }
 0x1b2   :  { %v1846_v17 = vadd.f32 %v1845_v60, %v5844_v33  ;;  %v5940_v49 = vpop.permute.xlu2 %656  ;;  %v5942_v22 = vpop.permute.xlu1 %646 }
 0x1b3   :  { %v2531_v39 = vmax.f32 %v2341_v19, 0.0  ;;  %3078 = vmatpush.bf16.msrb.mxu3 %v2606_v3  ;;  %7369 = vst [vmem:[#allocation7_spill] sm:$0xff] %v5940_v49  ;;  %v5946_v55 = vpop.permute.xlu0 %636 }
 0x1b4   :  { %v2095_v18 = vadd.f32 %v2094_v2, %v1846_v17  ;;  %1884 = vmatmul.bf16.gmra.mxu0 %v3901_v16  ;;  %2133 = vmatmul.bf16.gmra.mxu1 %v3905_v52  ;;  %7370 = vst [vmem:[#allocation8_spill] sm:$0xff] %v5942_v22  ;;  %v4576_v17 = vld [vmem:[%s7357_s1 + $0x290] sm:$0xf0] }
 0x1b5   :  { %2382 = vmatmul.bf16.gmra.mxu2 %v3909_v58  ;;  %v5904_v5 = vpack.c.bf16 %v2531_v39, %v2530_v4  ;;  %v3924_v58 = vld [vmem:[%s7357_s1 + $0x288] sm:$0xf]  ;;  %v3932_v39 = vld [vmem:[%s7357_s1 + $0x290] sm:$0xf] }
 0x1b6   :  { %3069 = vmatmul.bf16.gmra.mxu3 %v4441_v20  ;;  %v4575_v20 = vld [vmem:[%s7357_s1 + $0x28c] sm:$0xf] }
 0x1b7   :  { %3079 = vmatpush.bf16.msrb.mxu3 %v5704_v21  ;;  %v4573_v21 = vld [vmem:[%s7357_s1 + $0x278] sm:$0xf0] }
 0x1b8   :  { %v2343_v13 = vpop.f32.mrf.mxu2  ;;  %v3913_v6 = vor.u32 %v4573_v21, %v3912_v46 }
 0x1b9   :  { %v2344_v38 = vadd.f32 %v2343_v13, %v2095_v18  ;;  %v1847_v33 = vpop.f32.mrf.mxu0  ;;  %v2096_v26 = vpop.f32.mrf.mxu1  ;;  %v4577_v18 = vld [vmem:[%s7357_s1 + $0x298] sm:$0xf0]  ;;  %v4668_v13 = vld [vmem:[%s7359_s3 + $0x34] sm:$0xf] }
 0x1ba   :  { %v1848_v15 = vadd.f32 %v1847_v33, %v5829_v54  ;;  %v4574_v54 = vld [vmem:[%s7357_s1 + $0x280] sm:$0xf0]  ;;  %v3933_v62 = vor.u32 %v4577_v18, %v3932_v39 }
 0x1bb   :  { %3080 = vmatpush.bf16.msrb.mxu3 %v5676_v59  ;;  %v3920_v59 = vld [vmem:[%s7357_s1 + $0x278] sm:$0xf]  ;;  %v2532_v37 = vmax.f32 %v2344_v38, 0.0  ;;  %v5969_v4 = vpop.permute.xlu0 %611  ;;  %v4298_v38 = vld [vmem:[%s7359_s3 + $0x48] sm:$0xf0] }
 0x1bc   :  { %v2097_v40 = vadd.f32 %v2096_v26, %v1848_v15  ;;  %v3921_v32 = vor.u32 %v4574_v54, %v3920_v59  ;;  %v3925_v26 = vor.u32 %v4576_v17, %v3924_v58  ;;  %v4301_v54 = vor.u32 %v4668_v13, %v4298_v38  ;;  %v4322_v58 = vld [vmem:[%s7359_s3 + $0x78] sm:$0xf0] }
 0x1bf   :  { %3081 = vmatpush.bf16.msrb.mxu3 %v5648_v36 }
 0x1c0   :  { %v2345_v53 = vpop.f32.mrf.mxu2 }
 0x1c1   :  { %v2346_v34 = vadd.f32 %v2345_v53, %v2097_v40  ;;  %v1850_v27 = vpop.f32.mrf.mxu0  ;;  %v2099_v50 = vpop.f32.mrf.mxu1 }
 0x1c2   :  { %v1851_v36 = vadd.f32 %v1850_v27, %v5820_v7  ;;  %v5952_v7 = vpop.permute.xlu2 %631 }
 0x1c3   :  { %v2533_v63 = vmax.f32 %v2346_v34, 0.0  ;;  %3082 = vmatpush.bf16.msrb.mxu3 %v5618_v56  ;;  %v5955_v56 = vpop.permute.xlu1 %621  ;;  %v5992_v27 = vpop.permute.xlu0 %606 }
 0x1c4   :  { %v2100_v43 = vadd.f32 %v2099_v50, %v1851_v36  ;;  %1889 = vmatmul.bf16.gmra.mxu0 %v3913_v6  ;;  %2138 = vmatmul.bf16.gmra.mxu1 %v3917_v9 }
 0x1c5   :  { %2387 = vmatmul.bf16.gmra.mxu2 %v3921_v32  ;;  %v5948_v11 = vpack.c.bf16 %v2533_v63, %v2532_v37 }
 0x1c6   :  { %3083 = vmatmul.bf16.vlgmr.msrb.gmra.mxu3 %v4277_v28 }
 0x1c8   :  { %v2348_v1 = vpop.f32.mrf.mxu2 }
 0x1c9   :  { %v2349_v16 = vadd.f32 %v2348_v1, %v2100_v43  ;;  %v5950_v52 = vpop.f32.mrf.mxu3  ;;  %v1852_v19 = vpop.f32.mrf.mxu0  ;;  %v3936_v43 = vld [vmem:[%s7357_s1 + $0x2a0] sm:$0xf]  ;;  %v4579_v1 = vld [vmem:[%s7357_s1 + $0x2a8] sm:$0xf0] }
 0x1ca   :  { %v1853_v60 = vadd.f32 %v1852_v19, %v5824_v35  ;;  %v2101_v2 = vpop.f32.mrf.mxu1  ;;  %v3926_v35 = vld [vmem:[%s7357_s1 + $0x294] sm:$0xf0]  ;;  %v5986_v53 = vpop.permute.xlu2 %626  ;;  %v3938_v19 = vld [vmem:[%s7357_s1 + $0x2ac] sm:$0xf0] }
 0x1cb   :  { %v3929_v15 = vor.u32 %v4575_v20, %v3926_v35  ;;  %v2534_v61 = vmax.f32 %v2349_v16, 0.0  ;;  %v5990_v34 = vpop.permute.xlu1 %616  ;;  %v4578_v16 = vld [vmem:[%s7357_s1 + $0x2a4] sm:$0xf]  ;;  %v3937_v35 = vor.u32 %v4579_v1, %v3936_v43  ;;  %v4581_v43 = vld [vmem:[%s7357_s1 + $0x2bc] sm:$0xf] }
 0x1cc   :  { %v2102_v3 = vadd.f32 %v2101_v2, %v1853_v60  ;;  %v4580_v2 = vld [vmem:[%s7357_s1 + $0x2b0] sm:$0xf0]  ;;  %v3941_v39 = vor.u32 %v4578_v16, %v3938_v19  ;;  %v3950_v1 = vld [vmem:[%s7357_s1 + $0x2c4] sm:$0xf0]  ;;  %v3956_v16 = vld [vmem:[%s7357_s1 + $0x2c0] sm:$0xf] }
 0x1cd   :  { %v4583_v19 = vld [vmem:[%s7357_s1 + $0x2c8] sm:$0xf0] }
 0x1d0   :  { %v2350_v33 = vpop.f32.mrf.mxu2 }
 0x1d1   :  { %v2351_v40 = vadd.f32 %v2350_v33, %v2102_v3  ;;  %v5983_v46 = vpop.f32.mrf.mxu3  ;;  %v1855_v21 = vpop.f32.mrf.mxu0  ;;  %v4674_v3 = vld [vmem:[%s7359_s3 + $0x64] sm:$0xf] }
 0x1d2   :  { %v1856_v41 = vadd.f32 %v1855_v21, %v5794_v29  ;;  %v2104_v59 = vpop.f32.mrf.mxu1  ;;  %v6009_v60 = vpop.permute.xlu2 %601  ;;  %v4325_v21 = vor.u32 %v4674_v3, %v4322_v58 }
 0x1d3   :  { %v2535_v47 = vmax.f32 %v2351_v40, 0.0  ;;  %v6023_v17 = vpop.permute.xlu1 %751 }
 0x1d4   :  { %v2105_v6 = vadd.f32 %v2104_v59, %v1856_v41  ;;  %1894 = vmatmul.bf16.gmra.mxu0 %v3925_v26  ;;  %2143 = vmatmul.bf16.gmra.mxu1 %v3929_v15  ;;  %7371 = vst [vmem:[#allocation9_spill] sm:$0xff] %v6023_v17  ;;  %v6027_v26 = vpop.permute.xlu0 %741 }
 0x1d5   :  { %2392 = vmatmul.bf16.gmra.mxu2 %v3933_v62  ;;  %v5988_v9 = vpack.c.bf16 %v2535_v47, %v2534_v61  ;;  %7372 = vst [vmem:[#allocation10_spill] sm:$0xff] %v6027_v26 }
 0x1d6   :  { %3088 = vmatmul.bf16.gmra.mxu3 %v4301_v54 }
 0x1d8   :  { %v2353_v50 = vpop.f32.mrf.mxu2 }
 0x1d9   :  { %v2354_v32 = vadd.f32 %v2353_v50, %v2105_v6  ;;  %v5994_v29 = vpop.f32.mrf.mxu3  ;;  %v1857_v36 = vpop.f32.mrf.mxu0 }
 0x1da   :  { %v1858_v28 = vadd.f32 %v1857_v36, %v5822_v57  ;;  %v2106_v37 = vpop.f32.mrf.mxu1  ;;  %v3944_v57 = vld [vmem:[%s7357_s1 + $0x2a8] sm:$0xf]  ;;  %v6032_v61 = vpop.permute.xlu2 %756 }
 0x1db   :  { %v3945_v33 = vor.u32 %v4580_v2, %v3944_v57  ;;  %v2536_v62 = vmax.f32 %v2354_v32, 0.0  ;;  %7373 = vst [vmem:[#allocation11_spill] sm:$0xff] %v6032_v61  ;;  %v4680_v57 = vld [vmem:[%s7359_s3 + $0x94] sm:$0xf]  ;;  %v4346_v2 = vld [vmem:[%s7359_s3 + $0xa8] sm:$0xf0] }
 0x1dc   :  { %v2107_v63 = vadd.f32 %v2106_v37, %v1858_v28  ;;  %v6044_v28 = vpop.permute.xlu0 %736  ;;  %v3948_v37 = vld [vmem:[%s7357_s1 + $0x2b8] sm:$0xf] }
 0x1dd   :  { %7375 = vst [vmem:[#allocation13_spill] sm:$0xff] %v6044_v28 }
 0x1e0   :  { %v2355_v20 = vpop.f32.mrf.mxu2 }
 0x1e1   :  { %v2356_v18 = vadd.f32 %v2355_v20, %v2107_v63  ;;  %v6025_v13 = vpop.f32.mrf.mxu3  ;;  %v1860_v38 = vpop.f32.mrf.mxu0  ;;  %v4582_v63 = vld [vmem:[%s7357_s1 + $0x2c0] sm:$0xf0]  ;;  %v3953_v20 = vor.u32 %v4581_v43, %v3950_v1  ;;  %v4585_v43 = vld [vmem:[%s7357_s1 + $0x2d8] sm:$0xf0]  ;;  %v4584_v1 = vld [vmem:[%s7357_s1 + $0x2d4] sm:$0xf] }
 0x1e2   :  { %v1861_v15 = vadd.f32 %v1860_v38, %v5792_v23  ;;  %v2109_v40 = vpop.f32.mrf.mxu1  ;;  %v6040_v23 = vpop.permute.xlu1 %746  ;;  %v3949_v58 = vor.u32 %v4582_v63, %v3948_v37  ;;  %v3960_v63 = vld [vmem:[%s7357_s1 + $0x2d0] sm:$0xf] }
 0x1e3   :  { %v2537_v41 = vmax.f32 %v2356_v18, 0.0  ;;  %7374 = vst [vmem:[#allocation12_spill] sm:$0xff] %v6040_v23  ;;  %v3957_v18 = vor.u32 %v4583_v19, %v3956_v16  ;;  %v6076_v38 = vpop.permute.xlu2 %731  ;;  %v3962_v16 = vld [vmem:[%s7357_s1 + $0x2dc] sm:$0xf0]  ;;  %v3961_v0 = vor.u32 %v4585_v43, %v3960_v63 }
 0x1e4   :  { %v2110_v59 = vadd.f32 %v2109_v40, %v1861_v15  ;;  %1899 = vmatmul.bf16.gmra.mxu0 %v3937_v35  ;;  %2148 = vmatmul.bf16.gmra.mxu1 %v3941_v39  ;;  %7376 = vst [vmem:[#allocation14_spill] sm:$0xff] %v6076_v38  ;;  %v4349_v15 = vor.u32 %v4680_v57, %v4346_v2  ;;  %v3968_v57 = vld [vmem:[%s7357_s1 + $0x2d8] sm:$0xf]  ;;  %v4586_v2 = vld [vmem:[%s7357_s1 + $0x2e0] sm:$0xf0] }
 0x1e5   :  { %2397 = vmatmul.bf16.gmra.mxu2 %v3945_v33  ;;  %v6030_v54 = vpack.c.bf16 %v2537_v41, %v2536_v62  ;;  %v3969_v26 = vor.u32 %v4586_v2, %v3968_v57  ;;  %v4589_v57 = vld [vmem:[%s7357_s1 + $0x2f8] sm:$0xf0]  ;;  %v4692_v2 = vld [vmem:[%s7359_s3 + $0xf4] sm:$0xf] }
 0x1e6   :  { %3093 = vmatmul.bf16.gmra.mxu3 %v4325_v21  ;;  %v6082_v21 = vpop.permute.xlu0 %711 }
 0x1e7   :  { %7378 = vst [vmem:[#allocation16_spill] sm:$0xff] %v6082_v21 }
 0x1e8   :  { %v2358_v47 = vpop.f32.mrf.mxu2 }
 0x1e9   :  { %v6034_v6 = vadd.f32 %v2358_v47, %v2110_v59  ;;  %v6036_v50 = vpop.f32.mrf.mxu3  ;;  %v6038_v36 = vpop.f32.mrf.mxu0 }
 0x1ea   :  { %v6042_v32 = vpop.f32.mrf.mxu1  ;;  %v6080_v40 = vpop.permute.xlu1 %721 }
 0x1eb   :  { %7377 = vst [vmem:[#allocation15_spill] sm:$0xff] %v6080_v40  ;;  %v6092_v37 = vpop.permute.xlu2 %726 }
 0x1ec   :  { %7379 = vst [vmem:[#allocation17_spill] sm:$0xff] %v6092_v37  ;;  %v3965_v37 = vor.u32 %v4584_v1, %v3962_v16  ;;  %v3972_v16 = vld [vmem:[%s7357_s1 + $0x2e8] sm:$0xf] }
 0x1f0   :  { %v6070_v3 = vpop.f32.mrf.mxu2 }
 0x1f1   :  { %v6072_v35 = vpop.f32.mrf.mxu3  ;;  %v6074_v39 = vpop.f32.mrf.mxu0 }
 0x1f2   :  { %v6078_v33 = vpop.f32.mrf.mxu1  ;;  %v6106_v19 = vpop.permute.xlu1 %716 }
 0x1f3   :  { %7380 = vst [vmem:[#allocation18_spill] sm:$0xff] %v6106_v19  ;;  %v6128_v17 = vpop.permute.xlu2 %701 }
 0x1f4   :  { %1904 = vmatmul.bf16.gmra.mxu0 %v3949_v58  ;;  %2153 = vmatmul.bf16.gmra.mxu1 %v3953_v20  ;;  %v4686_v58 = vld [vmem:[%s7359_s3 + $0xc4] sm:$0xf]  ;;  %v4370_v20 = vld [vmem:[%s7359_s3 + $0xd8] sm:$0xf0]  ;;  %7382 = vst [vmem:[#allocation20_spill] sm:$0xff] %v6128_v17 }
 0x1f5   :  { %2402 = vmatmul.bf16.gmra.mxu2 %v3957_v18  ;;  %v6120_v18 = vpop.permute.xlu0 %706  ;;  %v4373_v23 = vor.u32 %v4686_v58, %v4370_v20  ;;  %v4394_v58 = vld [vmem:[%s7359_s3 + $0x108] sm:$0xf0] }
 0x1f6   :  { %3098 = vmatmul.bf16.gmra.mxu3 %v4349_v15  ;;  %7381 = vst [vmem:[#allocation19_spill] sm:$0xff] %v6120_v18  ;;  %v4397_v30 = vor.u32 %v4692_v2, %v4394_v58  ;;  %v4698_v58 = vld [vmem:[%s7359_s3 + $0x124] sm:$0xf] }
 0x1f8   :  { %v6084_v62 = vpop.f32.mrf.mxu2 }
 0x1f9   :  { %v6086_v41 = vpop.f32.mrf.mxu3  ;;  %v6088_v59 = vpop.f32.mrf.mxu0 }
 0x1fa   :  { %v6090_v47 = vpop.f32.mrf.mxu1  ;;  %v6130_v40 = vpop.permute.xlu1 %691 }
 0x1fb   :  { %7383 = vst [vmem:[#allocation21_spill] sm:$0xff] %v6130_v40  ;;  %v6162_v20 = vpop.permute.xlu2 %696 }
 0x1fc   :  { %7386 = vst [vmem:[#allocation24_spill] sm:$0xff] %v6162_v20 }
 0x1fd   :  { %v6136_v43 = vpop.permute.xlu0 %681 }
 0x1fe   :  { %7385 = vst [vmem:[#allocation23_spill] sm:$0xff] %v6136_v43 }
 0x200   :  { %v6122_v15 = vpop.f32.mrf.mxu2 }
 0x201   :  { %v6124_v38 = vpop.f32.mrf.mxu3  ;;  %v1870_v28 = vpop.f32.mrf.mxu0 }
 0x202   :  { %v6126_v61 = vpop.f32.mrf.mxu1  ;;  %v6166_v49 = vpop.permute.xlu1 %686 }
 0x203   :  { %7387 = vst [vmem:[#allocation25_spill] sm:$0xff] %v6166_v49 }
 0x204   :  { %1909 = vmatmul.bf16.gmra.mxu0 %v3961_v0  ;;  %2158 = vmatmul.bf16.gmra.mxu1 %v3965_v37  ;;  %v4588_v0 = vld [vmem:[%s7357_s1 + $0x2f0] sm:$0xf0]  ;;  %v3980_v37 = vld [vmem:[%s7357_s1 + $0x2f0] sm:$0xf] }
 0x205   :  { %2407 = vmatmul.bf16.gmra.mxu2 %v3969_v26  ;;  %v4587_v26 = vld [vmem:[%s7357_s1 + $0x2ec] sm:$0xf]  ;;  %v3973_v17 = vor.u32 %v4588_v0, %v3972_v16  ;;  %v3981_v44 = vor.u32 %v4589_v57, %v3980_v37  ;;  %v6168_v51 = vpop.permute.xlu0 %766  ;;  %v6173_v0 = vpop.permute.xlu2 %761 }
 0x206   :  { %3103 = vmatmul.bf16.gmra.mxu3 %v4373_v23  ;;  %v3974_v23 = vld [vmem:[%s7357_s1 + $0x2f4] sm:$0xf0]  ;;  %7388 = vst [vmem:[#allocation26_spill] sm:$0xff] %v6168_v51 }
 0x207   :  { %v3977_v40 = vor.u32 %v4587_v26, %v3974_v23  ;;  %7389 = vst [vmem:[#allocation27_spill] sm:$0xff] %v6173_v0 }
 0x208   :  { %v6132_v19 = vpop.f32.mrf.mxu2 }
 0x209   :  { %v6134_v21 = vpop.f32.mrf.mxu3  ;;  %v1872_v63 = vpop.f32.mrf.mxu0 }
 0x20a   :  { %7384 = vst [vmem:[#allocation22_spill] sm:$0xff] %v6134_v21  ;;  %v2121_v1 = vpop.f32.mrf.mxu1  ;;  %v1873_v23 = vadd.f32 %v1872_v63, %v5780_v25  ;;  %v6177_v57 = vpop.permute.xlu1 %831 }
 0x20b   :  { %7390 = vst [vmem:[#allocation28_spill] sm:$0xff] %v6177_v57 }
 0x20d   :  { %v6192_v25 = vpop.permute.xlu0 %821 }
 0x20e   :  { %7391 = vst [vmem:[#allocation29_spill] sm:$0xff] %v6192_v25 }
 0x210   :  { %v2370_v18 = vpop.f32.mrf.mxu2 }
 0x211   :  { %v6164_v43 = vpop.f32.mrf.mxu3  ;;  %v1875_v22 = vpop.f32.mrf.mxu0 }
 0x212   :  { %v2124_v31 = vpop.f32.mrf.mxu1  ;;  %v1876_v20 = vadd.f32 %v1875_v22, %v5744_v45  ;;  %v4591_v45 = vld [vmem:[%s7357_s1 + $0x308] sm:$0xf0]  ;;  %v4590_v22 = vld [vmem:[%s7357_s1 + $0x304] sm:$0xf] }
 0x214   :  { %1914 = vmatmul.bf16.gmra.mxu0 %v3973_v17  ;;  %2163 = vmatmul.bf16.gmra.mxu1 %v3977_v40  ;;  %v2125_v17 = vadd.f32 %v2124_v31, %v1876_v20  ;;  %v3992_v40 = vld [vmem:[%s7357_s1 + $0x308] sm:$0xf]  ;;  %v1868_v31 = vadd.f32 %v6088_v59, %v5786_v8  ;;  %v4418_v20 = vld [vmem:[%s7359_s3 + $0x138] sm:$0xf0] }
 0x215   :  { %2412 = vmatmul.bf16.gmra.mxu2 %v3981_v44  ;;  %v3984_v44 = vld [vmem:[%s7357_s1 + $0x300] sm:$0xf]  ;;  %v4421_v49 = vor.u32 %v4698_v58, %v4418_v20  ;;  %v4593_v58 = vld [vmem:[%s7357_s1 + $0x31c] sm:$0xf] }
 0x216   :  { %3108 = vmatmul.bf16.gmra.mxu3 %v4397_v30  ;;  %v1871_v30 = vadd.f32 %v1870_v28, %v5746_v48  ;;  %v4592_v48 = vld [vmem:[%s7357_s1 + $0x310] sm:$0xf0]  ;;  %v2122_v28 = vadd.f32 %v2121_v1, %v1873_v23  ;;  %v3985_v57 = vor.u32 %v4591_v45, %v3984_v44  ;;  %v1863_v23 = vadd.f32 %v6038_v36, %v5788_v14 }
 0x218   :  { %v2373_v12 = vpop.f32.mrf.mxu2  ;;  %v2120_v0 = vadd.f32 %v6126_v61, %v1871_v30  ;;  %v2371_v8 = vadd.f32 %v2370_v18, %v2122_v28  ;;  %v6218_v61 = vpop.permute.xlu2 %836 }
 0x219   :  { %v6171_v21 = vpop.f32.mrf.mxu3  ;;  %v1877_v16 = vpop.f32.mrf.mxu0  ;;  %v2374_v63 = vadd.f32 %v2373_v12, %v2125_v17  ;;  %7392 = vst [vmem:[#allocation30_spill] sm:$0xff] %v6218_v61 }
 0x21a   :  { %v2126_v26 = vpop.f32.mrf.mxu1  ;;  %v1878_v37 = vadd.f32 %v1877_v16, %v5742_v42  ;;  %v3986_v42 = vld [vmem:[%s7357_s1 + $0x30c] sm:$0xf0]  ;;  %v1866_v16 = vadd.f32 %v6074_v39, %v5766_v10  ;;  %v2117_v10 = vadd.f32 %v6090_v47, %v1868_v31  ;;  %v2369_v39 = vadd.f32 %v6132_v19, %v2120_v0 }
 0x21b   :  { %v3989_v51 = vor.u32 %v4590_v22, %v3986_v42  ;;  %v2544_v44 = vmax.f32 %v2374_v63, 0.0  ;;  %v2543_v14 = vmax.f32 %v2371_v8, 0.0  ;;  %v2112_v47 = vadd.f32 %v6042_v32, %v1863_v23  ;;  %v6226_v42 = vpop.permute.xlu0 %816  ;;  %v3996_v63 = vld [vmem:[%s7357_s1 + $0x318] sm:$0xf]  ;;  %v4595_v8 = vld [vmem:[%s7357_s1 + $0x328] sm:$0xf0] }
 0x21c   :  { %v2127_v2 = vadd.f32 %v2126_v26, %v1878_v37  ;;  %v3993_v26 = vor.u32 %v4592_v48, %v3992_v40  ;;  %v2115_v30 = vadd.f32 %v6078_v33, %v1866_v16  ;;  %v2366_v22 = vadd.f32 %v6122_v15, %v2117_v10  ;;  %7394 = vst [vmem:[#allocation32_spill] sm:$0xff] %v6226_v42  ;;  %v4004_v16 = vld [vmem:[%s7357_s1 + $0x320] sm:$0xf] }
 0x21d   :  { %v2542_v0 = vmax.f32 %v2369_v39, 0.0 }
 0x21e   :  { %v2364_v19 = vadd.f32 %v6084_v62, %v2115_v30  ;;  %v2541_v33 = vmax.f32 %v2366_v22, 0.0 }
 0x21f   :  { %v2616_v48 = vpack.c.bf16 %v2543_v14, %v2542_v0 }
 0x220   :  { %v2375_v25 = vpop.f32.mrf.mxu2  ;;  %v2540_v32 = vmax.f32 %v2364_v19, 0.0  ;;  %v6244_v20 = vpop.permute.xlu2 %811 }
 0x221   :  { %v2376_v59 = vadd.f32 %v2375_v25, %v2127_v2  ;;  %v6211_v12 = vpop.f32.mrf.mxu3  ;;  %v1880_v1 = vpop.f32.mrf.mxu0  ;;  %7395 = vst [vmem:[#allocation33_spill] sm:$0xff] %v6244_v20 }
 0x222   :  { %v1881_v37 = vadd.f32 %v1880_v1, %v6009_v60  ;;  %v2129_v17 = vpop.f32.mrf.mxu1  ;;  %v6222_v60 = vpop.permute.xlu1 %826  ;;  %v2615_v2 = vpack.c.bf16 %v2541_v33, %v2540_v32  ;;  %v4704_v1 = vld [vmem:[%s7359_s3 + $0x154] sm:$0xf] }
 0x223   :  { %v2545_v45 = vmax.f32 %v2376_v59, 0.0  ;;  %7393 = vst [vmem:[#allocation31_spill] sm:$0xff] %v6222_v60  ;;  %v2538_v59 = vmax.f32 %v6034_v6, 0.0  ;;  %v4005_v6 = vor.u32 %v4595_v8, %v4004_v16 }
 0x224   :  { %v2130_v18 = vadd.f32 %v2129_v17, %v1881_v37  ;;  %1919 = vmatmul.bf16.gmra.mxu0 %v3985_v57  ;;  %2168 = vmatmul.bf16.gmra.mxu1 %v3989_v51  ;;  %v2361_v51 = vadd.f32 %v6070_v3, %v2112_v47  ;;  %v4594_v3 = vld [vmem:[%s7357_s1 + $0x320] sm:$0xf0] }
 0x225   :  { %v2617_v36 = vpack.c.bf16 %v2545_v45, %v2544_v44  ;;  %2417 = vmatmul.bf16.gmra.mxu2 %v3993_v26  ;;  %v4442_v26 = vld [vmem:[%s7359_s3 + $0x168] sm:$0xf0]  ;;  %v3997_v17 = vor.u32 %v4594_v3, %v3996_v63  ;;  %v4010_v63 = vld [vmem:[%s7357_s1 + $0x33c] sm:$0xf0]  ;;  %v4280_v3 = vld [vmem:[%s7359_s3 + $0x8] sm:$0xf] }
 0x226   :  { %3113 = vmatmul.bf16.gmra.mxu3 %v4421_v49  ;;  %v2539_v49 = vmax.f32 %v2361_v51, 0.0  ;;  %v4445_v14 = vor.u32 %v4704_v1, %v4442_v26 }
 0x227   :  { %3124 = vmatpush.bf16.msra.mxu3 %v2617_v36  ;;  %v6264_v36 = vpop.permute.xlu0 %791 }
 0x228   :  { %v2378_v57 = vpop.f32.mrf.mxu2  ;;  %7397 = vst [vmem:[#allocation35_spill] sm:$0xff] %v6264_v36 }
 0x229   :  { %v2379_v25 = vadd.f32 %v2378_v57, %v2130_v18  ;;  %v6229_v15 = vpop.f32.mrf.mxu3  ;;  %v1882_v40 = vpop.f32.mrf.mxu0  ;;  %v2614_v18 = vpack.c.bf16 %v2539_v49, %v2538_v59  ;;  %v4008_v49 = vld [vmem:[%s7357_s1 + $0x330] sm:$0xf] }
 0x22a   :  { %v1883_v31 = vadd.f32 %v1882_v40, %v5992_v27  ;;  %v2131_v28 = vpop.f32.mrf.mxu1  ;;  %v3998_v27 = vld [vmem:[%s7357_s1 + $0x324] sm:$0xf0]  ;;  %v6259_v23 = vpop.permute.xlu1 %801 }
 0x22b   :  { %3125 = vmatpush.bf16.msra.mxu3 %v2616_v48  ;;  %7396 = vst [vmem:[#allocation34_spill] sm:$0xff] %v6259_v23  ;;  %v4001_v10 = vor.u32 %v4593_v58, %v3998_v27  ;;  %v2546_v47 = vmax.f32 %v2379_v25, 0.0  ;;  %v6269_v57 = vpop.permute.xlu2 %806  ;;  %v4666_v58 = vld [vmem:[%s7359_s3 + $0x1c] sm:$0xf0] }
 0x22c   :  { %v2132_v62 = vadd.f32 %v2131_v28, %v1883_v31  ;;  %7398 = vst [vmem:[#allocation36_spill] sm:$0xff] %v6269_v57  ;;  %v7404_v23 = vld [vmem:[#allocation2_spill] sm:$0xff] }
 0x22f   :  { %3126 = vmatpush.bf16.msra.mxu3 %v2615_v2  ;;  %v4598_v2 = vld [vmem:[%s7357_s1 + $0x340] sm:$0xf0] }
 0x230   :  { %v2380_v37 = vpop.f32.mrf.mxu2 }
 0x231   :  { %v2381_v39 = vadd.f32 %v2380_v37, %v2132_v62  ;;  %v6261_v44 = vpop.f32.mrf.mxu3  ;;  %v1885_v45 = vpop.f32.mrf.mxu0  ;;  %v4597_v62 = vld [vmem:[%s7357_s1 + $0x338] sm:$0xf0] }
 0x232   :  { %v1886_v30 = vadd.f32 %v1885_v45, %v5969_v4  ;;  %v2134_v22 = vpop.f32.mrf.mxu1  ;;  %v6274_v28 = vpop.permute.xlu1 %796  ;;  %v4009_v16 = vor.u32 %v4597_v62, %v4008_v49  ;;  %v4599_v49 = vld [vmem:[%s7357_s1 + $0x34c] sm:$0xf]  ;;  %v4028_v62 = vld [vmem:[%s7357_s1 + $0x350] sm:$0xf] }
 0x233   :  { %v2547_v19 = vmax.f32 %v2381_v39, 0.0  ;;  %3127 = vmatpush.bf16.msra.mxu3 %v2614_v18  ;;  %7399 = vst [vmem:[#allocation37_spill] sm:$0xff] %v6274_v28  ;;  %v6307_v39 = vpop.permute.xlu2 %781 }
 0x234   :  { %v2135_v0 = vadd.f32 %v2134_v22, %v1886_v30  ;;  %1924 = vmatmul.bf16.gmra.mxu0 %v3997_v17  ;;  %2173 = vmatmul.bf16.gmra.mxu1 %v4001_v10  ;;  %7401 = vst [vmem:[#allocation39_spill] sm:$0xff] %v6307_v39  ;;  %v7411_v39 = vld [vmem:[#allocation23_spill] sm:$0xff] }
 0x235   :  { %2422 = vmatmul.bf16.gmra.mxu2 %v4005_v6  ;;  %v6266_v51 = vpack.c.bf16 %v2547_v19, %v2546_v47 }
 0x236   :  { %3118 = vmatmul.bf16.gmra.mxu3 %v4445_v14 }
 0x237   :  { %3128 = vmatpush.bf16.msra.mxu3 %v6030_v54  ;;  %v6280_v54 = vpop.permute.xlu0 %786 }
 0x238   :  { %v2383_v33 = vpop.f32.mrf.mxu2  ;;  %7400 = vst [vmem:[#allocation38_spill] sm:$0xff] %v6280_v54 }
 0x239   :  { %v2384_v4 = vadd.f32 %v2383_v33, %v2135_v0  ;;  %v6271_v40 = vpop.f32.mrf.mxu3  ;;  %v1887_v48 = vpop.f32.mrf.mxu0 }
 0x23a   :  { %v1888_v25 = vadd.f32 %v1887_v48, %v5990_v34  ;;  %v2136_v31 = vpop.f32.mrf.mxu1  ;;  %v4596_v34 = vld [vmem:[%s7357_s1 + $0x334] sm:$0xf]  ;;  %v6310_v30 = vpop.permute.xlu1 %771 }
 0x23b   :  { %3129 = vmatpush.bf16.msra.mxu3 %v5988_v9  ;;  %v4016_v9 = vld [vmem:[%s7357_s1 + $0x338] sm:$0xf]  ;;  %v4013_v8 = vor.u32 %v4596_v34, %v4010_v63  ;;  %v2548_v45 = vmax.f32 %v2384_v4, 0.0  ;;  %v4601_v34 = vld [vmem:[%s7357_s1 + $0x358] sm:$0xf0] }
 0x23c   :  { %v2137_v32 = vadd.f32 %v2136_v31, %v1888_v25  ;;  %v4017_v37 = vor.u32 %v4598_v2, %v4016_v9  ;;  %v4020_v31 = vld [vmem:[%s7357_s1 + $0x348] sm:$0xf]  ;;  %v4304_v9 = vld [vmem:[%s7359_s3 + $0x38] sm:$0xf]  ;;  %v4672_v2 = vld [vmem:[%s7359_s3 + $0x4c] sm:$0xf0] }
 0x23f   :  { %3130 = vmatpush.bf16.msra.mxu3 %v5948_v11  ;;  %v4281_v11 = vor.u32 %v4666_v58, %v4280_v3  ;;  %v2709_v14 = vpop.permute.xlu0 %2708 }
 0x240   :  { %v2385_v27 = vpop.f32.mrf.mxu2 }
 0x241   :  { %v2386_v59 = vadd.f32 %v2385_v27, %v2137_v32  ;;  %v6304_v1 = vpop.f32.mrf.mxu3  ;;  %v1890_v26 = vpop.f32.mrf.mxu0 }
 0x242   :  { %v1891_v17 = vadd.f32 %v1890_v26, %v5955_v56  ;;  %v2139_v10 = vpop.f32.mrf.mxu1  ;;  %v3036_v56 = vadd.f32 %v5950_v52, %v2709_v14  ;;  %v6321_v32 = vpop.permute.xlu2 %776  ;;  %v4600_v52 = vld [vmem:[%s7357_s1 + $0x350] sm:$0xf0] }
 0x243   :  { %v2549_v18 = vmax.f32 %v2386_v59, 0.0  ;;  %3131 = vmatpush.bf16.msra.mxu3 %v5904_v5  ;;  %7402 = vst [vmem:[#allocation40_spill] sm:$0xff] %v6321_v32  ;;  %v2714_v63 = vpop.permute.xlu1 %2713  ;;  %v4021_v27 = vor.u32 %v4600_v52, %v4020_v31  ;;  %v4032_v52 = vld [vmem:[%s7357_s1 + $0x360] sm:$0xf] }
 0x244   :  { %v2140_v6 = vadd.f32 %v2139_v10, %v1891_v17  ;;  %1929 = vmatmul.bf16.gmra.mxu0 %v4009_v16  ;;  %2178 = vmatmul.bf16.gmra.mxu1 %v4013_v8  ;;  %v3038_v3 = vadd.f32 %v5983_v46, %v2714_v63  ;;  %v4328_v63 = vld [vmem:[%s7359_s3 + $0x68] sm:$0xf] }
 0x245   :  { %2427 = vmatmul.bf16.gmra.mxu2 %v4017_v37  ;;  %v6312_v22 = vpack.c.bf16 %v2549_v18, %v2548_v45  ;;  %v4029_v37 = vor.u32 %v4601_v34, %v4028_v62  ;;  %v4305_v45 = vor.u32 %v4672_v2, %v4304_v9  ;;  %v4604_v62 = vld [vmem:[%s7357_s1 + $0x370] sm:$0xf0]  ;;  %v4678_v9 = vld [vmem:[%s7359_s3 + $0x7c] sm:$0xf0] }
 0x246   :  { %3132 = vmatmul.bf16.vlgmr.msra.gmra.mxu3 %v4281_v11 }
 0x247   :  { %v2724_v34 = vpop.permute.xlu0 %2723 }
 0x248   :  { %v2388_v47 = vpop.f32.mrf.mxu2  ;;  %v3043_v2 = vadd.f32 %v6025_v13, %v2724_v34 }
 0x249   :  { %v2389_v19 = vadd.f32 %v2388_v47, %v2140_v6  ;;  %v3084_v0 = vpop.f32.mrf.mxu3  ;;  %v1892_v33 = vpop.f32.mrf.mxu0 }
 0x24a   :  { %v6315_v4 = vadd.f32 %v3084_v0, %v3036_v56  ;;  %v1893_v5 = vadd.f32 %v1892_v33, %v5986_v53  ;;  %v2141_v48 = vpop.f32.mrf.mxu1  ;;  %v4022_v53 = vld [vmem:[%s7357_s1 + $0x354] sm:$0xf0]  ;;  %v2719_v56 = vpop.permute.xlu2 %2718 }
 0x24b   :  { %v4025_v16 = vor.u32 %v4599_v49, %v4022_v53  ;;  %v2550_v18 = vmax.f32 %v2389_v19, 0.0  ;;  %v3041_v47 = vadd.f32 %v5994_v29, %v2719_v56  ;;  %v4603_v49 = vld [vmem:[%s7357_s1 + $0x368] sm:$0xf0]  ;;  %v4602_v29 = vld [vmem:[%s7357_s1 + $0x364] sm:$0xf]  ;;  %v2729_v56 = vpop.permute.xlu1 %2728 }
 0x24c   :  { %v2142_v25 = vadd.f32 %v2141_v48, %v1893_v5  ;;  %v4034_v53 = vld [vmem:[%s7357_s1 + $0x36c] sm:$0xf0] }
 0x250   :  { %v2390_v58 = vpop.f32.mrf.mxu2 }
 0x251   :  { %v2391_v8 = vadd.f32 %v2390_v58, %v2142_v25  ;;  %v3086_v59 = vpop.f32.mrf.mxu3  ;;  %v1895_v26 = vpop.f32.mrf.mxu0  ;;  %v4033_v58 = vor.u32 %v4603_v49, %v4032_v52  ;;  %v4046_v52 = vld [vmem:[%s7357_s1 + $0x384] sm:$0xf0]  ;;  %v4052_v49 = vld [vmem:[%s7357_s1 + $0x380] sm:$0xf] }
 0x252   :  { %v6345_v17 = vadd.f32 %v3086_v59, %v3038_v3  ;;  %v1896_v10 = vadd.f32 %v1895_v26, %v5952_v7  ;;  %v2144_v11 = vpop.f32.mrf.mxu1 }
 0x253   :  { %v2551_v6 = vmax.f32 %v2391_v8, 0.0 }
 0x254   :  { %v2145_v14 = vadd.f32 %v2144_v11, %v1896_v10  ;;  %1934 = vmatmul.bf16.gmra.mxu0 %v4021_v27  ;;  %2183 = vmatmul.bf16.gmra.mxu1 %v4025_v16  ;;  %v4037_v27 = vor.u32 %v4602_v29, %v4034_v53  ;;  %v4607_v29 = vld [vmem:[%s7357_s1 + $0x388] sm:$0xf0]  ;;  %v2734_v53 = vpop.permute.xlu2 %2733 }
 0x255   :  { %2432 = vmatmul.bf16.gmra.mxu2 %v4029_v37  ;;  %v6348_v46 = vpack.c.bf16 %v2551_v6, %v2550_v18  ;;  %v3048_v34 = vadd.f32 %v6072_v35, %v2734_v53 }
 0x256   :  { %3137 = vmatmul.bf16.gmra.mxu3 %v4305_v45  ;;  %v4329_v45 = vor.u32 %v4678_v9, %v4328_v63 }
 0x258   :  { %v2393_v0 = vpop.f32.mrf.mxu2 }
 0x259   :  { %v2394_v33 = vadd.f32 %v2393_v0, %v2145_v14  ;;  %v3089_v5 = vpop.f32.mrf.mxu3  ;;  %v1897_v48 = vpop.f32.mrf.mxu0 }
 0x25a   :  { %v6351_v25 = vadd.f32 %v3089_v5, %v3041_v47  ;;  %v1898_v7 = vadd.f32 %v1897_v48, %v5946_v55  ;;  %v2146_v19 = vpop.f32.mrf.mxu1  ;;  %v4040_v55 = vld [vmem:[%s7357_s1 + $0x368] sm:$0xf]  ;;  %v3046_v47 = vadd.f32 %v6036_v50, %v2729_v56  ;;  %v4605_v50 = vld [vmem:[%s7357_s1 + $0x37c] sm:$0xf] }
 0x25b   :  { %v4041_v26 = vor.u32 %v4604_v62, %v4040_v55  ;;  %v2552_v18 = vmax.f32 %v2394_v33, 0.0  ;;  %v4352_v55 = vld [vmem:[%s7359_s3 + $0x98] sm:$0xf]  ;;  %v4684_v62 = vld [vmem:[%s7359_s3 + $0xac] sm:$0xf0] }
 0x25c   :  { %v2147_v31 = vadd.f32 %v2146_v19, %v1898_v7  ;;  %v4044_v19 = vld [vmem:[%s7357_s1 + $0x378] sm:$0xf]  ;;  %v4609_v56 = vld [vmem:[%s7357_s1 + $0x398] sm:$0xf0] }
 0x260   :  { %v2395_v3 = vpop.f32.mrf.mxu2 }
 0x261   :  { %v2396_v16 = vadd.f32 %v2395_v3, %v2147_v31  ;;  %v3091_v8 = vpop.f32.mrf.mxu3  ;;  %v1900_v59 = vpop.f32.mrf.mxu0  ;;  %v4606_v31 = vld [vmem:[%s7357_s1 + $0x380] sm:$0xf0] }
 0x262   :  { %v6379_v37 = vadd.f32 %v3091_v8, %v3043_v2  ;;  %v1901_v10 = vadd.f32 %v1900_v59, %v5911_v24  ;;  %v2149_v11 = vpop.f32.mrf.mxu1  ;;  %v4045_v9 = vor.u32 %v4606_v31, %v4044_v19  ;;  %v4049_v2 = vor.u32 %v4605_v50, %v4046_v52  ;;  %v2744_v19 = vpop.permute.xlu1 %2743  ;;  %v4376_v31 = vld [vmem:[%s7359_s3 + $0xc8] sm:$0xf]  ;;  %v4690_v50 = vld [vmem:[%s7359_s3 + $0xdc] sm:$0xf0] }
 0x263   :  { %v2553_v6 = vmax.f32 %v2396_v16, 0.0  ;;  %v4353_v59 = vor.u32 %v4684_v62, %v4352_v55  ;;  %v3053_v52 = vadd.f32 %v6124_v38, %v2744_v19  ;;  %v4076_v19 = vld [vmem:[%s7357_s1 + $0x3b0] sm:$0xf] }
 0x264   :  { %v2150_v14 = vadd.f32 %v2149_v11, %v1901_v10  ;;  %1939 = vmatmul.bf16.gmra.mxu0 %v4033_v58  ;;  %2188 = vmatmul.bf16.gmra.mxu1 %v4037_v27  ;;  %v4053_v27 = vor.u32 %v4607_v29, %v4052_v49 }
 0x265   :  { %2437 = vmatmul.bf16.gmra.mxu2 %v4041_v26  ;;  %v6382_v13 = vpack.c.bf16 %v2553_v6, %v2552_v18  ;;  %v2739_v26 = vpop.permute.xlu0 %2738 }
 0x266   :  { %3142 = vmatmul.bf16.gmra.mxu3 %v4329_v45  ;;  %v3051_v35 = vadd.f32 %v6086_v41, %v2739_v26  ;;  %v4608_v41 = vld [vmem:[%s7357_s1 + $0x394] sm:$0xf] }
 0x268   :  { %v2398_v0 = vpop.f32.mrf.mxu2 }
 0x269   :  { %v6385_v5 = vadd.f32 %v2398_v0, %v2150_v14  ;;  %v3094_v48 = vpop.f32.mrf.mxu3  ;;  %v6387_v7 = vpop.f32.mrf.mxu0  ;;  %v4056_v14 = vld [vmem:[%s7357_s1 + $0x390] sm:$0xf]  ;;  %v4064_v0 = vld [vmem:[%s7357_s1 + $0x398] sm:$0xf] }
 0x26a   :  { %v6389_v24 = vadd.f32 %v3094_v48, %v3046_v47  ;;  %v6391_v33 = vpop.f32.mrf.mxu1  ;;  %v4058_v47 = vld [vmem:[%s7357_s1 + $0x39c] sm:$0xf0]  ;;  %v4610_v48 = vld [vmem:[%s7357_s1 + $0x3a0] sm:$0xf0]  ;;  %v4057_v29 = vor.u32 %v4609_v56, %v4056_v14  ;;  %v2759_v42 = vpop.permute.xlu1 %2758 }
 0x26b   :  { %v4061_v53 = vor.u32 %v4608_v41, %v4058_v47  ;;  %v4068_v41 = vld [vmem:[%s7357_s1 + $0x3a8] sm:$0xf]  ;;  %v4612_v47 = vld [vmem:[%s7357_s1 + $0x3b0] sm:$0xf0]  ;;  %v3061_v61 = vadd.f32 %v6171_v21, %v2759_v42  ;;  %v4615_v21 = vld [vmem:[%s7357_s1 + $0x3c8] sm:$0xf0] }
 0x26c   :  { %v4082_v42 = vld [vmem:[%s7357_s1 + $0x3cc] sm:$0xf0] }
 0x270   :  { %v6418_v63 = vpop.f32.mrf.mxu2 }
 0x271   :  { %v3096_v3 = vpop.f32.mrf.mxu3  ;;  %v6420_v58 = vpop.f32.mrf.mxu0 }
 0x272   :  { %v6422_v16 = vadd.f32 %v3096_v3, %v3048_v34  ;;  %v6424_v8 = vpop.f32.mrf.mxu1  ;;  %v4065_v34 = vor.u32 %v4610_v48, %v4064_v0  ;;  %v4377_v3 = vor.u32 %v4690_v50, %v4376_v31  ;;  %v4611_v0 = vld [vmem:[%s7357_s1 + $0x3ac] sm:$0xf]  ;;  %v4070_v48 = vld [vmem:[%s7357_s1 + $0x3b4] sm:$0xf0]  ;;  %v4613_v31 = vld [vmem:[%s7357_s1 + $0x3b8] sm:$0xf0]  ;;  %v2754_v50 = vpop.permute.xlu0 %2753 }
 0x274   :  { %1944 = vmatmul.bf16.gmra.mxu0 %v4045_v9  ;;  %2193 = vmatmul.bf16.gmra.mxu1 %v4049_v2 }
 0x275   :  { %2442 = vmatmul.bf16.gmra.mxu2 %v4053_v27  ;;  %v2749_v27 = vpop.permute.xlu2 %2748 }
 0x276   :  { %3147 = vmatmul.bf16.gmra.mxu3 %v4353_v59  ;;  %v7403_v59 = vld [vmem:[#allocation22_spill] sm:$0xff] }
 0x277   :  { %v3056_v26 = vadd.f32 %v7403_v59, %v2749_v27 }
 0x278   :  { %v6427_v10 = vpop.f32.mrf.mxu2 }
 0x279   :  { %v3099_v11 = vpop.f32.mrf.mxu3  ;;  %v6429_v45 = vpop.f32.mrf.mxu0 }
 0x27a   :  { %v6431_v18 = vadd.f32 %v3099_v11, %v3051_v35  ;;  %v6433_v6 = vpop.f32.mrf.mxu1 }
 0x280   :  { %v6460_v49 = vpop.f32.mrf.mxu2 }
 0x281   :  { %v3101_v55 = vpop.f32.mrf.mxu3  ;;  %v1910_v62 = vpop.f32.mrf.mxu0 }
 0x282   :  { %v6462_v9 = vadd.f32 %v3101_v55, %v3053_v52  ;;  %v6464_v2 = vpop.f32.mrf.mxu1  ;;  %v4400_v52 = vld [vmem:[%s7359_s3 + $0xf8] sm:$0xf] }
 0x284   :  { %1949 = vmatmul.bf16.gmra.mxu0 %v4057_v29  ;;  %2198 = vmatmul.bf16.gmra.mxu1 %v4061_v53  ;;  %v4696_v29 = vld [vmem:[%s7359_s3 + $0x10c] sm:$0xf0]  ;;  %v3058_v53 = vadd.f32 %v6164_v43, %v2754_v50 }
 0x285   :  { %2447 = vmatmul.bf16.gmra.mxu2 %v4065_v34  ;;  %v4069_v34 = vor.u32 %v4612_v47, %v4068_v41  ;;  %v4401_v20 = vor.u32 %v4696_v29, %v4400_v52  ;;  %v4080_v52 = vld [vmem:[%s7357_s1 + $0x3c0] sm:$0xf] }
 0x286   :  { %3152 = vmatmul.bf16.gmra.mxu3 %v4377_v3  ;;  %v4073_v3 = vor.u32 %v4611_v0, %v4070_v48  ;;  %v7405_v48 = vld [vmem:[#allocation4_spill] sm:$0xff]  ;;  %v4081_v28 = vor.u32 %v4615_v21, %v4080_v52 }
 0x288   :  { %v6467_v38 = vpop.f32.mrf.mxu2 }
 0x289   :  { %v3104_v35 = vpop.f32.mrf.mxu3  ;;  %v1912_v11 = vpop.f32.mrf.mxu0 }
 0x28a   :  { %v6469_v14 = vadd.f32 %v3104_v35, %v3056_v26  ;;  %v2161_v56 = vpop.f32.mrf.mxu1  ;;  %v4077_v26 = vor.u32 %v4613_v31, %v4076_v19  ;;  %v1913_v19 = vadd.f32 %v1912_v11, %v7405_v48  ;;  %v7406_v31 = vld [vmem:[#allocation3_spill] sm:$0xff]  ;;  %v7409_v48 = vld [vmem:[#allocation6_spill] sm:$0xff] }
 0x28b   :  { %v7408_v11 = vld [vmem:[#allocation7_spill] sm:$0xff] }
 0x290   :  { %v2410_v55 = vpop.f32.mrf.mxu2 }
 0x291   :  { %v3106_v27 = vpop.f32.mrf.mxu3  ;;  %v1915_v59 = vpop.f32.mrf.mxu0 }
 0x292   :  { %v6496_v35 = vadd.f32 %v3106_v27, %v3058_v53  ;;  %v2164_v57 = vpop.f32.mrf.mxu1  ;;  %v1916_v43 = vadd.f32 %v1915_v59, %v7404_v23  ;;  %v4088_v23 = vld [vmem:[%s7357_s1 + $0x3c8] sm:$0xf]  ;;  %v2162_v27 = vadd.f32 %v2161_v56, %v1913_v19 }
 0x294   :  { %1954 = vmatmul.bf16.gmra.mxu0 %v4069_v34  ;;  %2203 = vmatmul.bf16.gmra.mxu1 %v4073_v3  ;;  %v2165_v34 = vadd.f32 %v2164_v57, %v1916_v43  ;;  %v4616_v57 = vld [vmem:[%s7357_s1 + $0x3d0] sm:$0xf0]  ;;  %v1908_v3 = vadd.f32 %v6429_v45, %v7408_v11  ;;  %v4424_v43 = vld [vmem:[%s7359_s3 + $0x128] sm:$0xf] }
 0x295   :  { %2452 = vmatmul.bf16.gmra.mxu2 %v4077_v26 }
 0x296   :  { %3157 = vmatmul.bf16.gmra.mxu3 %v4401_v20  ;;  %v7407_v20 = vld [vmem:[#allocation5_spill] sm:$0xff] }
 0x297   :  { %v1911_v29 = vadd.f32 %v1910_v62, %v7407_v20  ;;  %v2764_v62 = vpop.permute.xlu2 %2763 }
 0x298   :  { %v2413_v60 = vpop.f32.mrf.mxu2 }
 0x299   :  { %v3109_v50 = vpop.f32.mrf.mxu3  ;;  %v1917_v41 = vpop.f32.mrf.mxu0  ;;  %v2414_v59 = vadd.f32 %v2413_v60, %v2165_v34  ;;  %v2160_v45 = vadd.f32 %v6464_v2, %v1911_v29  ;;  %v2411_v60 = vadd.f32 %v2410_v55, %v2162_v27  ;;  %v7410_v34 = vld [vmem:[#allocation8_spill] sm:$0xff] }
 0x29a   :  { %v6500_v47 = vadd.f32 %v3109_v50, %v3061_v61  ;;  %v2166_v0 = vpop.f32.mrf.mxu1  ;;  %v1918_v53 = vadd.f32 %v1917_v41, %v7406_v31  ;;  %v4614_v61 = vld [vmem:[%s7357_s1 + $0x3c4] sm:$0xf]  ;;  %v4702_v50 = vld [vmem:[%s7359_s3 + $0x13c] sm:$0xf0]  ;;  %v3063_v41 = vadd.f32 %v6211_v12, %v2764_v62  ;;  %v1906_v31 = vadd.f32 %v6420_v58, %v7409_v48 }
 0x29b   :  { %v4085_v36 = vor.u32 %v4614_v61, %v4082_v42  ;;  %v1903_v11 = vadd.f32 %v6387_v7, %v7410_v34  ;;  %v4425_v32 = vor.u32 %v4702_v50, %v4424_v43  ;;  %v2157_v58 = vadd.f32 %v6433_v6, %v1908_v3  ;;  %v7412_v43 = vld [vmem:[#allocation25_spill] sm:$0xff]  ;;  %v4618_v48 = vld [vmem:[%s7357_s1 + $0x3e0] sm:$0xf0] }
 0x29c   :  { %v2167_v26 = vadd.f32 %v2166_v0, %v1918_v53  ;;  %v4089_v53 = vor.u32 %v4616_v57, %v4088_v23  ;;  %v2409_v52 = vadd.f32 %v6467_v38, %v2160_v45  ;;  %v2560_v21 = vmax.f32 %v2414_v59, 0.0  ;;  %v2769_v23 = vpop.permute.xlu0 %2768  ;;  %v4100_v45 = vld [vmem:[%s7357_s1 + $0x3e0] sm:$0xf] }
 0x29d   :  { %v2155_v29 = vadd.f32 %v6424_v8, %v1906_v31  ;;  %v2406_v61 = vadd.f32 %v6460_v49, %v2157_v58  ;;  %v2559_v7 = vmax.f32 %v2411_v60, 0.0  ;;  %v3066_v38 = vadd.f32 %v6229_v15, %v2769_v23  ;;  %v4092_v15 = vld [vmem:[%s7357_s1 + $0x3d8] sm:$0xf]  ;;  %v4617_v31 = vld [vmem:[%s7357_s1 + $0x3dc] sm:$0xf] }
 0x29e   :  { %v2558_v57 = vmax.f32 %v2409_v52, 0.0  ;;  %v4619_v60 = vld [vmem:[%s7357_s1 + $0x3e8] sm:$0xf0] }
 0x29f   :  { %v2404_v6 = vadd.f32 %v6427_v10, %v2155_v29  ;;  %v2557_v3 = vmax.f32 %v2406_v61, 0.0  ;;  %v7413_v29 = vld [vmem:[#allocation21_spill] sm:$0xff] }
 0x2a0   :  { %v2415_v20 = vpop.f32.mrf.mxu2  ;;  %v2624_v59 = vpack.c.bf16 %v2559_v7, %v2558_v57  ;;  %v2779_v57 = vpop.permute.xlu2 %2778 }
 0x2a1   :  { %v2416_v56 = vadd.f32 %v2415_v20, %v2167_v26  ;;  %v3111_v0 = vpop.f32.mrf.mxu3  ;;  %v1920_v19 = vpop.f32.mrf.mxu0  ;;  %v2556_v50 = vmax.f32 %v2404_v6, 0.0  ;;  %v4094_v20 = vld [vmem:[%s7357_s1 + $0x3e4] sm:$0xf0] }
 0x2a2   :  { %v6537_v54 = vadd.f32 %v3111_v0, %v3063_v41  ;;  %v1921_v12 = vadd.f32 %v1920_v19, %v7411_v39  ;;  %v2169_v62 = vpop.f32.mrf.mxu1  ;;  %v2152_v39 = vadd.f32 %v6391_v33, %v1903_v11  ;;  %v2554_v0 = vmax.f32 %v6385_v5, 0.0  ;;  %v4448_v19 = vld [vmem:[%s7359_s3 + $0x158] sm:$0xf] }
 0x2a3   :  { %v2561_v2 = vmax.f32 %v2416_v56, 0.0  ;;  %v2774_v56 = vpop.permute.xlu1 %2773 }
 0x2a4   :  { %v2170_v55 = vadd.f32 %v2169_v62, %v1921_v12  ;;  %1959 = vmatmul.bf16.gmra.mxu0 %v4081_v28  ;;  %2208 = vmatmul.bf16.gmra.mxu1 %v4085_v36  ;;  %v2401_v28 = vadd.f32 %v6418_v63, %v2152_v39  ;;  %v2623_v63 = vpack.c.bf16 %v2557_v3, %v2556_v50  ;;  %v4106_v50 = vld [vmem:[%s7357_s1 + $0x3fc] sm:$0xf0] }
 0x2a5   :  { %v2625_v42 = vpack.c.bf16 %v2561_v2, %v2560_v21  ;;  %2457 = vmatmul.bf16.gmra.mxu2 %v4089_v53  ;;  %v4708_v53 = vld [vmem:[%s7359_s3 + $0x16c] sm:$0xf0]  ;;  %v3068_v34 = vadd.f32 %v6261_v44, %v2774_v56  ;;  %v4093_v12 = vor.u32 %v4618_v48, %v4092_v15  ;;  %v4097_v62 = vor.u32 %v4617_v31, %v4094_v20  ;;  %v4663_v15 = vld [vmem:[%s7359_s3 + $0xc] sm:$0xf] }
 0x2a6   :  { %3162 = vmatmul.bf16.gmra.mxu3 %v4425_v32  ;;  %v2555_v10 = vmax.f32 %v2401_v28, 0.0 }
 0x2a7   :  { %3173 = vmatpush.bf16.msrb.mxu3 %v2625_v42  ;;  %v4449_v42 = vor.u32 %v4708_v53, %v4448_v19 }
 0x2a8   :  { %v2418_v36 = vpop.f32.mrf.mxu2  ;;  %v2622_v2 = vpack.c.bf16 %v2555_v10, %v2554_v0  ;;  %v4622_v10 = vld [vmem:[%s7357_s1 + $0x400] sm:$0xf0] }
 0x2a9   :  { %v2419_v8 = vadd.f32 %v2418_v36, %v2170_v55  ;;  %v3114_v27 = vpop.f32.mrf.mxu3  ;;  %v1922_v49 = vpop.f32.mrf.mxu0  ;;  %v4101_v55 = vor.u32 %v4619_v60, %v4100_v45 }
 0x2aa   :  { %v6548_v26 = vadd.f32 %v3114_v27, %v3066_v38  ;;  %v1923_v33 = vadd.f32 %v1922_v49, %v7412_v43  ;;  %v2171_v32 = vpop.f32.mrf.mxu1  ;;  %v3071_v38 = vadd.f32 %v6271_v40, %v2779_v57  ;;  %v4621_v40 = vld [vmem:[%s7357_s1 + $0x3f8] sm:$0xf0]  ;;  %v4623_v57 = vld [vmem:[%s7357_s1 + $0x40c] sm:$0xf] }
 0x2ab   :  { %3174 = vmatpush.bf16.msrb.mxu3 %v2624_v59  ;;  %v2562_v39 = vmax.f32 %v2419_v8, 0.0  ;;  %v7414_v8 = vld [vmem:[#allocation24_spill] sm:$0xff] }
 0x2ac   :  { %v2172_v41 = vadd.f32 %v2171_v32, %v1923_v33  ;;  %v4104_v32 = vld [vmem:[%s7357_s1 + $0x3f0] sm:$0xf] }
 0x2ad   :  { %v4105_v20 = vor.u32 %v4621_v40, %v4104_v32 }
 0x2af   :  { %3175 = vmatpush.bf16.msrb.mxu3 %v2623_v63  ;;  %v4282_v63 = vld [vmem:[%s7359_s3 + $0x20] sm:$0xf0] }
 0x2b0   :  { %v2420_v11 = vpop.f32.mrf.mxu2 }
 0x2b1   :  { %v2421_v58 = vadd.f32 %v2420_v11, %v2172_v41  ;;  %v3116_v52 = vpop.f32.mrf.mxu3  ;;  %v1925_v21 = vpop.f32.mrf.mxu0 }
 0x2b2   :  { %v6577_v5 = vadd.f32 %v3116_v52, %v3068_v34  ;;  %v1926_v61 = vadd.f32 %v1925_v21, %v7413_v29  ;;  %v2174_v7 = vpop.f32.mrf.mxu1  ;;  %v2784_v41 = vpop.permute.xlu0 %2783 }
 0x2b3   :  { %v2563_v23 = vmax.f32 %v2421_v58, 0.0  ;;  %3176 = vmatpush.bf16.msrb.mxu3 %v2622_v2  ;;  %v3073_v48 = vadd.f32 %v6304_v1, %v2784_v41 }
 0x2b4   :  { %v2175_v6 = vadd.f32 %v2174_v7, %v1926_v61  ;;  %1964 = vmatmul.bf16.gmra.mxu0 %v4093_v12  ;;  %2213 = vmatmul.bf16.gmra.mxu1 %v4097_v62  ;;  %v4285_v12 = vor.u32 %v4663_v15, %v4282_v63  ;;  %v7416_v7 = vld [vmem:[#allocation19_spill] sm:$0xff] }
 0x2b5   :  { %2462 = vmatmul.bf16.gmra.mxu2 %v4101_v55  ;;  %v6580_v44 = vpack.c.bf16 %v2563_v23, %v2562_v39 }
 0x2b6   :  { %3167 = vmatmul.bf16.gmra.mxu3 %v4449_v42 }
 0x2b7   :  { %3177 = vmatpush.bf16.msrb.mxu3 %v6382_v13  ;;  %v4620_v13 = vld [vmem:[%s7357_s1 + $0x3f4] sm:$0xf] }
 0x2b8   :  { %v2423_v28 = vpop.f32.mrf.mxu2  ;;  %v4109_v45 = vor.u32 %v4620_v13, %v4106_v50  ;;  %v7417_v50 = vld [vmem:[#allocation16_spill] sm:$0xff] }
 0x2b9   :  { %v2424_v36 = vadd.f32 %v2423_v28, %v2175_v6  ;;  %v3119_v3 = vpop.f32.mrf.mxu3  ;;  %v1927_v27 = vpop.f32.mrf.mxu0  ;;  %v4624_v6 = vld [vmem:[%s7357_s1 + $0x410] sm:$0xf0]  ;;  %v4625_v28 = vld [vmem:[%s7357_s1 + $0x418] sm:$0xf0] }
 0x2ba   :  { %v6584_v49 = vadd.f32 %v3119_v3, %v3071_v38  ;;  %v1928_v59 = vadd.f32 %v1927_v27, %v7414_v8  ;;  %v2176_v43 = vpop.f32.mrf.mxu1  ;;  %v4124_v38 = vld [vmem:[%s7357_s1 + $0x410] sm:$0xf]  ;;  %v4306_v3 = vld [vmem:[%s7359_s3 + $0x50] sm:$0xf0] }
 0x2bb   :  { %3178 = vmatpush.bf16.msrb.mxu3 %v6348_v46  ;;  %v4112_v46 = vld [vmem:[%s7357_s1 + $0x3f8] sm:$0xf]  ;;  %v2564_v62 = vmax.f32 %v2424_v36, 0.0  ;;  %v4669_v36 = vld [vmem:[%s7359_s3 + $0x3c] sm:$0xf]  ;;  %v4125_v40 = vor.u32 %v4625_v28, %v4124_v38 }
 0x2bc   :  { %v2177_v33 = vadd.f32 %v2176_v43, %v1928_v59  ;;  %v4113_v19 = vor.u32 %v4622_v10, %v4112_v46  ;;  %v4309_v41 = vor.u32 %v4669_v36, %v4306_v3 }
 0x2bf   :  { %3179 = vmatpush.bf16.msrb.mxu3 %v6312_v22  ;;  %v7415_v22 = vld [vmem:[#allocation20_spill] sm:$0xff] }
 0x2c0   :  { %v2425_v31 = vpop.f32.mrf.mxu2 }
 0x2c1   :  { %v2426_v60 = vadd.f32 %v2425_v31, %v2177_v33  ;;  %v3121_v56 = vpop.f32.mrf.mxu3  ;;  %v1930_v0 = vpop.f32.mrf.mxu0 }
 0x2c2   :  { %v6614_v53 = vadd.f32 %v3121_v56, %v3073_v48  ;;  %v1931_v34 = vadd.f32 %v1930_v0, %v7415_v22  ;;  %v2179_v11 = vpop.f32.mrf.mxu1  ;;  %v7418_v0 = vld [vmem:[#allocation18_spill] sm:$0xff] }
 0x2c3   :  { %v2565_v58 = vmax.f32 %v2426_v60, 0.0  ;;  %3180 = vmatpush.bf16.msrb.mxu3 %v6266_v51  ;;  %v4116_v51 = vld [vmem:[%s7357_s1 + $0x408] sm:$0xf] }
 0x2c4   :  { %v2180_v52 = vadd.f32 %v2179_v11, %v1931_v34  ;;  %1969 = vmatmul.bf16.gmra.mxu0 %v4105_v20  ;;  %2218 = vmatmul.bf16.gmra.mxu1 %v4109_v45  ;;  %v4117_v8 = vor.u32 %v4624_v6, %v4116_v51  ;;  %v4128_v11 = vld [vmem:[%s7357_s1 + $0x420] sm:$0xf] }
 0x2c5   :  { %2467 = vmatmul.bf16.gmra.mxu2 %v4113_v19  ;;  %v6618_v1 = vpack.c.bf16 %v2565_v58, %v2564_v62  ;;  %v4626_v62 = vld [vmem:[%s7357_s1 + $0x424] sm:$0xf]  ;;  %v4136_v58 = vld [vmem:[%s7357_s1 + $0x428] sm:$0xf] }
 0x2c6   :  { %3181 = vmatmul.bf16.vlgmr.msrb.gmra.mxu3 %v4285_v12  ;;  %v4627_v12 = vld [vmem:[%s7357_s1 + $0x428] sm:$0xf0] }
 0x2c8   :  { %v2428_v21 = vpop.f32.mrf.mxu2 }
 0x2c9   :  { %v2429_v2 = vadd.f32 %v2428_v21, %v2180_v52  ;;  %v3133_v55 = vpop.f32.mrf.mxu3  ;;  %v1932_v29 = vpop.f32.mrf.mxu0  ;;  %v4628_v52 = vld [vmem:[%s7357_s1 + $0x430] sm:$0xf0]  ;;  %v4675_v21 = vld [vmem:[%s7359_s3 + $0x6c] sm:$0xf] }
 0x2ca   :  { %v6621_v61 = vadd.f32 %v3133_v55, %v6315_v4  ;;  %v1933_v42 = vadd.f32 %v1932_v29, %v7416_v7  ;;  %v2181_v39 = vpop.f32.mrf.mxu1  ;;  %v4118_v4 = vld [vmem:[%s7357_s1 + $0x414] sm:$0xf0]  ;;  %v4129_v29 = vor.u32 %v4627_v12, %v4128_v11  ;;  %v4137_v51 = vor.u32 %v4628_v52, %v4136_v58 }
 0x2cb   :  { %v4121_v59 = vor.u32 %v4623_v57, %v4118_v4  ;;  %v2566_v15 = vmax.f32 %v2429_v2, 0.0  ;;  %v4330_v2 = vld [vmem:[%s7359_s3 + $0x80] sm:$0xf0]  ;;  %v7419_v57 = vld [vmem:[#allocation15_spill] sm:$0xff] }
 0x2cc   :  { %v2182_v23 = vadd.f32 %v2181_v39, %v1933_v42  ;;  %v4333_v28 = vor.u32 %v4675_v21, %v4330_v2  ;;  %v4633_v21 = vld [vmem:[%s7357_s1 + $0x458] sm:$0xf0]  ;;  %v4632_v2 = vld [vmem:[%s7357_s1 + $0x454] sm:$0xf] }
 0x2d0   :  { %v2430_v27 = vpop.f32.mrf.mxu2 }
 0x2d1   :  { %v2431_v43 = vadd.f32 %v2430_v27, %v2182_v23  ;;  %v3135_v33 = vpop.f32.mrf.mxu3  ;;  %v1935_v32 = vpop.f32.mrf.mxu0 }
 0x2d2   :  { %v6649_v13 = vadd.f32 %v3135_v33, %v6345_v17  ;;  %v1936_v46 = vadd.f32 %v1935_v32, %v7417_v50  ;;  %v2184_v10 = vpop.f32.mrf.mxu1  ;;  %v4140_v50 = vld [vmem:[%s7357_s1 + $0x438] sm:$0xf] }
 0x2d3   :  { %v2567_v63 = vmax.f32 %v2431_v43, 0.0 }
 0x2d4   :  { %v2185_v48 = vadd.f32 %v2184_v10, %v1936_v46  ;;  %1974 = vmatmul.bf16.gmra.mxu0 %v4117_v8  ;;  %2223 = vmatmul.bf16.gmra.mxu1 %v4121_v59  ;;  %v4630_v46 = vld [vmem:[%s7357_s1 + $0x440] sm:$0xf0]  ;;  %v4629_v10 = vld [vmem:[%s7357_s1 + $0x43c] sm:$0xf] }
 0x2d5   :  { %2472 = vmatmul.bf16.gmra.mxu2 %v4125_v40  ;;  %v6652_v31 = vpack.c.bf16 %v2567_v63, %v2566_v15  ;;  %v4631_v15 = vld [vmem:[%s7357_s1 + $0x448] sm:$0xf0]  ;;  %v4681_v63 = vld [vmem:[%s7359_s3 + $0x9c] sm:$0xf] }
 0x2d6   :  { %3186 = vmatmul.bf16.gmra.mxu3 %v4309_v41  ;;  %v4142_v41 = vld [vmem:[%s7357_s1 + $0x444] sm:$0xf0] }
 0x2d8   :  { %v2433_v20 = vpop.f32.mrf.mxu2 }
 0x2d9   :  { %v2434_v45 = vadd.f32 %v2433_v20, %v2185_v48  ;;  %v3138_v60 = vpop.f32.mrf.mxu3  ;;  %v1937_v56 = vpop.f32.mrf.mxu0  ;;  %v4354_v48 = vld [vmem:[%s7359_s3 + $0xb0] sm:$0xf0] }
 0x2da   :  { %v6655_v17 = vadd.f32 %v3138_v60, %v6351_v25  ;;  %v1938_v19 = vadd.f32 %v1937_v56, %v7418_v0  ;;  %v2186_v22 = vpop.f32.mrf.mxu1  ;;  %v4130_v25 = vld [vmem:[%s7357_s1 + $0x42c] sm:$0xf0]  ;;  %v4145_v60 = vor.u32 %v4629_v10, %v4142_v41  ;;  %v4357_v11 = vor.u32 %v4681_v63, %v4354_v48  ;;  %v4164_v10 = vld [vmem:[%s7357_s1 + $0x468] sm:$0xf]  ;;  %v4635_v41 = vld [vmem:[%s7357_s1 + $0x46c] sm:$0xf] }
 0x2db   :  { %v4133_v7 = vor.u32 %v4626_v62, %v4130_v25  ;;  %v2568_v36 = vmax.f32 %v2434_v45, 0.0  ;;  %v4141_v45 = vor.u32 %v4630_v46, %v4140_v50  ;;  %v4693_v63 = vld [vmem:[%s7359_s3 + $0xfc] sm:$0xf]  ;;  %v4402_v48 = vld [vmem:[%s7359_s3 + $0x110] sm:$0xf0] }
 0x2dc   :  { %v2187_v34 = vadd.f32 %v2186_v22, %v1938_v19 }
 0x2e0   :  { %v2435_v55 = vpop.f32.mrf.mxu2 }
 0x2e1   :  { %v2436_v42 = vadd.f32 %v2435_v55, %v2187_v34  ;;  %v3140_v39 = vpop.f32.mrf.mxu3  ;;  %v1940_v23 = vpop.f32.mrf.mxu0  ;;  %v4154_v55 = vld [vmem:[%s7357_s1 + $0x45c] sm:$0xf0] }
 0x2e2   :  { %v6683_v6 = vadd.f32 %v3140_v39, %v6379_v37  ;;  %v1941_v4 = vadd.f32 %v1940_v23, %v7419_v57  ;;  %v2189_v38 = vpop.f32.mrf.mxu1 }
 0x2e3   :  { %v2569_v3 = vmax.f32 %v2436_v42, 0.0  ;;  %v4378_v42 = vld [vmem:[%s7359_s3 + $0xe0] sm:$0xf0] }
 0x2e4   :  { %v2190_v27 = vadd.f32 %v2189_v38, %v1941_v4  ;;  %1979 = vmatmul.bf16.gmra.mxu0 %v4129_v29  ;;  %2228 = vmatmul.bf16.gmra.mxu1 %v4133_v7  ;;  %v4634_v29 = vld [vmem:[%s7357_s1 + $0x460] sm:$0xf0]  ;;  %v4687_v7 = vld [vmem:[%s7359_s3 + $0xcc] sm:$0xf] }
 0x2e5   :  { %2477 = vmatmul.bf16.gmra.mxu2 %v4137_v51  ;;  %v6686_v8 = vpack.c.bf16 %v2569_v3, %v2568_v36  ;;  %v4157_v51 = vor.u32 %v4632_v2, %v4154_v55  ;;  %v4381_v3 = vor.u32 %v4687_v7, %v4378_v42  ;;  %v4405_v2 = vor.u32 %v4693_v63, %v4402_v48  ;;  %v4699_v48 = vld [vmem:[%s7359_s3 + $0x12c] sm:$0xf] }
 0x2e6   :  { %3191 = vmatmul.bf16.gmra.mxu3 %v4333_v28 }
 0x2e8   :  { %v2438_v59 = vpop.f32.mrf.mxu2 }
 0x2e9   :  { %v6688_v43 = vadd.f32 %v2438_v59, %v2190_v27  ;;  %v3143_v33 = vpop.f32.mrf.mxu3  ;;  %v6690_v32 = vpop.f32.mrf.mxu0 }
 0x2ea   :  { %v6693_v37 = vadd.f32 %v3143_v33, %v6389_v24  ;;  %v6695_v40 = vpop.f32.mrf.mxu1  ;;  %v4148_v24 = vld [vmem:[%s7357_s1 + $0x440] sm:$0xf] }
 0x2eb   :  { %v4149_v19 = vor.u32 %v4631_v15, %v4148_v24  ;;  %v4166_v24 = vld [vmem:[%s7357_s1 + $0x474] sm:$0xf0]  ;;  %v4637_v15 = vld [vmem:[%s7357_s1 + $0x478] sm:$0xf0] }
 0x2f0   :  { %v6721_v20 = vpop.f32.mrf.mxu2 }
 0x2f1   :  { %v3145_v56 = vpop.f32.mrf.mxu3  ;;  %v6723_v0 = vpop.f32.mrf.mxu0 }
 0x2f2   :  { %v6726_v22 = vadd.f32 %v3145_v56, %v6422_v16  ;;  %v6728_v34 = vpop.f32.mrf.mxu1  ;;  %v4152_v16 = vld [vmem:[%s7357_s1 + $0x450] sm:$0xf]  ;;  %v4169_v56 = vor.u32 %v4635_v41, %v4166_v24  ;;  %v7424_v41 = vld [vmem:[#allocation13_spill] sm:$0xff] }
 0x2f3   :  { %v4153_v23 = vor.u32 %v4633_v21, %v4152_v16 }
 0x2f4   :  { %1984 = vmatmul.bf16.gmra.mxu0 %v4141_v45  ;;  %2233 = vmatmul.bf16.gmra.mxu1 %v4145_v60 }
 0x2f5   :  { %2482 = vmatmul.bf16.gmra.mxu2 %v4149_v19 }
 0x2f6   :  { %3196 = vmatmul.bf16.gmra.mxu3 %v4357_v11 }
 0x2f8   :  { %v6730_v12 = vpop.f32.mrf.mxu2 }
 0x2f9   :  { %v3148_v62 = vpop.f32.mrf.mxu3  ;;  %v1947_v25 = vpop.f32.mrf.mxu0 }
 0x2fa   :  { %v6733_v58 = vadd.f32 %v3148_v62, %v6431_v18  ;;  %v6735_v52 = vpop.f32.mrf.mxu1  ;;  %v4160_v18 = vld [vmem:[%s7357_s1 + $0x458] sm:$0xf]  ;;  %v1948_v24 = vadd.f32 %v1947_v25, %v7424_v41 }
 0x2fb   :  { %v4161_v38 = vor.u32 %v4634_v29, %v4160_v18  ;;  %v7420_v18 = vld [vmem:[#allocation9_spill] sm:$0xff] }
 0x300   :  { %v6761_v39 = vpop.f32.mrf.mxu2 }
 0x301   :  { %v3150_v57 = vpop.f32.mrf.mxu3  ;;  %v1950_v4 = vpop.f32.mrf.mxu0 }
 0x302   :  { %v6764_v28 = vadd.f32 %v3150_v57, %v6462_v9  ;;  %v2199_v36 = vpop.f32.mrf.mxu1  ;;  %v4636_v9 = vld [vmem:[%s7357_s1 + $0x470] sm:$0xf0] }
 0x303   :  { %v4165_v60 = vor.u32 %v4636_v9, %v4164_v10  ;;  %v7421_v57 = vld [vmem:[#allocation12_spill] sm:$0xff] }
 0x304   :  { %1989 = vmatmul.bf16.gmra.mxu0 %v4153_v23  ;;  %2238 = vmatmul.bf16.gmra.mxu1 %v4157_v51 }
 0x305   :  { %2487 = vmatmul.bf16.gmra.mxu2 %v4161_v38 }
 0x306   :  { %3201 = vmatmul.bf16.gmra.mxu3 %v4381_v3  ;;  %v7422_v3 = vld [vmem:[#allocation11_spill] sm:$0xff] }
 0x308   :  { %v2448_v27 = vpop.f32.mrf.mxu2 }
 0x309   :  { %v3153_v59 = vpop.f32.mrf.mxu3  ;;  %v1952_v33 = vpop.f32.mrf.mxu0 }
 0x30a   :  { %v6767_v50 = vadd.f32 %v3153_v59, %v6469_v14  ;;  %v2201_v46 = vpop.f32.mrf.mxu1  ;;  %v4172_v14 = vld [vmem:[%s7357_s1 + $0x470] sm:$0xf]  ;;  %v1953_v38 = vadd.f32 %v1952_v33, %v7421_v57  ;;  %v7423_v59 = vld [vmem:[#allocation10_spill] sm:$0xff] }
 0x30b   :  { %v4173_v62 = vor.u32 %v4637_v15, %v4172_v14  ;;  %v1951_v10 = vadd.f32 %v1950_v4, %v7423_v59  ;;  %v7425_v33 = vld [vmem:[#allocation14_spill] sm:$0xff] }
 0x30c   :  { %v2202_v14 = vadd.f32 %v2201_v46, %v1953_v38  ;;  %v7426_v46 = vld [vmem:[#allocation17_spill] sm:$0xff] }
 0x310   :  { %v2450_v45 = vpop.f32.mrf.mxu2 }
 0x311   :  { %v3155_v19 = vpop.f32.mrf.mxu3  ;;  %v1955_v11 = vpop.f32.mrf.mxu0  ;;  %v2451_v4 = vadd.f32 %v2450_v45, %v2202_v14 }
 0x312   :  { %v6794_v16 = vadd.f32 %v3155_v19, %v6496_v35  ;;  %v2204_v21 = vpop.f32.mrf.mxu1  ;;  %v1956_v29 = vadd.f32 %v1955_v11, %v7420_v18  ;;  %v2200_v19 = vadd.f32 %v2199_v36, %v1951_v10 }
 0x314   :  { %1994 = vmatmul.bf16.gmra.mxu0 %v4165_v60  ;;  %2243 = vmatmul.bf16.gmra.mxu1 %v4169_v56  ;;  %v2205_v9 = vadd.f32 %v2204_v21, %v1956_v29  ;;  %v1946_v56 = vadd.f32 %v6723_v0, %v7425_v33  ;;  %v1943_v21 = vadd.f32 %v6690_v32, %v7426_v46 }
 0x315   :  { %2492 = vmatmul.bf16.gmra.mxu2 %v4173_v62 }
 0x316   :  { %3206 = vmatmul.bf16.gmra.mxu3 %v4405_v2  ;;  %v2195_v45 = vadd.f32 %v6728_v34, %v1946_v56 }
 0x318   :  { %v2453_v55 = vpop.f32.mrf.mxu2  ;;  %v2444_v32 = vadd.f32 %v6730_v12, %v2195_v45 }
 0x319   :  { %v3158_v7 = vpop.f32.mrf.mxu3  ;;  %v1957_v42 = vpop.f32.mrf.mxu0  ;;  %v2454_v15 = vadd.f32 %v2453_v55, %v2205_v9  ;;  %v7427_v55 = vld [vmem:[#allocation27_spill] sm:$0xff] }
 0x31a   :  { %v6798_v23 = vadd.f32 %v3158_v7, %v6500_v47  ;;  %v2206_v51 = vpop.f32.mrf.mxu1  ;;  %v1958_v35 = vadd.f32 %v1957_v42, %v7422_v3  ;;  %v4426_v47 = vld [vmem:[%s7359_s3 + $0x140] sm:$0xf0]  ;;  %v2197_v42 = vadd.f32 %v6735_v52, %v1948_v24  ;;  %v2575_v3 = vmax.f32 %v2451_v4, 0.0 }
 0x31b   :  { %v4429_v7 = vor.u32 %v4699_v48, %v4426_v47  ;;  %v2576_v57 = vmax.f32 %v2454_v15, 0.0  ;;  %v2572_v48 = vmax.f32 %v2444_v32, 0.0 }
 0x31c   :  { %v2207_v63 = vadd.f32 %v2206_v51, %v1958_v35  ;;  %v2449_v51 = vadd.f32 %v2448_v27, %v2200_v19  ;;  %v2446_v38 = vadd.f32 %v6761_v39, %v2197_v42  ;;  %v7428_v39 = vld [vmem:[#allocation26_spill] sm:$0xff] }
 0x31e   :  { %v2574_v59 = vmax.f32 %v2449_v51, 0.0  ;;  %v2573_v27 = vmax.f32 %v2446_v38, 0.0  ;;  %v4288_v38 = vld [vmem:[%s7359_s3 + $0x10] sm:$0xf] }
 0x320   :  { %v2455_v60 = vpop.f32.mrf.mxu2  ;;  %v2632_v9 = vpack.c.bf16 %v2575_v3, %v2574_v59  ;;  %v2631_v47 = vpack.c.bf16 %v2573_v27, %v2572_v48  ;;  %v7430_v59 = vld [vmem:[#allocation39_spill] sm:$0xff] }
 0x321   :  { %v2456_v11 = vadd.f32 %v2455_v60, %v2207_v63  ;;  %v3160_v62 = vpop.f32.mrf.mxu3  ;;  %v1960_v25 = vpop.f32.mrf.mxu0  ;;  %v2570_v60 = vmax.f32 %v6688_v43, 0.0 }
 0x322   :  { %v6815_v2 = vadd.f32 %v3160_v62, %v6537_v54  ;;  %v1961_v18 = vadd.f32 %v1960_v25, %v7427_v55  ;;  %v2209_v29 = vpop.f32.mrf.mxu1  ;;  %v2192_v54 = vadd.f32 %v6695_v40, %v1943_v21 }
 0x323   :  { %v2577_v0 = vmax.f32 %v2456_v11, 0.0 }
 0x324   :  { %v2210_v36 = vadd.f32 %v2209_v29, %v1961_v18  ;;  %v2441_v52 = vadd.f32 %v6721_v20, %v2192_v54  ;;  %v4705_v20 = vld [vmem:[%s7359_s3 + $0x15c] sm:$0xf] }
 0x325   :  { %v2633_v35 = vpack.c.bf16 %v2577_v0, %v2576_v57  ;;  %v7429_v0 = vld [vmem:[#allocation40_spill] sm:$0xff] }
 0x326   :  { %3211 = vmatmul.bf16.gmra.mxu3 %v4429_v7  ;;  %v2571_v12 = vmax.f32 %v2441_v52, 0.0 }
 0x327   :  { %3222 = vmatpush.bf16.msra.mxu3 %v2633_v35 }
 0x328   :  { %v2458_v10 = vpop.f32.mrf.mxu2  ;;  %v2630_v56 = vpack.c.bf16 %v2571_v12, %v2570_v60 }
 0x329   :  { %v2459_v41 = vadd.f32 %v2458_v10, %v2210_v36  ;;  %v3163_v24 = vpop.f32.mrf.mxu3  ;;  %v1962_v14 = vpop.f32.mrf.mxu0 }
 0x32a   :  { %v6825_v34 = vadd.f32 %v3163_v24, %v6548_v26  ;;  %v1963_v15 = vadd.f32 %v1962_v14, %v7428_v39  ;;  %v2211_v63 = vpop.f32.mrf.mxu1  ;;  %v4450_v26 = vld [vmem:[%s7359_s3 + $0x170] sm:$0xf0] }
 0x32b   :  { %3223 = vmatpush.bf16.msra.mxu3 %v2632_v9  ;;  %v4453_v46 = vor.u32 %v4705_v20, %v4450_v26  ;;  %v2578_v21 = vmax.f32 %v2459_v41, 0.0 }
 0x32c   :  { %v2212_v40 = vadd.f32 %v2211_v63, %v1963_v15 }
 0x32f   :  { %3224 = vmatpush.bf16.msra.mxu3 %v2631_v47  ;;  %v4312_v47 = vld [vmem:[%s7359_s3 + $0x40] sm:$0xf] }
 0x330   :  { %v2460_v33 = vpop.f32.mrf.mxu2 }
 0x331   :  { %v2461_v19 = vadd.f32 %v2460_v33, %v2212_v40  ;;  %v3165_v4 = vpop.f32.mrf.mxu3  ;;  %v1965_v11 = vpop.f32.mrf.mxu0 }
 0x332   :  { %v6836_v62 = vadd.f32 %v3165_v4, %v6577_v5  ;;  %v1966_v25 = vadd.f32 %v1965_v11, %v6310_v30  ;;  %v2214_v43 = vpop.f32.mrf.mxu1 }
 0x333   :  { %v2579_v55 = vmax.f32 %v2461_v19, 0.0  ;;  %3225 = vmatpush.bf16.msra.mxu3 %v2630_v56 }
 0x334   :  { %v2215_v18 = vadd.f32 %v2214_v43, %v1966_v25 }
 0x335   :  { %v6839_v29 = vpack.c.bf16 %v2579_v55, %v2578_v21 }
 0x336   :  { %3216 = vmatmul.bf16.gmra.mxu3 %v4453_v46 }
 0x337   :  { %3226 = vmatpush.bf16.msra.mxu3 %v6686_v8  ;;  %v4667_v8 = vld [vmem:[%s7359_s3 + $0x24] sm:$0xf0] }
 0x338   :  { %v2463_v7 = vpop.f32.mrf.mxu2  ;;  %v4289_v52 = vor.u32 %v4667_v8, %v4288_v38 }
 0x339   :  { %v2464_v42 = vadd.f32 %v2463_v7, %v2215_v18  ;;  %v3168_v51 = vpop.f32.mrf.mxu3  ;;  %v1967_v57 = vpop.f32.mrf.mxu0 }
 0x33a   :  { %v6843_v5 = vadd.f32 %v3168_v51, %v6584_v49  ;;  %v1968_v30 = vadd.f32 %v1967_v57, %v7429_v0  ;;  %v2216_v36 = vpop.f32.mrf.mxu1  ;;  %v7433_v57 = vld [vmem:[#allocation37_spill] sm:$0xff] }
 0x33b   :  { %3227 = vmatpush.bf16.msra.mxu3 %v6652_v31 }
 0x33c   :  { %v2217_v45 = vadd.f32 %v2216_v36, %v1968_v30  ;;  %v4336_v36 = vld [vmem:[%s7359_s3 + $0x70] sm:$0xf] }
 0x33f   :  { %3228 = vmatpush.bf16.msra.mxu3 %v6618_v1  ;;  %v2580_v1 = vmax.f32 %v2464_v42, 0.0 }
 0x340   :  { %v2465_v3 = vpop.f32.mrf.mxu2 }
 0x341   :  { %v2466_v35 = vadd.f32 %v2465_v3, %v2217_v45  ;;  %v3170_v49 = vpop.f32.mrf.mxu3  ;;  %v1970_v54 = vpop.f32.mrf.mxu0  ;;  %v4679_v45 = vld [vmem:[%s7359_s3 + $0x84] sm:$0xf0] }
 0x342   :  { %v6855_v32 = vadd.f32 %v3170_v49, %v6614_v53  ;;  %v1971_v31 = vadd.f32 %v1970_v54, %v7430_v59  ;;  %v2219_v10 = vpop.f32.mrf.mxu1  ;;  %v7431_v53 = vld [vmem:[#allocation38_spill] sm:$0xff] }
 0x343   :  { %v2581_v27 = vmax.f32 %v2466_v35, 0.0  ;;  %3229 = vmatpush.bf16.msra.mxu3 %v6580_v44  ;;  %v4673_v44 = vld [vmem:[%s7359_s3 + $0x54] sm:$0xf0] }
 0x344   :  { %v2220_v9 = vadd.f32 %v2219_v10, %v1971_v31  ;;  %v4313_v11 = vor.u32 %v4673_v44, %v4312_v47  ;;  %v4337_v31 = vor.u32 %v4679_v45, %v4336_v36 }
 0x345   :  { %v6859_v41 = vpack.c.bf16 %v2581_v27, %v2580_v1 }
 0x346   :  { %3230 = vmatmul.bf16.vlgmr.msra.gmra.mxu3 %v4289_v52 }
 0x348   :  { %v2468_v24 = vpop.f32.mrf.mxu2 }
 0x349   :  { %v2469_v14 = vadd.f32 %v2468_v24, %v2220_v9  ;;  %v3182_v39 = vpop.f32.mrf.mxu3  ;;  %v1972_v15 = vpop.f32.mrf.mxu0 }
 0x34a   :  { %v6862_v63 = vadd.f32 %v3182_v39, %v6621_v61  ;;  %v1973_v48 = vadd.f32 %v1972_v15, %v7431_v53  ;;  %v2221_v40 = vpop.f32.mrf.mxu1  ;;  %v7432_v61 = vld [vmem:[#allocation35_spill] sm:$0xff]  ;;  %v4360_v53 = vld [vmem:[%s7359_s3 + $0xa0] sm:$0xf] }
 0x34b   :  { %v2582_v25 = vmax.f32 %v2469_v14, 0.0 }
 0x34c   :  { %v2222_v12 = vadd.f32 %v2221_v40, %v1973_v48  ;;  %v4685_v48 = vld [vmem:[%s7359_s3 + $0xb4] sm:$0xf0] }
 0x350   :  { %v2470_v60 = vpop.f32.mrf.mxu2 }
 0x351   :  { %v2471_v20 = vadd.f32 %v2470_v60, %v2222_v12  ;;  %v3184_v26 = vpop.f32.mrf.mxu3  ;;  %v1975_v33 = vpop.f32.mrf.mxu0 }
 0x352   :  { %v6872_v56 = vadd.f32 %v3184_v26, %v6649_v13  ;;  %v1976_v19 = vadd.f32 %v1975_v33, %v7432_v61  ;;  %v2224_v4 = vpop.f32.mrf.mxu1 }
 0x353   :  { %v2583_v43 = vmax.f32 %v2471_v20, 0.0 }
 0x354   :  { %v2225_v46 = vadd.f32 %v2224_v4, %v1976_v19  ;;  %v4384_v4 = vld [vmem:[%s7359_s3 + $0xd0] sm:$0xf] }
 0x355   :  { %v6875_v21 = vpack.c.bf16 %v2583_v43, %v2582_v25 }
 0x356   :  { %3235 = vmatmul.bf16.gmra.mxu3 %v4313_v11 }
 0x358   :  { %v2473_v55 = vpop.f32.mrf.mxu2 }
 0x359   :  { %v2474_v18 = vadd.f32 %v2473_v55, %v2225_v46  ;;  %v3187_v7 = vpop.f32.mrf.mxu3  ;;  %v1977_v42 = vpop.f32.mrf.mxu0 }
 0x35a   :  { %v6878_v51 = vadd.f32 %v3187_v7, %v6655_v17  ;;  %v1978_v13 = vadd.f32 %v1977_v42, %v7433_v57  ;;  %v2226_v0 = vpop.f32.mrf.mxu1  ;;  %v7434_v17 = vld [vmem:[#allocation34_spill] sm:$0xff] }
 0x35b   :  { %v2584_v10 = vmax.f32 %v2474_v18, 0.0 }
 0x35c   :  { %v2227_v30 = vadd.f32 %v2226_v0, %v1978_v13  ;;  %v4408_v0 = vld [vmem:[%s7359_s3 + $0x100] sm:$0xf] }
 0x360   :  { %v2475_v38 = vpop.f32.mrf.mxu2 }
 0x361   :  { %v2476_v8 = vadd.f32 %v2475_v38, %v2227_v30  ;;  %v3189_v3 = vpop.f32.mrf.mxu3  ;;  %v1980_v35 = vpop.f32.mrf.mxu0  ;;  %v4697_v30 = vld [vmem:[%s7359_s3 + $0x114] sm:$0xf0] }
 0x362   :  { %v6888_v49 = vadd.f32 %v3189_v3, %v6683_v6  ;;  %v1981_v54 = vadd.f32 %v1980_v35, %v7434_v17  ;;  %v2229_v59 = vpop.f32.mrf.mxu1  ;;  %v7435_v35 = vld [vmem:[#allocation28_spill] sm:$0xff] }
 0x363   :  { %v2585_v52 = vmax.f32 %v2476_v8, 0.0  ;;  %v4409_v8 = vor.u32 %v4697_v30, %v4408_v0 }
 0x364   :  { %v2230_v1 = vadd.f32 %v2229_v59, %v1981_v54 }
 0x365   :  { %v6891_v27 = vpack.c.bf16 %v2585_v52, %v2584_v10  ;;  %v7436_v10 = vld [vmem:[#allocation31_spill] sm:$0xff] }
 0x366   :  { %3240 = vmatmul.bf16.gmra.mxu3 %v4337_v31 }
 0x368   :  { %v2478_v9 = vpop.f32.mrf.mxu2 }
 0x369   :  { %v6893_v24 = vadd.f32 %v2478_v9, %v2230_v1  ;;  %v3192_v14 = vpop.f32.mrf.mxu3  ;;  %v1982_v39 = vpop.f32.mrf.mxu0  ;;  %v7437_v1 = vld [vmem:[#allocation30_spill] sm:$0xff] }
 0x36a   :  { %v6896_v15 = vadd.f32 %v3192_v14, %v6693_v37  ;;  %v6898_v6 = vpop.f32.mrf.mxu1  ;;  %v4361_v37 = vor.u32 %v4685_v48, %v4360_v53  ;;  %v7438_v14 = vld [vmem:[#allocation29_spill] sm:$0xff] }
 0x370   :  { %v6906_v40 = vpop.f32.mrf.mxu2 }
 0x371   :  { %v3194_v12 = vpop.f32.mrf.mxu3  ;;  %v1985_v47 = vpop.f32.mrf.mxu0 }
 0x372   :  { %v6909_v44 = vadd.f32 %v3194_v12, %v6726_v22  ;;  %v2234_v60 = vpop.f32.mrf.mxu1  ;;  %v4691_v22 = vld [vmem:[%s7359_s3 + $0xe4] sm:$0xf0]  ;;  %v7439_v12 = vld [vmem:[#allocation32_spill] sm:$0xff] }
 0x373   :  { %v4385_v18 = vor.u32 %v4691_v22, %v4384_v4 }
 0x376   :  { %3245 = vmatmul.bf16.gmra.mxu3 %v4361_v37 }
 0x378   :  { %v6911_v20 = vpop.f32.mrf.mxu2 }
 0x379   :  { %v3197_v26 = vpop.f32.mrf.mxu3  ;;  %v1987_v33 = vpop.f32.mrf.mxu0 }
 0x37a   :  { %v6914_v61 = vadd.f32 %v3197_v26, %v6733_v58  ;;  %v2236_v19 = vpop.f32.mrf.mxu1  ;;  %v1988_v37 = vadd.f32 %v1987_v33, %v7439_v12  ;;  %v4664_v12 = vld [vmem:[%s7359_s3 + $0x14] sm:$0xf] }
 0x380   :  { %v2485_v11 = vpop.f32.mrf.mxu2 }
 0x381   :  { %v3199_v25 = vpop.f32.mrf.mxu3  ;;  %v1990_v43 = vpop.f32.mrf.mxu0 }
 0x382   :  { %v6923_v46 = vadd.f32 %v3199_v25, %v6764_v28  ;;  %v2239_v55 = vpop.f32.mrf.mxu1  ;;  %v1991_v53 = vadd.f32 %v1990_v43, %v7438_v14  ;;  %v4432_v25 = vld [vmem:[%s7359_s3 + $0x130] sm:$0xf]  ;;  %v2586_v14 = vmax.f32 %v6893_v24, 0.0 }
 0x384   :  { %v2240_v0 = vadd.f32 %v2239_v55, %v1991_v53 }
 0x386   :  { %3250 = vmatmul.bf16.gmra.mxu3 %v4385_v18 }
 0x388   :  { %v2488_v58 = vpop.f32.mrf.mxu2 }
 0x389   :  { %v3202_v7 = vpop.f32.mrf.mxu3  ;;  %v1992_v42 = vpop.f32.mrf.mxu0 }
 0x38a   :  { %v6926_v57 = vadd.f32 %v3202_v7, %v6767_v50  ;;  %v2241_v13 = vpop.f32.mrf.mxu1  ;;  %v1993_v52 = vadd.f32 %v1992_v42, %v7436_v10  ;;  %v7440_v7 = vld [vmem:[#allocation33_spill] sm:$0xff] }
 0x38b   :  { %v1986_v42 = vadd.f32 %v1985_v47, %v7440_v7 }
 0x38c   :  { %v2242_v26 = vadd.f32 %v2241_v13, %v1993_v52 }
 0x390   :  { %v2490_v28 = vpop.f32.mrf.mxu2 }
 0x391   :  { %v3204_v36 = vpop.f32.mrf.mxu3  ;;  %v1995_v45 = vpop.f32.mrf.mxu0  ;;  %v2491_v43 = vadd.f32 %v2490_v28, %v2242_v26 }
 0x392   :  { %v6935_v38 = vadd.f32 %v3204_v36, %v6794_v16  ;;  %v2244_v3 = vpop.f32.mrf.mxu1  ;;  %v1996_v17 = vadd.f32 %v1995_v45, %v7435_v35  ;;  %v7441_v45 = vld [vmem:[#allocation36_spill] sm:$0xff] }
 0x393   :  { %v1983_v33 = vadd.f32 %v1982_v39, %v7441_v45  ;;  %v2591_v10 = vmax.f32 %v2491_v43, 0.0 }
 0x394   :  { %v2245_v48 = vadd.f32 %v2244_v3, %v1996_v17  ;;  %v2237_v3 = vadd.f32 %v2236_v19, %v1988_v37 }
 0x395   :  { %v2232_v47 = vadd.f32 %v6898_v6, %v1983_v33  ;;  %v4456_v6 = vld [vmem:[%s7359_s3 + $0x160] sm:$0xf] }
 0x396   :  { %3255 = vmatmul.bf16.gmra.mxu3 %v4409_v8 }
 0x397   :  { %v2481_v39 = vadd.f32 %v6906_v40, %v2232_v47  ;;  %v4709_v40 = vld [vmem:[%s7359_s3 + $0x174] sm:$0xf0] }
 0x398   :  { %v2493_v50 = vpop.f32.mrf.mxu2 }
 0x399   :  { %v3207_v54 = vpop.f32.mrf.mxu3  ;;  %v1997_v59 = vpop.f32.mrf.mxu0  ;;  %v2494_v4 = vadd.f32 %v2493_v50, %v2245_v48  ;;  %v2489_v50 = vadd.f32 %v2488_v58, %v2240_v0  ;;  %v4457_v48 = vor.u32 %v4709_v40, %v4456_v6 }
 0x39a   :  { %v6939_v31 = vadd.f32 %v3207_v54, %v6798_v23  ;;  %v1998_v9 = vadd.f32 %v1997_v59, %v7437_v1  ;;  %v2246_v16 = vpop.f32.mrf.mxu1  ;;  %v4703_v23 = vld [vmem:[%s7359_s3 + $0x144] sm:$0xf0]  ;;  %v2235_v54 = vadd.f32 %v2234_v60, %v1986_v42  ;;  %v2486_v59 = vadd.f32 %v2485_v11, %v2237_v3  ;;  %v4386_v3 = vld [vmem:[%s7359_s3 + $0xe8] sm:$0xf0] }
 0x39b   :  { %v4433_v8 = vor.u32 %v4703_v23, %v4432_v25  ;;  %v2592_v35 = vmax.f32 %v2494_v4, 0.0  ;;  %v2590_v28 = vmax.f32 %v2489_v50, 0.0  ;;  %v2587_v60 = vmax.f32 %v2481_v39, 0.0  ;;  %v4314_v4 = vld [vmem:[%s7359_s3 + $0x58] sm:$0xf0] }
 0x39c   :  { %v2247_v22 = vadd.f32 %v2246_v16, %v1998_v9  ;;  %v2484_v55 = vadd.f32 %v6911_v20, %v2235_v54 }
 0x39d   :  { %v2640_v1 = vpack.c.bf16 %v2591_v10, %v2590_v28  ;;  %v2638_v20 = vpack.c.bf16 %v2587_v60, %v2586_v14  ;;  %v4434_v28 = vld [vmem:[%s7359_s3 + $0x148] sm:$0xf0] }
 0x39e   :  { %v2588_v58 = vmax.f32 %v2484_v55, 0.0 }
 0x3a0   :  { %v2495_v18 = vpop.f32.mrf.mxu2 }
 0x3a1   :  { %v2496_v30 = vadd.f32 %v2495_v18, %v2247_v22  ;;  %v3209_v36 = vpop.f32.mrf.mxu3  ;;  %v4338_v18 = vld [vmem:[%s7359_s3 + $0x88] sm:$0xf0] }
 0x3a2   :  { %v6954_v13 = vadd.f32 %v3209_v36, %v6815_v2  ;;  %v2589_v2 = vmax.f32 %v2486_v59, 0.0  ;;  %v4410_v59 = vld [vmem:[%s7359_s3 + $0x118] sm:$0xf0] }
 0x3a3   :  { %v2593_v17 = vmax.f32 %v2496_v30, 0.0  ;;  %v4362_v30 = vld [vmem:[%s7359_s3 + $0xb8] sm:$0xf0] }
 0x3a4   :  { %v2639_v11 = vpack.c.bf16 %v2589_v2, %v2588_v58  ;;  %v4706_v58 = vld [vmem:[%s7359_s3 + $0x164] sm:$0xf] }
 0x3a5   :  { %v2641_v52 = vpack.c.bf16 %v2593_v17, %v2592_v35 }
 0x3a6   :  { %3260 = vmatmul.bf16.gmra.mxu3 %v4433_v8 }
 0x3a7   :  { %3271 = vmatpush.bf16.msrb.mxu3 %v2641_v52 }
 0x3a9   :  { %v3212_v9 = vpop.f32.mrf.mxu3 }
 0x3aa   :  { %v6960_v19 = vadd.f32 %v3212_v9, %v6825_v34 }
 0x3ab   :  { %3272 = vmatpush.bf16.msrb.mxu3 %v2640_v1 }
 0x3af   :  { %3273 = vmatpush.bf16.msrb.mxu3 %v2639_v11 }
 0x3b1   :  { %v3214_v53 = vpop.f32.mrf.mxu3 }
 0x3b2   :  { %v6970_v34 = vadd.f32 %v3214_v53, %v6836_v62  ;;  %v4290_v62 = vld [vmem:[%s7359_s3 + $0x28] sm:$0xf0] }
 0x3b3   :  { %3274 = vmatpush.bf16.msrb.mxu3 %v2638_v20 }
 0x3b6   :  { %3265 = vmatmul.bf16.gmra.mxu3 %v4457_v48 }
 0x3b7   :  { %3275 = vmatpush.bf16.msrb.mxu3 %v6891_v27  ;;  %v4293_v27 = vor.u32 %v4664_v12, %v4290_v62 }
 0x3b9   :  { %v3217_v24 = vpop.f32.mrf.mxu3 }
 0x3ba   :  { %v6974_v16 = vadd.f32 %v3217_v24, %v6843_v5 }
 0x3bb   :  { %3276 = vmatpush.bf16.msrb.mxu3 %v6875_v21 }
 0x3bf   :  { %3277 = vmatpush.bf16.msrb.mxu3 %v6859_v41  ;;  %v4670_v41 = vld [vmem:[%s7359_s3 + $0x44] sm:$0xf] }
 0x3c0   :  { %v4317_v25 = vor.u32 %v4670_v41, %v4314_v4 }
 0x3c1   :  { %v3219_v37 = vpop.f32.mrf.mxu3 }
 0x3c2   :  { %v6985_v26 = vadd.f32 %v3219_v37, %v6855_v32 }
 0x3c3   :  { %3278 = vmatpush.bf16.msrb.mxu3 %v6839_v29 }
 0x3c6   :  { %3279 = vmatmul.bf16.vlgmr.msrb.gmra.mxu3 %v4293_v27 }
 0x3c9   :  { %v3231_v5 = vpop.f32.mrf.mxu3 }
 0x3ca   :  { %v6989_v21 = vadd.f32 %v3231_v5, %v6862_v63  ;;  %v4676_v63 = vld [vmem:[%s7359_s3 + $0x74] sm:$0xf] }
 0x3d1   :  { %v3233_v22 = vpop.f32.mrf.mxu3 }
 0x3d2   :  { %v6998_v32 = vadd.f32 %v3233_v22, %v6872_v56  ;;  %v4341_v56 = vor.u32 %v4676_v63, %v4338_v18 }
 0x3d6   :  { %3284 = vmatmul.bf16.gmra.mxu3 %v4317_v25 }
 0x3d9   :  { %v3236_v29 = vpop.f32.mrf.mxu3 }
 0x3da   :  { %v7001_v23 = vadd.f32 %v3236_v29, %v6878_v51  ;;  %v4682_v51 = vld [vmem:[%s7359_s3 + $0xa4] sm:$0xf] }
 0x3e1   :  { %v3238_v7 = vpop.f32.mrf.mxu3 }
 0x3e2   :  { %v7010_v42 = vadd.f32 %v3238_v7, %v6888_v49  ;;  %v4365_v49 = vor.u32 %v4682_v51, %v4362_v30 }
 0x3e6   :  { %3289 = vmatmul.bf16.gmra.mxu3 %v4341_v56 }
 0x3e9   :  { %v3241_v0 = vpop.f32.mrf.mxu3 }
 0x3ea   :  { %v7013_v43 = vadd.f32 %v3241_v0, %v6896_v15  ;;  %v4688_v15 = vld [vmem:[%s7359_s3 + $0xd4] sm:$0xf] }
 0x3f1   :  { %v3243_v36 = vpop.f32.mrf.mxu3 }
 0x3f2   :  { %v7022_v45 = vadd.f32 %v3243_v36, %v6909_v44  ;;  %v4389_v44 = vor.u32 %v4688_v15, %v4386_v3 }
 0x3f6   :  { %3294 = vmatmul.bf16.gmra.mxu3 %v4365_v49 }
 0x3f9   :  { %v3246_v33 = vpop.f32.mrf.mxu3 }
 0x3fa   :  { %v7025_v8 = vadd.f32 %v3246_v33, %v6914_v61  ;;  %v4694_v61 = vld [vmem:[%s7359_s3 + $0x104] sm:$0xf] }
 0x401   :  { %v3248_v50 = vpop.f32.mrf.mxu3 }
 0x402   :  { %v7034_v35 = vadd.f32 %v3248_v50, %v6923_v46  ;;  %v4413_v46 = vor.u32 %v4694_v61, %v4410_v59 }
 0x406   :  { %3299 = vmatmul.bf16.gmra.mxu3 %v4389_v44 }
 0x409   :  { %v3251_v17 = vpop.f32.mrf.mxu3 }
 0x40a   :  { %v7037_v54 = vadd.f32 %v3251_v17, %v6926_v57  ;;  %v4700_v57 = vld [vmem:[%s7359_s3 + $0x134] sm:$0xf] }
 0x411   :  { %v3253_v10 = vpop.f32.mrf.mxu3 }
 0x412   :  { %v7046_v52 = vadd.f32 %v3253_v10, %v6935_v38  ;;  %v4437_v38 = vor.u32 %v4700_v57, %v4434_v28 }
 0x416   :  { %3304 = vmatmul.bf16.gmra.mxu3 %v4413_v46  ;;  %v4463_v46 = vld [vmem:[%s7360_s5 + $0x88] sm:$0xff] }
 0x419   :  { %v3256_v47 = vpop.f32.mrf.mxu3 }
 0x41a   :  { %v7049_v55 = vadd.f32 %v3256_v47, %v6939_v31  ;;  %v4745_v31 = vmov 1  }
 0x41b   :  { %4715 = vset.pattern.permute.xlu2 %v4745_v31  ;;  %4717 = vset.pattern.permute.xlu0 %v4745_v31 }
 0x421   :  { %v3258_v39 = vpop.f32.mrf.mxu3 }
 0x422   :  { %v7058_v2 = vadd.f32 %v3258_v39, %v6954_v13  ;;  %v4458_v13 = vld [vmem:[%s7359_s3 + $0x178] sm:$0xf0] }
 0x423   :  { %v4461_v14 = vor.u32 %v4706_v58, %v4458_v13 }
 0x426   :  { %3309 = vmatmul.bf16.gmra.mxu3 %v4437_v38 }
 0x429   :  { %v3261_v1 = vpop.f32.mrf.mxu3 }
 0x42a   :  { %v7061_v9 = vadd.f32 %v3261_v1, %v6960_v19 }
 0x431   :  { %v3263_v60 = vpop.f32.mrf.mxu3 }
 0x432   :  { %v7072_v11 = vadd.f32 %v3263_v60, %v6970_v34  ;;  %v7442_v34 = vmov 0  }
 0x436   :  { %3314 = vmatmul.bf16.gmra.mxu3 %v4461_v14 }
 0x439   :  { %v3266_v19 = vpop.f32.mrf.mxu3 }
 0x43a   :  { %v7075_v6 = vadd.f32 %v3266_v19, %v6974_v16 }
 0x441   :  { %v3268_v40 = vpop.f32.mrf.mxu3 }
 0x442   :  { %v7078_v20 = vadd.f32 %v3268_v40, %v6985_v26  ;;  %v3320_v40 = vld [vmem:[%s7360_s5] sm:$0xff] }
 0x449   :  { %v3280_v53 = vpop.f32.mrf.mxu3 }
 0x44a   :  { %v3281_v48 = vadd.f32 %v3280_v53, %v6989_v21  ;;  %v4468_v53 = vld [vmem:[%s7360_s5 + $0xb0] sm:$0xff] }
 0x44c   :  { %3482 = vperm.xlu2 %4715, %v3281_v48   ;;  %3338 = vperm.xlu1 %4713, %v3281_v48   ;;  %v4469_v48 = vld [vmem:[%s7360_s5 + $0xb8] sm:$0xff] }
 0x451   :  { %v3282_v24 = vpop.f32.mrf.mxu3 }
 0x452   :  { %v3283_v12 = vadd.f32 %v3282_v24, %v6998_v32 }
 0x454   :  { %3486 = vperm.xlu0 %4717, %v3283_v12   ;;  %4716 = vset.pattern.permute.xlu2 %v7442_v34 }
 0x455   :  { %3343 = vperm.xlu2 %4716, %v3283_v12   ;;  %4719 = vset.pattern.permute.xlu1 %v4745_v31 }
 0x459   :  { %v3285_v16 = vpop.f32.mrf.mxu3 }
 0x45a   :  { %v3286_v62 = vadd.f32 %v3285_v16, %v7001_v23 }
 0x45c   :  { %4718 = vset.pattern.permute.xlu0 %v7442_v34  ;;  %3490 = vperm.xlu1 %4719, %v3286_v62  }
 0x45d   :  { %3348 = vperm.xlu0 %4718, %v3286_v62   ;;  %4721 = vset.pattern.permute.xlu2 %v4745_v31 }
 0x461   :  { %v3287_v37 = vpop.f32.mrf.mxu3 }
 0x462   :  { %v3288_v26 = vadd.f32 %v3287_v37, %v7010_v42 }
 0x464   :  { %3494 = vperm.xlu2 %4721, %v3288_v26   ;;  %4720 = vset.pattern.permute.xlu1 %v7442_v34 }
 0x465   :  { %3353 = vperm.xlu1 %4720, %v3288_v26  }
 0x469   :  { %v3290_v27 = vpop.f32.mrf.mxu3 }
 0x46a   :  { %v3291_v5 = vadd.f32 %v3290_v27, %v7013_v43 }
 0x46c   :  { %4722 = vset.pattern.permute.xlu2 %v7442_v34 }
 0x46d   :  { %3358 = vperm.xlu2 %4722, %v3291_v5   ;;  %4723 = vset.pattern.permute.xlu1 %v4745_v31 }
 0x46e   :  { %3498 = vperm.xlu1 %4723, %v3291_v5  }
 0x471   :  { %v3292_v21 = vpop.f32.mrf.mxu3 }
 0x472   :  { %v3293_v41 = vadd.f32 %v3292_v21, %v7022_v45 }
 0x474   :  { %3363 = vperm.xlu0 %4718, %v3293_v41  }
 0x475   :  { %4724 = vset.pattern.permute.xlu2 %v4745_v31 }
 0x476   :  { %3502 = vperm.xlu2 %4724, %v3293_v41   ;;  %4725 = vset.pattern.permute.xlu1 %v7442_v34 }
 0x479   :  { %v3295_v4 = vpop.f32.mrf.mxu3 }
 0x47a   :  { %v3296_v22 = vadd.f32 %v3295_v4, %v7025_v8  ;;  %v3322_v4 = vld [vmem:[%s7360_s5 + $0x10] sm:$0xff] }
 0x47c   :  { %4726 = vset.pattern.permute.xlu0 %v4745_v31  ;;  %3368 = vperm.xlu1 %4725, %v3296_v22  }
 0x47d   :  { %3506 = vperm.xlu0 %4726, %v3296_v22   ;;  %v3323_v22 = vld [vmem:[%s7360_s5 + $0x18] sm:$0xff] }
 0x47e   :  { %4727 = vset.pattern.permute.xlu2 %v7442_v34 }
 0x481   :  { %v3297_v32 = vpop.f32.mrf.mxu3 }
 0x482   :  { %v3298_v25 = vadd.f32 %v3297_v32, %v7034_v35  ;;  %v4464_v32 = vld [vmem:[%s7360_s5 + $0x90] sm:$0xff] }
 0x484   :  { %3373 = vperm.xlu2 %4727, %v3298_v25   ;;  %4728 = vset.pattern.permute.xlu1 %v4745_v31 }
 0x485   :  { %3510 = vperm.xlu1 %4728, %v3298_v25   ;;  %4729 = vset.pattern.permute.xlu0 %v7442_v34  ;;  %v4465_v25 = vld [vmem:[%s7360_s5 + $0x98] sm:$0xff] }
 0x489   :  { %v3300_v29 = vpop.f32.mrf.mxu3 }
 0x48a   :  { %v3301_v23 = vadd.f32 %v3300_v29, %v7037_v54 }
 0x48c   :  { %3394 = vperm.xlu0 %4729, %v3301_v23   ;;  %4730 = vset.pattern.permute.xlu2 %v4745_v31 }
 0x48d   :  { %3530 = vperm.xlu2 %4730, %v3301_v23   ;;  %4731 = vset.pattern.permute.xlu1 %v7442_v34 }
 0x491   :  { %v3302_v63 = vpop.f32.mrf.mxu3 }
 0x492   :  { %v3303_v18 = vadd.f32 %v3302_v63, %v7046_v52  ;;  %v4462_v52 = vld [vmem:[%s7360_s5 + $0x80] sm:$0xff] }
 0x494   :  { %4732 = vset.pattern.permute.xlu0 %v4745_v31  ;;  %3399 = vperm.xlu1 %4731, %v3303_v18  }
 0x495   :  { %3534 = vperm.xlu0 %4732, %v3303_v18   ;;  %4733 = vset.pattern.permute.xlu2 %v7442_v34 }
 0x499   :  { %v3305_v7 = vpop.f32.mrf.mxu3 }
 0x49a   :  { %v3306_v42 = vadd.f32 %v3305_v7, %v7049_v55 }
 0x49c   :  { %3404 = vperm.xlu2 %4733, %v3306_v42   ;;  %4734 = vset.pattern.permute.xlu1 %v4745_v31 }
 0x49d   :  { %3538 = vperm.xlu1 %4734, %v3306_v42   ;;  %4735 = vset.pattern.permute.xlu0 %v7442_v34 }
 0x4a1   :  { %v3307_v56 = vpop.f32.mrf.mxu3 }
 0x4a2   :  { %v3308_v0 = vadd.f32 %v3307_v56, %v7058_v2 }
 0x4a4   :  { %3409 = vperm.xlu0 %4735, %v3308_v0   ;;  %4736 = vset.pattern.permute.xlu2 %v4745_v31 }
 0x4a5   :  { %3542 = vperm.xlu2 %4736, %v3308_v0   ;;  %4737 = vset.pattern.permute.xlu1 %v7442_v34 }
 0x4a6   :  { %v3483_v30 = vpop.permute.xlu2 %3482 }
 0x4a7   :  { %v3513_v55 = vmul.f32 %v4462_v52, %v3483_v30  ;;  %v3514_v57 = vmul.f32 %v4463_v46, %v3483_v30  ;;  %v3330_v30 = vld [vmem:[%s7360_s5 + $0x50] sm:$0xff] }
 0x4a9   :  { %v3310_v43 = vpop.f32.mrf.mxu3 }
 0x4aa   :  { %v3311_v51 = vadd.f32 %v3310_v43, %v7061_v9  ;;  %v3324_v9 = vld [vmem:[%s7360_s5 + $0x20] sm:$0xff] }
 0x4ac   :  { %4738 = vset.pattern.permute.xlu0 %v4745_v31  ;;  %3414 = vperm.xlu1 %4737, %v3311_v51  }
 0x4ad   :  { %3546 = vperm.xlu0 %4738, %v3311_v51   ;;  %4739 = vset.pattern.permute.xlu2 %v7442_v34 }
 0x4af   :  { %v7118_v33 = vpop.permute.xlu2 %3343 }
 0x4b0   :  { %v3378_v29 = vmul.f32 %v7118_v33, %v3322_v4  ;;  %v3379_v23 = vmul.f32 %v7118_v33, %v3323_v22 }
 0x4b1   :  { %v3312_v36 = vpop.f32.mrf.mxu3 }
 0x4b2   :  { %v3313_v45 = vadd.f32 %v3312_v36, %v7072_v11  ;;  %v3331_v36 = vld [vmem:[%s7360_s5 + $0x58] sm:$0xff] }
 0x4b4   :  { %3419 = vperm.xlu2 %4739, %v3313_v45  }
 0x4b5   :  { %4740 = vset.pattern.permute.xlu0 %v7442_v34 }
 0x4b9   :  { %v3315_v49 = vpop.f32.mrf.mxu3 }
 0x4ba   :  { %v3316_v8 = vadd.f32 %v3315_v49, %v7075_v6  ;;  %v4467_v49 = vld [vmem:[%s7360_s5 + $0xa8] sm:$0xff] }
 0x4bc   :  { %3424 = vperm.xlu0 %4740, %v3316_v8   ;;  %4742 = vset.pattern.permute.xlu2 %v4745_v31 }
 0x4bd   :  { %3554 = vperm.xlu2 %4742, %v3316_v8  }
 0x4be   :  { %v3495_v3 = vpop.permute.xlu2 %3494  ;;  %v3339_v44 = vpop.permute.xlu1 %3338 }
 0x4bf   :  { %v3376_v24 = vmul.f32 %v3339_v44, %v3320_v40  ;;  %v3519_v34 = vmul.f32 %v4468_v53, %v3495_v3  ;;  %v3520_v16 = vmul.f32 %v4469_v48, %v3495_v3  ;;  %v3328_v40 = vld [vmem:[%s7360_s5 + $0x40] sm:$0xff] }
 0x4c1   :  { %v3317_v15 = vpop.f32.mrf.mxu3 }
 0x4c2   :  { %v3318_v50 = vadd.f32 %v3317_v15, %v7078_v20  ;;  %v3321_v20 = vld [vmem:[%s7360_s5 + $0x8] sm:$0xff] }
 0x4c3   :  { %v3377_v12 = vmul.f32 %v3339_v44, %v3321_v20  ;;  %v4471_v20 = vld [vmem:[%s7360_s5 + $0xc8] sm:$0xff] }
 0x4c4   :  { %4743 = vset.pattern.permute.xlu0 %v4745_v31  ;;  %3429 = vperm.xlu1 %4737, %v3318_v50  }
 0x4c5   :  { %3558 = vperm.xlu0 %4743, %v3318_v50  }
 0x4c6   :  { %v3487_v61 = vpop.permute.xlu0 %3486 }
 0x4c7   :  { %v7124_v35 = vpop.permute.xlu2 %3358  ;;  %v3515_v63 = vmul.f32 %v4464_v32, %v3487_v61  ;;  %v3516_v18 = vmul.f32 %v4465_v25, %v3487_v61  ;;  %v3334_v25 = vld [vmem:[%s7360_s5 + $0x70] sm:$0xff] }
 0x4c8   :  { %v3384_v53 = vmul.f32 %v7124_v35, %v3328_v40 }
 0x4cc   :  { %4741 = vset.pattern.permute.xlu1 %v4745_v31  ;;  %v3325_v31 = vld [vmem:[%s7360_s5 + $0x28] sm:$0xff] }
 0x4cd   :  { %3550 = vperm.xlu1 %4741, %v3313_v45   ;;  %v4466_v45 = vld [vmem:[%s7360_s5 + $0xa0] sm:$0xff] }
 0x4ce   :  { %v7129_v54 = vpop.permute.xlu1 %3490 }
 0x4cf   :  { %v3349_v47 = vpop.permute.xlu0 %3348  ;;  %v3517_v15 = vmul.f32 %v4466_v45, %v7129_v54  ;;  %v3518_v3 = vmul.f32 %v4467_v49, %v7129_v54  ;;  %v4474_v54 = vld [vmem:[%s7360_s5 + $0xe0] sm:$0xff] }
 0x4d0   :  { %v7127_v17 = vpop.permute.xlu2 %3502  ;;  %v3380_v13 = vmul.f32 %v3349_v47, %v3324_v9  ;;  %v3381_v60 = vmul.f32 %v3349_v47, %v3325_v31 }
 0x4d7   :  { %v7133_v10 = vpop.permute.xlu1 %3353 }
 0x4de   :  { %v7131_v59 = vpop.permute.xlu2 %3373 }
 0x4e0   :  { %v7147_v38 = vpop.permute.xlu1 %3498 }
 0x4e6   :  { %v3364_v1 = vpop.permute.xlu0 %3363 }
 0x4e7   :  { %v3531_v28 = vpop.permute.xlu2 %3530  ;;  %v3386_v33 = vmul.f32 %v3364_v1, %v3330_v30  ;;  %v3387_v8 = vmul.f32 %v3364_v1, %v3331_v36 }
 0x4e8   :  { %v3561_v39 = vadd.f32 %v3531_v28, %v3513_v55  ;;  %v3562_v2 = vadd.f32 %v3531_v28, %v3514_v57  ;;  %v3326_v55 = vld [vmem:[%s7360_s5 + $0x30] sm:$0xff]  ;;  %v3327_v57 = vld [vmem:[%s7360_s5 + $0x38] sm:$0xff]  ;;  %v4475_v28 = vld [vmem:[%s7360_s5 + $0xe8] sm:$0xff] }
 0x4ea   :  { %4478 = vst [vmem:[%s7361_s6 + $0x80] sm:$0xff] %v3561_v39  ;;  %v3382_v39 = vmul.f32 %v7133_v10, %v3326_v55 }
 0x4eb   :  { %4479 = vst [vmem:[%s7361_s6 + $0x88] sm:$0xff] %v3562_v2  ;;  %v3383_v2 = vmul.f32 %v7133_v10, %v3327_v57  ;;  %v3329_v10 = vld [vmem:[%s7360_s5 + $0x48] sm:$0xff] }
 0x4ec   :  { %v3385_v48 = vmul.f32 %v7124_v35, %v3329_v10  ;;  %v3332_v35 = vld [vmem:[%s7360_s5 + $0x60] sm:$0xff] }
 0x4ee   :  { %v7155_v58 = vpop.permute.xlu1 %3368 }
 0x4ef   :  { %v7157_v11 = vpop.permute.xlu0 %3506 }
 0x4f0   :  { %v3525_v1 = vmul.f32 %v4474_v54, %v7157_v11  ;;  %v3526_v9 = vmul.f32 %v4475_v28, %v7157_v11  ;;  %v4470_v11 = vld [vmem:[%s7360_s5 + $0xc0] sm:$0xff] }
 0x4f6   :  { %v3405_v14 = vpop.permute.xlu2 %3404 }
 0x4f7   :  { %v3436_v19 = vadd.f32 %v3405_v14, %v3380_v13  ;;  %v3437_v6 = vadd.f32 %v3405_v14, %v3381_v60  ;;  %v7177_v62 = vpop.permute.xlu1 %3510 }
 0x4f9   :  { %3452 = vst [vmem:[%s7361_s6 + $0x20] sm:$0xff] %v3436_v19 }
 0x4fa   :  { %3453 = vst [vmem:[%s7361_s6 + $0x28] sm:$0xff] %v3437_v6 }
 0x4fe   :  { %v3395_v37 = vpop.permute.xlu0 %3394 }
 0x4ff   :  { %v3432_v26 = vadd.f32 %v3395_v37, %v3376_v24  ;;  %v3433_v27 = vadd.f32 %v3395_v37, %v3377_v12  ;;  %v3543_v5 = vpop.permute.xlu2 %3542  ;;  %v3521_v24 = vmul.f32 %v4470_v11, %v7147_v38  ;;  %v3522_v12 = vmul.f32 %v4471_v20, %v7147_v38  ;;  %v3333_v38 = vld [vmem:[%s7360_s5 + $0x68] sm:$0xff] }
 0x500   :  { %v3567_v21 = vadd.f32 %v3543_v5, %v3519_v34  ;;  %v3568_v41 = vadd.f32 %v3543_v5, %v3520_v16 }
 0x501   :  { %3448 = vst [vmem:[%s7361_s6] sm:$0xff] %v3432_v26 }
 0x502   :  { %3449 = vst [vmem:[%s7361_s6 + $0x8] sm:$0xff] %v3433_v27 }
 0x503   :  { %4484 = vst [vmem:[%s7361_s6 + $0xb0] sm:$0xff] %v3567_v21  ;;  %v3388_v21 = vmul.f32 %v7155_v58, %v3332_v35 }
 0x504   :  { %4485 = vst [vmem:[%s7361_s6 + $0xb8] sm:$0xff] %v3568_v41  ;;  %v3389_v41 = vmul.f32 %v7155_v58, %v3333_v38  ;;  %v4476_v58 = vld [vmem:[%s7360_s5 + $0xf0] sm:$0xff] }
 0x506   :  { %v3400_v7 = vpop.permute.xlu1 %3399 }
 0x507   :  { %v3434_v42 = vadd.f32 %v3400_v7, %v3378_v29  ;;  %v3435_v56 = vadd.f32 %v3400_v7, %v3379_v23  ;;  %v3535_v0 = vpop.permute.xlu0 %3534  ;;  %v3335_v29 = vld [vmem:[%s7360_s5 + $0x78] sm:$0xff]  ;;  %v3527_v7 = vmul.f32 %v4476_v58, %v7177_v62 }
 0x508   :  { %v3563_v43 = vadd.f32 %v3535_v0, %v3515_v63  ;;  %v3564_v51 = vadd.f32 %v3535_v0, %v3516_v18  ;;  %v4477_v23 = vld [vmem:[%s7360_s5 + $0xf8] sm:$0xff]  ;;  %v3390_v63 = vmul.f32 %v7131_v59, %v3334_v25  ;;  %v3391_v18 = vmul.f32 %v7131_v59, %v3335_v29  ;;  %v4472_v59 = vld [vmem:[%s7360_s5 + $0xd0] sm:$0xff] }
 0x509   :  { %3450 = vst [vmem:[%s7361_s6 + $0x10] sm:$0xff] %v3434_v42  ;;  %v3528_v42 = vmul.f32 %v4477_v23, %v7177_v62  ;;  %v4473_v62 = vld [vmem:[%s7360_s5 + $0xd8] sm:$0xff]  ;;  %v3523_v45 = vmul.f32 %v4472_v59, %v7127_v17 }
 0x50a   :  { %3451 = vst [vmem:[%s7361_s6 + $0x18] sm:$0xff] %v3435_v56  ;;  %v3524_v49 = vmul.f32 %v4473_v62, %v7127_v17 }
 0x50b   :  { %4480 = vst [vmem:[%s7361_s6 + $0x90] sm:$0xff] %v3563_v43 }
 0x50c   :  { %4481 = vst [vmem:[%s7361_s6 + $0x98] sm:$0xff] %v3564_v51 }
 0x50e   :  { %v3420_v50 = vpop.permute.xlu2 %3419 }
 0x50f   :  { %v3442_v44 = vadd.f32 %v3420_v50, %v3386_v33  ;;  %v3443_v61 = vadd.f32 %v3420_v50, %v3387_v8  ;;  %v3539_v52 = vpop.permute.xlu1 %3538 }
 0x510   :  { %v3565_v46 = vadd.f32 %v3539_v52, %v3517_v15  ;;  %v3566_v47 = vadd.f32 %v3539_v52, %v3518_v3 }
 0x511   :  { %3458 = vst [vmem:[%s7361_s6 + $0x50] sm:$0xff] %v3442_v44 }
 0x512   :  { %3459 = vst [vmem:[%s7361_s6 + $0x58] sm:$0xff] %v3443_v61 }
 0x513   :  { %4482 = vst [vmem:[%s7361_s6 + $0xa0] sm:$0xff] %v3565_v46 }
 0x514   :  { %4483 = vst [vmem:[%s7361_s6 + $0xa8] sm:$0xff] %v3566_v47 }
 0x516   :  { %v3410_v31 = vpop.permute.xlu0 %3409 }
 0x517   :  { %v3438_v13 = vadd.f32 %v3410_v31, %v3382_v39  ;;  %v3439_v60 = vadd.f32 %v3410_v31, %v3383_v2  ;;  %v3555_v14 = vpop.permute.xlu2 %3554 }
 0x518   :  { %v3573_v19 = vadd.f32 %v3555_v14, %v3525_v1  ;;  %v3574_v6 = vadd.f32 %v3555_v14, %v3526_v9 }
 0x519   :  { %3454 = vst [vmem:[%s7361_s6 + $0x30] sm:$0xff] %v3438_v13 }
 0x51a   :  { %3455 = vst [vmem:[%s7361_s6 + $0x38] sm:$0xff] %v3439_v60 }
 0x51b   :  { %4490 = vst [vmem:[%s7361_s6 + $0xe0] sm:$0xff] %v3573_v19 }
 0x51c   :  { %4491 = vst [vmem:[%s7361_s6 + $0xe8] sm:$0xff] %v3574_v6 }
 0x51e   :  { %v3415_v34 = vpop.permute.xlu1 %3414 }
 0x51f   :  { %v3440_v16 = vadd.f32 %v3415_v34, %v3384_v53  ;;  %v3441_v37 = vadd.f32 %v3415_v34, %v3385_v48  ;;  %v3547_v26 = vpop.permute.xlu0 %3546 }
 0x520   :  { %v3569_v27 = vadd.f32 %v3547_v26, %v3521_v24  ;;  %v3570_v5 = vadd.f32 %v3547_v26, %v3522_v12 }
 0x521   :  { %3456 = vst [vmem:[%s7361_s6 + $0x40] sm:$0xff] %v3440_v16 }
 0x522   :  { %3457 = vst [vmem:[%s7361_s6 + $0x48] sm:$0xff] %v3441_v37 }
 0x523   :  { %4486 = vst [vmem:[%s7361_s6 + $0xc0] sm:$0xff] %v3569_v27 }
 0x524   :  { %4487 = vst [vmem:[%s7361_s6 + $0xc8] sm:$0xff] %v3570_v5 }
 0x52e   :  { %v3425_v4 = vpop.permute.xlu0 %3424 }
 0x52f   :  { %v3444_v22 = vadd.f32 %v3425_v4, %v3388_v21  ;;  %v3445_v32 = vadd.f32 %v3425_v4, %v3389_v41 }
 0x531   :  { %3460 = vst [vmem:[%s7361_s6 + $0x60] sm:$0xff] %v3444_v22 }
 0x532   :  { %3461 = vst [vmem:[%s7361_s6 + $0x68] sm:$0xff] %v3445_v32 }
 0x536   :  { %v3430_v56 = vpop.permute.xlu1 %3429 }
 0x537   :  { %v3446_v0 = vadd.f32 %v3430_v56, %v3390_v63  ;;  %v3447_v43 = vadd.f32 %v3430_v56, %v3391_v18  ;;  %v3559_v51 = vpop.permute.xlu0 %3558 }
 0x538   :  { %v3575_v30 = vadd.f32 %v3559_v51, %v3527_v7  ;;  %v3576_v36 = vadd.f32 %v3559_v51, %v3528_v42 }
 0x539   :  { %3462 = vst [vmem:[%s7361_s6 + $0x70] sm:$0xff] %v3446_v0 }
 0x53a   :  { %3463 = vst [vmem:[%s7361_s6 + $0x78] sm:$0xff] %v3447_v43 }
 0x53b   :  { %4492 = vst [vmem:[%s7361_s6 + $0xf0] sm:$0xff] %v3575_v30 }
 0x53c   :  { %4493 = vst [vmem:[%s7361_s6 + $0xf8] sm:$0xff] %v3576_v36 }
 0x53f   :  { %v3551_v33 = vpop.permute.xlu1 %3550 }
 0x540   :  { %v3571_v8 = vadd.f32 %v3551_v33, %v3523_v45  ;;  %v3572_v15 = vadd.f32 %v3551_v33, %v3524_v49 }
 0x542   :  { %4488 = vst [vmem:[%s7361_s6 + $0xd0] sm:$0xff] %v3571_v8 }
 0x543   :  { %4489 = vst [vmem:[%s7361_s6 + $0xd8] sm:$0xff] %v3572_v15 }

</bundles_post_ra>
